<compile_context>
chip_gen: v7x
topology: tpu7x:2x2x1
jax: 0.10.0
libtpu: 0.0.40
codegen_flags: <defaults>
</compile_context>

<pallas_src>
import jax
import jax.numpy as jnp
from jax.experimental import pallas as pl
from jax.experimental.pallas import tpu as pltpu  # noqa: F401  (TPU backend)

# ----------------------------- tiny BERT config -----------------------------
VOCAB = 100
MAX_POS = 16
TYPE_VOCAB = 2
H = 32           # hidden size
NH = 4           # attention heads
HD = H // NH     # head dim
INTER = 64       # intermediate (FFN) size
NL = 2           # encoder layers
NC = 2           # n_classes
LN_EPS = 1e-12


def _layernorm(x, gamma, beta):
    mu = jnp.mean(x, axis=-1, keepdims=True)
    var = jnp.mean((x - mu) ** 2, axis=-1, keepdims=True)
    return (x - mu) * jax.lax.rsqrt(var + LN_EPS) * gamma + beta


# ---------------------- fully fused BERT + head kernel -----------------------
def fused_bert_kernel(x_ref, bias_ref,
                      wqkv_ref, bqkv_ref, wo_ref, bo_ref, ln1g_ref, ln1b_ref,
                      wi_ref, bi_ref, wd_ref, bd_ref, ln2g_ref, ln2b_ref,
                      wa_ref, ba_ref, wfc_ref, bfc_ref,
                      logits_ref, aw_ref):
    B = bias_ref.shape[0]
    S = bias_ref.shape[2]
    Hd = x_ref.shape[1]

    x = x_ref[...]                         # (B*S, H) activations; stay in VMEM
    bias_all = bias_ref[...]               # (B, 1, S) additive attention bias
    scale = 1.0 / (HD ** 0.5)

    # ------------------------------ encoder layers ---------------------------
    for l in range(NL):                    # static unroll over layers
        wqkv = wqkv_ref[l]                 # (H, 3H) fused Q|K|V projection
        bqkv = bqkv_ref[l]                 # (1, 3H)
        wo = wo_ref[l]                     # (H, H)
        bo = bo_ref[l]                     # (1, H)
        wi = wi_ref[l]                     # (H, INTER)
        bi = bi_ref[l]                     # (1, INTER)
        wd = wd_ref[l]                     # (INTER, H)
        bd = bd_ref[l]                     # (1, H)

        qkv = jnp.dot(x, wqkv, preferred_element_type=jnp.float32) + bqkv  # (B*S, 3H)

        attn_rows = []
        for b in range(B):                 # static unroll over batch rows
            r0 = b * S
            bias_b = bias_all[b]           # (1, S)
            acc = jnp.zeros((S, Hd), jnp.float32)
            for h in range(NH):            # static unroll over heads
                c0 = h * HD
                qh = qkv[r0:r0 + S, c0:c0 + HD]                       # (S, HD)
                kh = qkv[r0:r0 + S, Hd + c0:Hd + c0 + HD]             # (S, HD)
                vh = qkv[r0:r0 + S, 2 * Hd + c0:2 * Hd + c0 + HD]     # (S, HD)
                sc = (jnp.dot(qh, kh.T, preferred_element_type=jnp.float32)
                      * scale + bias_b)                               # (S, S)
                sc = sc - jnp.max(sc, axis=-1, keepdims=True)
                e = jnp.exp(sc)
                p = e * pl.reciprocal(jnp.sum(e, axis=-1, keepdims=True),
                                      approx=True)
                ctx_h = jnp.dot(p, vh, preferred_element_type=jnp.float32)  # (S, HD)
                # accumulate via this head's row-block of Wo (no lane concat)
                acc = acc + jnp.dot(ctx_h, wo[c0:c0 + HD, :],
                                    preferred_element_type=jnp.float32)
            attn_rows.append(acc)
        attn_out = jnp.concatenate(attn_rows, axis=0) + bo            # (B*S, H)

        x = _layernorm(x + attn_out, ln1g_ref[l], ln1b_ref[l])

        inter = jnp.dot(x, wi, preferred_element_type=jnp.float32) + bi
        # TODO(synk): HF BERT uses exact erf-GELU; tanh approximation used here.
        inter = jax.nn.gelu(inter, approximate=True)
        ffn = jnp.dot(inter, wd, preferred_element_type=jnp.float32) + bd
        x = _layernorm(x + ffn, ln2g_ref[l], ln2b_ref[l])

    # -------------------------- attention-pooling head -----------------------
    wa = wa_ref[...]                       # (1, H)
    ba = ba_ref[...]                       # (1, 1)
    wfc = wfc_ref[...]                     # (H, NC)
    bfc = bfc_ref[...]                     # (1, NC)

    aw_rows = []
    logits_rows = []
    for b in range(B):
        r0 = b * S
        hb = x[r0:r0 + S, :]                                          # (S, H)
        # NOTE: like the PyTorch reference, the pooling softmax ignores the
        # attention mask (torch.softmax(self.attn(h), dim=1) is unmasked).
        sc = jnp.dot(wa, hb.T, preferred_element_type=jnp.float32) + ba   # (1, S)
        sc = sc - jnp.max(sc, axis=-1, keepdims=True)
        e = jnp.exp(sc)
        aw_b = e / jnp.sum(e, axis=-1, keepdims=True)                 # exact norm
        aw_rows.append(aw_b)
        ctx_b = jnp.dot(aw_b, hb, preferred_element_type=jnp.float32)     # (1, H)
        logits_rows.append(jnp.dot(ctx_b, wfc,
                                   preferred_element_type=jnp.float32) + bfc)

    logits_ref[...] = jnp.concatenate(logits_rows, axis=0)            # (B, NC)
    aw_ref[...] = jnp.concatenate(aw_rows, axis=0)                    # (B, S)


# ------------------------------ parameter init -------------------------------
def init_params(key):
    keys = jax.random.split(key, 12)
    kit = iter(keys)

    def dense(shape):
        return 0.02 * jax.random.normal(next(kit), shape, jnp.float32)

    return {
        "word_emb": dense((VOCAB, H)),
        "pos_emb": dense((MAX_POS, H)),
        "type_emb": dense((TYPE_VOCAB, H)),
        "emb_ln_g": jnp.ones((H,), jnp.float32),
        "emb_ln_b": jnp.zeros((H,), jnp.float32),
        # per-layer weights stacked along a leading "layer" axis
        "wqkv": dense((NL, H, 3 * H)),
        "bqkv": jnp.zeros((NL, 1, 3 * H), jnp.float32),
        "wo": dense((NL, H, H)),
        "bo": jnp.zeros((NL, 1, H), jnp.float32),
        "ln1g": jnp.ones((NL, 1, H), jnp.float32),
        "ln1b": jnp.zeros((NL, 1, H), jnp.float32),
        "wi": dense((NL, H, INTER)),
        "bi": jnp.zeros((NL, 1, INTER), jnp.float32),
        "wd": dense((NL, INTER, H)),
        "bd": jnp.zeros((NL, 1, H), jnp.float32),
        "ln2g": jnp.ones((NL, 1, H), jnp.float32),
        "ln2b": jnp.zeros((NL, 1, H), jnp.float32),
        # head: nn.Linear(H, 1) and nn.Linear(H, NC) (fc weight pre-transposed)
        "wa": dense((1, H)),
        "ba": jnp.zeros((1, 1), jnp.float32),
        "wfc": dense((H, NC)),
        "bfc": jnp.zeros((1, NC), jnp.float32),
    }


# --------------------------------- forward -----------------------------------
@jax.jit
def bert_with_attention(input_ids, attention_mask, params):
    B, S = input_ids.shape
    # Embedding lookup + LayerNorm (plain-JAX glue: gathers, tiny elementwise).
    emb = (params["word_emb"][input_ids]
           + params["pos_emb"][jnp.arange(S)][None, :, :]
           + params["type_emb"][0][None, None, :])
    x = _layernorm(emb, params["emb_ln_g"], params["emb_ln_b"])
    x2d = x.reshape(B * S, H).astype(jnp.float32)
    # additive attention bias computed once, reused by every encoder layer
    bias = ((1.0 - attention_mask.astype(jnp.float32)) * (-1e9)).reshape(B, 1, S)

    logits, aw = pl.pallas_call(
        fused_bert_kernel,
        out_shape=(jax.ShapeDtypeStruct((B, NC), jnp.float32),
                   jax.ShapeDtypeStruct((B, S), jnp.float32)),
    )(x2d, bias,
      params["wqkv"], params["bqkv"], params["wo"], params["bo"],
      params["ln1g"], params["ln1b"], params["wi"], params["bi"],
      params["wd"], params["bd"], params["ln2g"], params["ln2b"],
      params["wa"], params["ba"], params["wfc"], params["bfc"])

    # torch returns attn_weights with shape (B, S, 1)
    return logits, aw.reshape(B, S, 1)


# ----------------------------------- main -------------------------------------
if __name__ == "__main__":
    key = jax.random.PRNGKey(0)
    pkey, ikey = jax.random.split(key)
    params = init_params(pkey)

    B, S = 2, 8
    input_ids = jax.random.randint(ikey, (B, S), 0, VOCAB, dtype=jnp.int32)
    attention_mask = jnp.array(
        [[1, 1, 1, 1, 1, 1, 1, 1],
         [1, 1, 1, 1, 1, 0, 0, 0]], dtype=jnp.int32)

    logits, attn_weights = bert_with_attention(input_ids, attention_mask, params)
    jax.block_until_ready((logits, attn_weights))

    assert logits.shape == (B, NC)
    assert attn_weights.shape == (B, S, 1)
    assert bool(jnp.all(jnp.isfinite(logits)))
    assert bool(jnp.all(jnp.isfinite(attn_weights)))
    assert bool(jnp.allclose(jnp.sum(attn_weights, axis=1), 1.0, atol=1e-5))
    print("KERNEL_OK")
</pallas_src>

<mosaic_0001>
module attributes {stable_mosaic.version = 11 : i64} {
  func.func @fused_bert_kernel(%arg0: memref<16x32xf32, #tpu.memory_space<vmem>>, %arg1: memref<2x1x8xf32, #tpu.memory_space<vmem>>, %arg2: memref<2x32x96xf32, #tpu.memory_space<vmem>>, %arg3: memref<2x1x96xf32, #tpu.memory_space<vmem>>, %arg4: memref<2x32x32xf32, #tpu.memory_space<vmem>>, %arg5: memref<2x1x32xf32, #tpu.memory_space<vmem>>, %arg6: memref<2x1x32xf32, #tpu.memory_space<vmem>>, %arg7: memref<2x1x32xf32, #tpu.memory_space<vmem>>, %arg8: memref<2x32x64xf32, #tpu.memory_space<vmem>>, %arg9: memref<2x1x64xf32, #tpu.memory_space<vmem>>, %arg10: memref<2x64x32xf32, #tpu.memory_space<vmem>>, %arg11: memref<2x1x32xf32, #tpu.memory_space<vmem>>, %arg12: memref<2x1x32xf32, #tpu.memory_space<vmem>>, %arg13: memref<2x1x32xf32, #tpu.memory_space<vmem>>, %arg14: memref<1x32xf32, #tpu.memory_space<vmem>>, %arg15: memref<1x1xf32, #tpu.memory_space<vmem>>, %arg16: memref<32x2xf32, #tpu.memory_space<vmem>>, %arg17: memref<1x2xf32, #tpu.memory_space<vmem>>, %arg18: memref<2x2xf32, #tpu.memory_space<vmem>>, %arg19: memref<2x8xf32, #tpu.memory_space<vmem>>) attributes {dimension_semantics = [], scalar_prefetch = 0 : i64, scratch_operands = 0 : i64, tpu.core_type = #tpu.core_type<tc>} {
    %c0 = arith.constant 0 : index
    %c0_0 = arith.constant 0 : index
    %0 = vector.load %arg0[%c0, %c0_0] : memref<16x32xf32, #tpu.memory_space<vmem>>, vector<16x32xf32>
    %c0_1 = arith.constant 0 : index
    %c0_2 = arith.constant 0 : index
    %c0_3 = arith.constant 0 : index
    %1 = vector.load %arg1[%c0_1, %c0_2, %c0_3] : memref<2x1x8xf32, #tpu.memory_space<vmem>>, vector<2x1x8xf32>
    %c0_4 = arith.constant 0 : index
    %c0_5 = arith.constant 0 : index
    %c0_6 = arith.constant 0 : index
    %2 = vector.load %arg2[%c0_4, %c0_5, %c0_6] : memref<2x32x96xf32, #tpu.memory_space<vmem>>, vector<1x32x96xf32>
    %3 = vector.shape_cast %2 : vector<1x32x96xf32> to vector<32x96xf32>
    %c0_7 = arith.constant 0 : index
    %c0_8 = arith.constant 0 : index
    %c0_9 = arith.constant 0 : index
    %4 = vector.load %arg3[%c0_7, %c0_8, %c0_9] : memref<2x1x96xf32, #tpu.memory_space<vmem>>, vector<1x1x96xf32>
    %5 = vector.shape_cast %4 : vector<1x1x96xf32> to vector<1x96xf32>
    %c0_10 = arith.constant 0 : index
    %c0_11 = arith.constant 0 : index
    %c0_12 = arith.constant 0 : index
    %6 = vector.load %arg4[%c0_10, %c0_11, %c0_12] : memref<2x32x32xf32, #tpu.memory_space<vmem>>, vector<1x32x32xf32>
    %7 = vector.shape_cast %6 : vector<1x32x32xf32> to vector<32x32xf32>
    %c0_13 = arith.constant 0 : index
    %c0_14 = arith.constant 0 : index
    %c0_15 = arith.constant 0 : index
    %8 = vector.load %arg5[%c0_13, %c0_14, %c0_15] : memref<2x1x32xf32, #tpu.memory_space<vmem>>, vector<1x1x32xf32>
    %9 = vector.shape_cast %8 : vector<1x1x32xf32> to vector<1x32xf32>
    %c0_16 = arith.constant 0 : index
    %c0_17 = arith.constant 0 : index
    %c0_18 = arith.constant 0 : index
    %10 = vector.load %arg8[%c0_16, %c0_17, %c0_18] : memref<2x32x64xf32, #tpu.memory_space<vmem>>, vector<1x32x64xf32>
    %11 = vector.shape_cast %10 : vector<1x32x64xf32> to vector<32x64xf32>
    %c0_19 = arith.constant 0 : index
    %c0_20 = arith.constant 0 : index
    %c0_21 = arith.constant 0 : index
    %12 = vector.load %arg9[%c0_19, %c0_20, %c0_21] : memref<2x1x64xf32, #tpu.memory_space<vmem>>, vector<1x1x64xf32>
    %13 = vector.shape_cast %12 : vector<1x1x64xf32> to vector<1x64xf32>
    %c0_22 = arith.constant 0 : index
    %c0_23 = arith.constant 0 : index
    %c0_24 = arith.constant 0 : index
    %14 = vector.load %arg10[%c0_22, %c0_23, %c0_24] : memref<2x64x32xf32, #tpu.memory_space<vmem>>, vector<1x64x32xf32>
    %15 = vector.shape_cast %14 : vector<1x64x32xf32> to vector<64x32xf32>
    %c0_25 = arith.constant 0 : index
    %c0_26 = arith.constant 0 : index
    %c0_27 = arith.constant 0 : index
    %16 = vector.load %arg11[%c0_25, %c0_26, %c0_27] : memref<2x1x32xf32, #tpu.memory_space<vmem>>, vector<1x1x32xf32>
    %17 = vector.shape_cast %16 : vector<1x1x32xf32> to vector<1x32xf32>
    %cst = arith.constant dense<0.000000e+00> : vector<16x96xf32>
    %18 = tpu.matmul %0, %3, %cst {dimension_numbers = #tpu.dot_dimension_numbers<[1], [0], [0], [1], [0, 0, 1, 1], [], []>} : vector<16x32xf32>, vector<32x96xf32>, vector<16x96xf32> -> vector<16x96xf32>
    %19 = vector.broadcast %5 : vector<1x96xf32> to vector<16x96xf32>
    %20 = arith.addf %18, %19 : vector<16x96xf32>
    %21 = vector.extract_strided_slice %1 {offsets = [0, 0, 0], sizes = [1, 1, 8], strides = [1, 1, 1]} : vector<2x1x8xf32> to vector<1x1x8xf32>
    %22 = vector.shape_cast %21 : vector<1x1x8xf32> to vector<1x8xf32>
    %cst_28 = arith.constant 0.000000e+00 : f32
    %23 = vector.broadcast %cst_28 : f32 to vector<8x32xf32>
    %24 = vector.extract_strided_slice %20 {offsets = [0, 0], sizes = [8, 8], strides = [1, 1]} : vector<16x96xf32> to vector<8x8xf32>
    %25 = vector.extract_strided_slice %20 {offsets = [0, 32], sizes = [8, 8], strides = [1, 1]} : vector<16x96xf32> to vector<8x8xf32>
    %26 = vector.extract_strided_slice %20 {offsets = [0, 64], sizes = [8, 8], strides = [1, 1]} : vector<16x96xf32> to vector<8x8xf32>
    %27 = tpu.transpose %25, [1, 0] : vector<8x8xf32> -> vector<8x8xf32>
    %cst_29 = arith.constant dense<0.000000e+00> : vector<8x8xf32>
    %28 = tpu.matmul %24, %27, %cst_29 {dimension_numbers = #tpu.dot_dimension_numbers<[1], [0], [0], [1], [0, 0, 1, 1], [], []>} : vector<8x8xf32>, vector<8x8xf32>, vector<8x8xf32> -> vector<8x8xf32>
    %cst_30 = arith.constant 0.353553385 : f32
    %29 = vector.broadcast %cst_30 : f32 to vector<8x8xf32>
    %30 = arith.mulf %28, %29 : vector<8x8xf32>
    %31 = vector.broadcast %22 : vector<1x8xf32> to vector<8x8xf32>
    %32 = arith.addf %30, %31 : vector<8x8xf32>
    %cst_31 = arith.constant dense<0xFF800000> : vector<8xf32>
    %33 = vector.multi_reduction <maximumf>, %32, %cst_31 [1] : vector<8x8xf32> to vector<8xf32>
    %34 = vector.shape_cast %33 : vector<8xf32> to vector<8x1xf32>
    %35 = vector.broadcast %34 : vector<8x1xf32> to vector<8x8xf32>
    %36 = arith.subf %32, %35 : vector<8x8xf32>
    %37 = math.exp %36 : vector<8x8xf32>
    %cst_32 = arith.constant dense<0.000000e+00> : vector<8xf32>
    %38 = vector.multi_reduction <add>, %37, %cst_32 [1] : vector<8x8xf32> to vector<8xf32>
    %39 = vector.shape_cast %38 : vector<8xf32> to vector<8x1xf32>
    %40 = tpu.reciprocal %39 {approx = true} : vector<8x1xf32> -> vector<8x1xf32>
    %41 = vector.broadcast %40 : vector<8x1xf32> to vector<8x8xf32>
    %42 = arith.mulf %37, %41 : vector<8x8xf32>
    %cst_33 = arith.constant dense<0.000000e+00> : vector<8x8xf32>
    %43 = tpu.matmul %42, %26, %cst_33 {dimension_numbers = #tpu.dot_dimension_numbers<[1], [0], [0], [1], [0, 0, 1, 1], [], []>} : vector<8x8xf32>, vector<8x8xf32>, vector<8x8xf32> -> vector<8x8xf32>
    %44 = vector.extract_strided_slice %7 {offsets = [0, 0], sizes = [8, 32], strides = [1, 1]} : vector<32x32xf32> to vector<8x32xf32>
    %cst_34 = arith.constant dense<0.000000e+00> : vector<8x32xf32>
    %45 = tpu.matmul %43, %44, %cst_34 {dimension_numbers = #tpu.dot_dimension_numbers<[1], [0], [0], [1], [0, 0, 1, 1], [], []>} : vector<8x8xf32>, vector<8x32xf32>, vector<8x32xf32> -> vector<8x32xf32>
    %46 = arith.addf %23, %45 : vector<8x32xf32>
    %47 = vector.extract_strided_slice %20 {offsets = [0, 8], sizes = [8, 8], strides = [1, 1]} : vector<16x96xf32> to vector<8x8xf32>
    %48 = vector.extract_strided_slice %20 {offsets = [0, 40], sizes = [8, 8], strides = [1, 1]} : vector<16x96xf32> to vector<8x8xf32>
    %49 = vector.extract_strided_slice %20 {offsets = [0, 72], sizes = [8, 8], strides = [1, 1]} : vector<16x96xf32> to vector<8x8xf32>
    %50 = tpu.transpose %48, [1, 0] : vector<8x8xf32> -> vector<8x8xf32>
    %cst_35 = arith.constant dense<0.000000e+00> : vector<8x8xf32>
    %51 = tpu.matmul %47, %50, %cst_35 {dimension_numbers = #tpu.dot_dimension_numbers<[1], [0], [0], [1], [0, 0, 1, 1], [], []>} : vector<8x8xf32>, vector<8x8xf32>, vector<8x8xf32> -> vector<8x8xf32>
    %cst_36 = arith.constant 0.353553385 : f32
    %52 = vector.broadcast %cst_36 : f32 to vector<8x8xf32>
    %53 = arith.mulf %51, %52 : vector<8x8xf32>
    %54 = vector.broadcast %22 : vector<1x8xf32> to vector<8x8xf32>
    %55 = arith.addf %53, %54 : vector<8x8xf32>
    %cst_37 = arith.constant dense<0xFF800000> : vector<8xf32>
    %56 = vector.multi_reduction <maximumf>, %55, %cst_37 [1] : vector<8x8xf32> to vector<8xf32>
    %57 = vector.shape_cast %56 : vector<8xf32> to vector<8x1xf32>
    %58 = vector.broadcast %57 : vector<8x1xf32> to vector<8x8xf32>
    %59 = arith.subf %55, %58 : vector<8x8xf32>
    %60 = math.exp %59 : vector<8x8xf32>
    %cst_38 = arith.constant dense<0.000000e+00> : vector<8xf32>
    %61 = vector.multi_reduction <add>, %60, %cst_38 [1] : vector<8x8xf32> to vector<8xf32>
    %62 = vector.shape_cast %61 : vector<8xf32> to vector<8x1xf32>
    %63 = tpu.reciprocal %62 {approx = true} : vector<8x1xf32> -> vector<8x1xf32>
    %64 = vector.broadcast %63 : vector<8x1xf32> to vector<8x8xf32>
    %65 = arith.mulf %60, %64 : vector<8x8xf32>
    %cst_39 = arith.constant dense<0.000000e+00> : vector<8x8xf32>
    %66 = tpu.matmul %65, %49, %cst_39 {dimension_numbers = #tpu.dot_dimension_numbers<[1], [0], [0], [1], [0, 0, 1, 1], [], []>} : vector<8x8xf32>, vector<8x8xf32>, vector<8x8xf32> -> vector<8x8xf32>
    %67 = vector.extract_strided_slice %7 {offsets = [8, 0], sizes = [8, 32], strides = [1, 1]} : vector<32x32xf32> to vector<8x32xf32>
    %cst_40 = arith.constant dense<0.000000e+00> : vector<8x32xf32>
    %68 = tpu.matmul %66, %67, %cst_40 {dimension_numbers = #tpu.dot_dimension_numbers<[1], [0], [0], [1], [0, 0, 1, 1], [], []>} : vector<8x8xf32>, vector<8x32xf32>, vector<8x32xf32> -> vector<8x32xf32>
    %69 = arith.addf %46, %68 : vector<8x32xf32>
    %70 = vector.extract_strided_slice %20 {offsets = [0, 16], sizes = [8, 8], strides = [1, 1]} : vector<16x96xf32> to vector<8x8xf32>
    %71 = vector.extract_strided_slice %20 {offsets = [0, 48], sizes = [8, 8], strides = [1, 1]} : vector<16x96xf32> to vector<8x8xf32>
    %72 = vector.extract_strided_slice %20 {offsets = [0, 80], sizes = [8, 8], strides = [1, 1]} : vector<16x96xf32> to vector<8x8xf32>
    %73 = tpu.transpose %71, [1, 0] : vector<8x8xf32> -> vector<8x8xf32>
    %cst_41 = arith.constant dense<0.000000e+00> : vector<8x8xf32>
    %74 = tpu.matmul %70, %73, %cst_41 {dimension_numbers = #tpu.dot_dimension_numbers<[1], [0], [0], [1], [0, 0, 1, 1], [], []>} : vector<8x8xf32>, vector<8x8xf32>, vector<8x8xf32> -> vector<8x8xf32>
    %cst_42 = arith.constant 0.353553385 : f32
    %75 = vector.broadcast %cst_42 : f32 to vector<8x8xf32>
    %76 = arith.mulf %74, %75 : vector<8x8xf32>
    %77 = vector.broadcast %22 : vector<1x8xf32> to vector<8x8xf32>
    %78 = arith.addf %76, %77 : vector<8x8xf32>
    %cst_43 = arith.constant dense<0xFF800000> : vector<8xf32>
    %79 = vector.multi_reduction <maximumf>, %78, %cst_43 [1] : vector<8x8xf32> to vector<8xf32>
    %80 = vector.shape_cast %79 : vector<8xf32> to vector<8x1xf32>
    %81 = vector.broadcast %80 : vector<8x1xf32> to vector<8x8xf32>
    %82 = arith.subf %78, %81 : vector<8x8xf32>
    %83 = math.exp %82 : vector<8x8xf32>
    %cst_44 = arith.constant dense<0.000000e+00> : vector<8xf32>
    %84 = vector.multi_reduction <add>, %83, %cst_44 [1] : vector<8x8xf32> to vector<8xf32>
    %85 = vector.shape_cast %84 : vector<8xf32> to vector<8x1xf32>
    %86 = tpu.reciprocal %85 {approx = true} : vector<8x1xf32> -> vector<8x1xf32>
    %87 = vector.broadcast %86 : vector<8x1xf32> to vector<8x8xf32>
    %88 = arith.mulf %83, %87 : vector<8x8xf32>
    %cst_45 = arith.constant dense<0.000000e+00> : vector<8x8xf32>
    %89 = tpu.matmul %88, %72, %cst_45 {dimension_numbers = #tpu.dot_dimension_numbers<[1], [0], [0], [1], [0, 0, 1, 1], [], []>} : vector<8x8xf32>, vector<8x8xf32>, vector<8x8xf32> -> vector<8x8xf32>
    %90 = vector.extract_strided_slice %7 {offsets = [16, 0], sizes = [8, 32], strides = [1, 1]} : vector<32x32xf32> to vector<8x32xf32>
    %cst_46 = arith.constant dense<0.000000e+00> : vector<8x32xf32>
    %91 = tpu.matmul %89, %90, %cst_46 {dimension_numbers = #tpu.dot_dimension_numbers<[1], [0], [0], [1], [0, 0, 1, 1], [], []>} : vector<8x8xf32>, vector<8x32xf32>, vector<8x32xf32> -> vector<8x32xf32>
    %92 = arith.addf %69, %91 : vector<8x32xf32>
    %93 = vector.extract_strided_slice %20 {offsets = [0, 24], sizes = [8, 8], strides = [1, 1]} : vector<16x96xf32> to vector<8x8xf32>
    %94 = vector.extract_strided_slice %20 {offsets = [0, 56], sizes = [8, 8], strides = [1, 1]} : vector<16x96xf32> to vector<8x8xf32>
    %95 = vector.extract_strided_slice %20 {offsets = [0, 88], sizes = [8, 8], strides = [1, 1]} : vector<16x96xf32> to vector<8x8xf32>
    %96 = tpu.transpose %94, [1, 0] : vector<8x8xf32> -> vector<8x8xf32>
    %cst_47 = arith.constant dense<0.000000e+00> : vector<8x8xf32>
    %97 = tpu.matmul %93, %96, %cst_47 {dimension_numbers = #tpu.dot_dimension_numbers<[1], [0], [0], [1], [0, 0, 1, 1], [], []>} : vector<8x8xf32>, vector<8x8xf32>, vector<8x8xf32> -> vector<8x8xf32>
    %cst_48 = arith.constant 0.353553385 : f32
    %98 = vector.broadcast %cst_48 : f32 to vector<8x8xf32>
    %99 = arith.mulf %97, %98 : vector<8x8xf32>
    %100 = vector.broadcast %22 : vector<1x8xf32> to vector<8x8xf32>
    %101 = arith.addf %99, %100 : vector<8x8xf32>
    %cst_49 = arith.constant dense<0xFF800000> : vector<8xf32>
    %102 = vector.multi_reduction <maximumf>, %101, %cst_49 [1] : vector<8x8xf32> to vector<8xf32>
    %103 = vector.shape_cast %102 : vector<8xf32> to vector<8x1xf32>
    %104 = vector.broadcast %103 : vector<8x1xf32> to vector<8x8xf32>
    %105 = arith.subf %101, %104 : vector<8x8xf32>
    %106 = math.exp %105 : vector<8x8xf32>
    %cst_50 = arith.constant dense<0.000000e+00> : vector<8xf32>
    %107 = vector.multi_reduction <add>, %106, %cst_50 [1] : vector<8x8xf32> to vector<8xf32>
    %108 = vector.shape_cast %107 : vector<8xf32> to vector<8x1xf32>
    %109 = tpu.reciprocal %108 {approx = true} : vector<8x1xf32> -> vector<8x1xf32>
    %110 = vector.broadcast %109 : vector<8x1xf32> to vector<8x8xf32>
    %111 = arith.mulf %106, %110 : vector<8x8xf32>
    %cst_51 = arith.constant dense<0.000000e+00> : vector<8x8xf32>
    %112 = tpu.matmul %111, %95, %cst_51 {dimension_numbers = #tpu.dot_dimension_numbers<[1], [0], [0], [1], [0, 0, 1, 1], [], []>} : vector<8x8xf32>, vector<8x8xf32>, vector<8x8xf32> -> vector<8x8xf32>
    %113 = vector.extract_strided_slice %7 {offsets = [24, 0], sizes = [8, 32], strides = [1, 1]} : vector<32x32xf32> to vector<8x32xf32>
    %cst_52 = arith.constant dense<0.000000e+00> : vector<8x32xf32>
    %114 = tpu.matmul %112, %113, %cst_52 {dimension_numbers = #tpu.dot_dimension_numbers<[1], [0], [0], [1], [0, 0, 1, 1], [], []>} : vector<8x8xf32>, vector<8x32xf32>, vector<8x32xf32> -> vector<8x32xf32>
    %115 = arith.addf %92, %114 : vector<8x32xf32>
    %116 = vector.extract_strided_slice %1 {offsets = [1, 0, 0], sizes = [1, 1, 8], strides = [1, 1, 1]} : vector<2x1x8xf32> to vector<1x1x8xf32>
    %117 = vector.shape_cast %116 : vector<1x1x8xf32> to vector<1x8xf32>
    %cst_53 = arith.constant 0.000000e+00 : f32
    %118 = vector.broadcast %cst_53 : f32 to vector<8x32xf32>
    %119 = vector.extract_strided_slice %20 {offsets = [8, 0], sizes = [8, 8], strides = [1, 1]} : vector<16x96xf32> to vector<8x8xf32>
    %120 = vector.extract_strided_slice %20 {offsets = [8, 32], sizes = [8, 8], strides = [1, 1]} : vector<16x96xf32> to vector<8x8xf32>
    %121 = vector.extract_strided_slice %20 {offsets = [8, 64], sizes = [8, 8], strides = [1, 1]} : vector<16x96xf32> to vector<8x8xf32>
    %122 = tpu.transpose %120, [1, 0] : vector<8x8xf32> -> vector<8x8xf32>
    %cst_54 = arith.constant dense<0.000000e+00> : vector<8x8xf32>
    %123 = tpu.matmul %119, %122, %cst_54 {dimension_numbers = #tpu.dot_dimension_numbers<[1], [0], [0], [1], [0, 0, 1, 1], [], []>} : vector<8x8xf32>, vector<8x8xf32>, vector<8x8xf32> -> vector<8x8xf32>
    %cst_55 = arith.constant 0.353553385 : f32
    %124 = vector.broadcast %cst_55 : f32 to vector<8x8xf32>
    %125 = arith.mulf %123, %124 : vector<8x8xf32>
    %126 = vector.broadcast %117 : vector<1x8xf32> to vector<8x8xf32>
    %127 = arith.addf %125, %126 : vector<8x8xf32>
    %cst_56 = arith.constant dense<0xFF800000> : vector<8xf32>
    %128 = vector.multi_reduction <maximumf>, %127, %cst_56 [1] : vector<8x8xf32> to vector<8xf32>
    %129 = vector.shape_cast %128 : vector<8xf32> to vector<8x1xf32>
    %130 = vector.broadcast %129 : vector<8x1xf32> to vector<8x8xf32>
    %131 = arith.subf %127, %130 : vector<8x8xf32>
    %132 = math.exp %131 : vector<8x8xf32>
    %cst_57 = arith.constant dense<0.000000e+00> : vector<8xf32>
    %133 = vector.multi_reduction <add>, %132, %cst_57 [1] : vector<8x8xf32> to vector<8xf32>
    %134 = vector.shape_cast %133 : vector<8xf32> to vector<8x1xf32>
    %135 = tpu.reciprocal %134 {approx = true} : vector<8x1xf32> -> vector<8x1xf32>
    %136 = vector.broadcast %135 : vector<8x1xf32> to vector<8x8xf32>
    %137 = arith.mulf %132, %136 : vector<8x8xf32>
    %cst_58 = arith.constant dense<0.000000e+00> : vector<8x8xf32>
    %138 = tpu.matmul %137, %121, %cst_58 {dimension_numbers = #tpu.dot_dimension_numbers<[1], [0], [0], [1], [0, 0, 1, 1], [], []>} : vector<8x8xf32>, vector<8x8xf32>, vector<8x8xf32> -> vector<8x8xf32>
    %139 = vector.extract_strided_slice %7 {offsets = [0, 0], sizes = [8, 32], strides = [1, 1]} : vector<32x32xf32> to vector<8x32xf32>
    %cst_59 = arith.constant dense<0.000000e+00> : vector<8x32xf32>
    %140 = tpu.matmul %138, %139, %cst_59 {dimension_numbers = #tpu.dot_dimension_numbers<[1], [0], [0], [1], [0, 0, 1, 1], [], []>} : vector<8x8xf32>, vector<8x32xf32>, vector<8x32xf32> -> vector<8x32xf32>
    %141 = arith.addf %118, %140 : vector<8x32xf32>
    %142 = vector.extract_strided_slice %20 {offsets = [8, 8], sizes = [8, 8], strides = [1, 1]} : vector<16x96xf32> to vector<8x8xf32>
    %143 = vector.extract_strided_slice %20 {offsets = [8, 40], sizes = [8, 8], strides = [1, 1]} : vector<16x96xf32> to vector<8x8xf32>
    %144 = vector.extract_strided_slice %20 {offsets = [8, 72], sizes = [8, 8], strides = [1, 1]} : vector<16x96xf32> to vector<8x8xf32>
    %145 = tpu.transpose %143, [1, 0] : vector<8x8xf32> -> vector<8x8xf32>
    %cst_60 = arith.constant dense<0.000000e+00> : vector<8x8xf32>
    %146 = tpu.matmul %142, %145, %cst_60 {dimension_numbers = #tpu.dot_dimension_numbers<[1], [0], [0], [1], [0, 0, 1, 1], [], []>} : vector<8x8xf32>, vector<8x8xf32>, vector<8x8xf32> -> vector<8x8xf32>
    %cst_61 = arith.constant 0.353553385 : f32
    %147 = vector.broadcast %cst_61 : f32 to vector<8x8xf32>
    %148 = arith.mulf %146, %147 : vector<8x8xf32>
    %149 = vector.broadcast %117 : vector<1x8xf32> to vector<8x8xf32>
    %150 = arith.addf %148, %149 : vector<8x8xf32>
    %cst_62 = arith.constant dense<0xFF800000> : vector<8xf32>
    %151 = vector.multi_reduction <maximumf>, %150, %cst_62 [1] : vector<8x8xf32> to vector<8xf32>
    %152 = vector.shape_cast %151 : vector<8xf32> to vector<8x1xf32>
    %153 = vector.broadcast %152 : vector<8x1xf32> to vector<8x8xf32>
    %154 = arith.subf %150, %153 : vector<8x8xf32>
    %155 = math.exp %154 : vector<8x8xf32>
    %cst_63 = arith.constant dense<0.000000e+00> : vector<8xf32>
    %156 = vector.multi_reduction <add>, %155, %cst_63 [1] : vector<8x8xf32> to vector<8xf32>
    %157 = vector.shape_cast %156 : vector<8xf32> to vector<8x1xf32>
    %158 = tpu.reciprocal %157 {approx = true} : vector<8x1xf32> -> vector<8x1xf32>
    %159 = vector.broadcast %158 : vector<8x1xf32> to vector<8x8xf32>
    %160 = arith.mulf %155, %159 : vector<8x8xf32>
    %cst_64 = arith.constant dense<0.000000e+00> : vector<8x8xf32>
    %161 = tpu.matmul %160, %144, %cst_64 {dimension_numbers = #tpu.dot_dimension_numbers<[1], [0], [0], [1], [0, 0, 1, 1], [], []>} : vector<8x8xf32>, vector<8x8xf32>, vector<8x8xf32> -> vector<8x8xf32>
    %162 = vector.extract_strided_slice %7 {offsets = [8, 0], sizes = [8, 32], strides = [1, 1]} : vector<32x32xf32> to vector<8x32xf32>
    %cst_65 = arith.constant dense<0.000000e+00> : vector<8x32xf32>
    %163 = tpu.matmul %161, %162, %cst_65 {dimension_numbers = #tpu.dot_dimension_numbers<[1], [0], [0], [1], [0, 0, 1, 1], [], []>} : vector<8x8xf32>, vector<8x32xf32>, vector<8x32xf32> -> vector<8x32xf32>
    %164 = arith.addf %141, %163 : vector<8x32xf32>
    %165 = vector.extract_strided_slice %20 {offsets = [8, 16], sizes = [8, 8], strides = [1, 1]} : vector<16x96xf32> to vector<8x8xf32>
    %166 = vector.extract_strided_slice %20 {offsets = [8, 48], sizes = [8, 8], strides = [1, 1]} : vector<16x96xf32> to vector<8x8xf32>
    %167 = vector.extract_strided_slice %20 {offsets = [8, 80], sizes = [8, 8], strides = [1, 1]} : vector<16x96xf32> to vector<8x8xf32>
    %168 = tpu.transpose %166, [1, 0] : vector<8x8xf32> -> vector<8x8xf32>
    %cst_66 = arith.constant dense<0.000000e+00> : vector<8x8xf32>
    %169 = tpu.matmul %165, %168, %cst_66 {dimension_numbers = #tpu.dot_dimension_numbers<[1], [0], [0], [1], [0, 0, 1, 1], [], []>} : vector<8x8xf32>, vector<8x8xf32>, vector<8x8xf32> -> vector<8x8xf32>
    %cst_67 = arith.constant 0.353553385 : f32
    %170 = vector.broadcast %cst_67 : f32 to vector<8x8xf32>
    %171 = arith.mulf %169, %170 : vector<8x8xf32>
    %172 = vector.broadcast %117 : vector<1x8xf32> to vector<8x8xf32>
    %173 = arith.addf %171, %172 : vector<8x8xf32>
    %cst_68 = arith.constant dense<0xFF800000> : vector<8xf32>
    %174 = vector.multi_reduction <maximumf>, %173, %cst_68 [1] : vector<8x8xf32> to vector<8xf32>
    %175 = vector.shape_cast %174 : vector<8xf32> to vector<8x1xf32>
    %176 = vector.broadcast %175 : vector<8x1xf32> to vector<8x8xf32>
    %177 = arith.subf %173, %176 : vector<8x8xf32>
    %178 = math.exp %177 : vector<8x8xf32>
    %cst_69 = arith.constant dense<0.000000e+00> : vector<8xf32>
    %179 = vector.multi_reduction <add>, %178, %cst_69 [1] : vector<8x8xf32> to vector<8xf32>
    %180 = vector.shape_cast %179 : vector<8xf32> to vector<8x1xf32>
    %181 = tpu.reciprocal %180 {approx = true} : vector<8x1xf32> -> vector<8x1xf32>
    %182 = vector.broadcast %181 : vector<8x1xf32> to vector<8x8xf32>
    %183 = arith.mulf %178, %182 : vector<8x8xf32>
    %cst_70 = arith.constant dense<0.000000e+00> : vector<8x8xf32>
    %184 = tpu.matmul %183, %167, %cst_70 {dimension_numbers = #tpu.dot_dimension_numbers<[1], [0], [0], [1], [0, 0, 1, 1], [], []>} : vector<8x8xf32>, vector<8x8xf32>, vector<8x8xf32> -> vector<8x8xf32>
    %185 = vector.extract_strided_slice %7 {offsets = [16, 0], sizes = [8, 32], strides = [1, 1]} : vector<32x32xf32> to vector<8x32xf32>
    %cst_71 = arith.constant dense<0.000000e+00> : vector<8x32xf32>
    %186 = tpu.matmul %184, %185, %cst_71 {dimension_numbers = #tpu.dot_dimension_numbers<[1], [0], [0], [1], [0, 0, 1, 1], [], []>} : vector<8x8xf32>, vector<8x32xf32>, vector<8x32xf32> -> vector<8x32xf32>
    %187 = arith.addf %164, %186 : vector<8x32xf32>
    %188 = vector.extract_strided_slice %20 {offsets = [8, 24], sizes = [8, 8], strides = [1, 1]} : vector<16x96xf32> to vector<8x8xf32>
    %189 = vector.extract_strided_slice %20 {offsets = [8, 56], sizes = [8, 8], strides = [1, 1]} : vector<16x96xf32> to vector<8x8xf32>
    %190 = vector.extract_strided_slice %20 {offsets = [8, 88], sizes = [8, 8], strides = [1, 1]} : vector<16x96xf32> to vector<8x8xf32>
    %191 = tpu.transpose %189, [1, 0] : vector<8x8xf32> -> vector<8x8xf32>
    %cst_72 = arith.constant dense<0.000000e+00> : vector<8x8xf32>
    %192 = tpu.matmul %188, %191, %cst_72 {dimension_numbers = #tpu.dot_dimension_numbers<[1], [0], [0], [1], [0, 0, 1, 1], [], []>} : vector<8x8xf32>, vector<8x8xf32>, vector<8x8xf32> -> vector<8x8xf32>
    %cst_73 = arith.constant 0.353553385 : f32
    %193 = vector.broadcast %cst_73 : f32 to vector<8x8xf32>
    %194 = arith.mulf %192, %193 : vector<8x8xf32>
    %195 = vector.broadcast %117 : vector<1x8xf32> to vector<8x8xf32>
    %196 = arith.addf %194, %195 : vector<8x8xf32>
    %cst_74 = arith.constant dense<0xFF800000> : vector<8xf32>
    %197 = vector.multi_reduction <maximumf>, %196, %cst_74 [1] : vector<8x8xf32> to vector<8xf32>
    %198 = vector.shape_cast %197 : vector<8xf32> to vector<8x1xf32>
    %199 = vector.broadcast %198 : vector<8x1xf32> to vector<8x8xf32>
    %200 = arith.subf %196, %199 : vector<8x8xf32>
    %201 = math.exp %200 : vector<8x8xf32>
    %cst_75 = arith.constant dense<0.000000e+00> : vector<8xf32>
    %202 = vector.multi_reduction <add>, %201, %cst_75 [1] : vector<8x8xf32> to vector<8xf32>
    %203 = vector.shape_cast %202 : vector<8xf32> to vector<8x1xf32>
    %204 = tpu.reciprocal %203 {approx = true} : vector<8x1xf32> -> vector<8x1xf32>
    %205 = vector.broadcast %204 : vector<8x1xf32> to vector<8x8xf32>
    %206 = arith.mulf %201, %205 : vector<8x8xf32>
    %cst_76 = arith.constant dense<0.000000e+00> : vector<8x8xf32>
    %207 = tpu.matmul %206, %190, %cst_76 {dimension_numbers = #tpu.dot_dimension_numbers<[1], [0], [0], [1], [0, 0, 1, 1], [], []>} : vector<8x8xf32>, vector<8x8xf32>, vector<8x8xf32> -> vector<8x8xf32>
    %208 = vector.extract_strided_slice %7 {offsets = [24, 0], sizes = [8, 32], strides = [1, 1]} : vector<32x32xf32> to vector<8x32xf32>
    %cst_77 = arith.constant dense<0.000000e+00> : vector<8x32xf32>
    %209 = tpu.matmul %207, %208, %cst_77 {dimension_numbers = #tpu.dot_dimension_numbers<[1], [0], [0], [1], [0, 0, 1, 1], [], []>} : vector<8x8xf32>, vector<8x32xf32>, vector<8x32xf32> -> vector<8x32xf32>
    %210 = arith.addf %187, %209 : vector<8x32xf32>
    %211 = tpu.concatenate %115, %210 in 0 : vector<8x32xf32>, vector<8x32xf32> -> vector<16x32xf32>
    %212 = vector.broadcast %9 : vector<1x32xf32> to vector<16x32xf32>
    %213 = arith.addf %211, %212 : vector<16x32xf32>
    %214 = arith.addf %0, %213 : vector<16x32xf32>
    %c0_78 = arith.constant 0 : index
    %c0_79 = arith.constant 0 : index
    %c0_80 = arith.constant 0 : index
    %215 = vector.load %arg6[%c0_78, %c0_79, %c0_80] : memref<2x1x32xf32, #tpu.memory_space<vmem>>, vector<1x1x32xf32>
    %216 = vector.shape_cast %215 : vector<1x1x32xf32> to vector<1x32xf32>
    %c0_81 = arith.constant 0 : index
    %c0_82 = arith.constant 0 : index
    %c0_83 = arith.constant 0 : index
    %217 = vector.load %arg7[%c0_81, %c0_82, %c0_83] : memref<2x1x32xf32, #tpu.memory_space<vmem>>, vector<1x1x32xf32>
    %218 = vector.shape_cast %217 : vector<1x1x32xf32> to vector<1x32xf32>
    %cst_84 = arith.constant dense<0.000000e+00> : vector<16xf32>
    %219 = vector.multi_reduction <add>, %214, %cst_84 [1] : vector<16x32xf32> to vector<16xf32>
    %220 = vector.shape_cast %219 : vector<16xf32> to vector<16x1xf32>
    %cst_85 = arith.constant 3.200000e+01 : f32
    %221 = vector.broadcast %cst_85 : f32 to vector<16x1xf32>
    %222 = arith.divf %220, %221 : vector<16x1xf32>
    %223 = vector.broadcast %222 : vector<16x1xf32> to vector<16x32xf32>
    %224 = arith.subf %214, %223 : vector<16x32xf32>
    %225 = arith.mulf %224, %224 : vector<16x32xf32>
    %cst_86 = arith.constant dense<0.000000e+00> : vector<16xf32>
    %226 = vector.multi_reduction <add>, %225, %cst_86 [1] : vector<16x32xf32> to vector<16xf32>
    %227 = vector.shape_cast %226 : vector<16xf32> to vector<16x1xf32>
    %cst_87 = arith.constant 3.200000e+01 : f32
    %228 = vector.broadcast %cst_87 : f32 to vector<16x1xf32>
    %229 = arith.divf %227, %228 : vector<16x1xf32>
    %230 = vector.broadcast %222 : vector<16x1xf32> to vector<16x32xf32>
    %231 = arith.subf %214, %230 : vector<16x32xf32>
    %cst_88 = arith.constant 9.99999996E-13 : f32
    %232 = vector.broadcast %cst_88 : f32 to vector<16x1xf32>
    %233 = arith.addf %229, %232 : vector<16x1xf32>
    %234 = math.rsqrt %233 : vector<16x1xf32>
    %235 = vector.broadcast %234 : vector<16x1xf32> to vector<16x32xf32>
    %236 = arith.mulf %231, %235 : vector<16x32xf32>
    %237 = vector.broadcast %216 : vector<1x32xf32> to vector<16x32xf32>
    %238 = arith.mulf %236, %237 : vector<16x32xf32>
    %239 = vector.broadcast %218 : vector<1x32xf32> to vector<16x32xf32>
    %240 = arith.addf %238, %239 : vector<16x32xf32>
    %cst_89 = arith.constant dense<0.000000e+00> : vector<16x64xf32>
    %241 = tpu.matmul %240, %11, %cst_89 {dimension_numbers = #tpu.dot_dimension_numbers<[1], [0], [0], [1], [0, 0, 1, 1], [], []>} : vector<16x32xf32>, vector<32x64xf32>, vector<16x64xf32> -> vector<16x64xf32>
    %242 = vector.broadcast %13 : vector<1x64xf32> to vector<16x64xf32>
    %243 = arith.addf %241, %242 : vector<16x64xf32>
    %244 = arith.mulf %243, %243 : vector<16x64xf32>
    %245 = arith.mulf %243, %244 : vector<16x64xf32>
    %cst_90 = arith.constant 4.471500e-02 : f32
    %246 = vector.broadcast %cst_90 : f32 to vector<16x64xf32>
    %247 = arith.mulf %246, %245 : vector<16x64xf32>
    %248 = arith.addf %243, %247 : vector<16x64xf32>
    %cst_91 = arith.constant 0.797884583 : f32
    %249 = vector.broadcast %cst_91 : f32 to vector<16x64xf32>
    %250 = arith.mulf %249, %248 : vector<16x64xf32>
    %251 = math.tanh %250 : vector<16x64xf32>
    %cst_92 = arith.constant 1.000000e+00 : f32
    %252 = vector.broadcast %cst_92 : f32 to vector<16x64xf32>
    %253 = arith.addf %252, %251 : vector<16x64xf32>
    %cst_93 = arith.constant 5.000000e-01 : f32
    %254 = vector.broadcast %cst_93 : f32 to vector<16x64xf32>
    %255 = arith.mulf %254, %253 : vector<16x64xf32>
    %256 = arith.mulf %243, %255 : vector<16x64xf32>
    %cst_94 = arith.constant dense<0.000000e+00> : vector<16x32xf32>
    %257 = tpu.matmul %256, %15, %cst_94 {dimension_numbers = #tpu.dot_dimension_numbers<[1], [0], [0], [1], [0, 0, 1, 1], [], []>} : vector<16x64xf32>, vector<64x32xf32>, vector<16x32xf32> -> vector<16x32xf32>
    %258 = vector.broadcast %17 : vector<1x32xf32> to vector<16x32xf32>
    %259 = arith.addf %257, %258 : vector<16x32xf32>
    %260 = arith.addf %240, %259 : vector<16x32xf32>
    %c0_95 = arith.constant 0 : index
    %c0_96 = arith.constant 0 : index
    %c0_97 = arith.constant 0 : index
    %261 = vector.load %arg12[%c0_95, %c0_96, %c0_97] : memref<2x1x32xf32, #tpu.memory_space<vmem>>, vector<1x1x32xf32>
    %262 = vector.shape_cast %261 : vector<1x1x32xf32> to vector<1x32xf32>
    %c0_98 = arith.constant 0 : index
    %c0_99 = arith.constant 0 : index
    %c0_100 = arith.constant 0 : index
    %263 = vector.load %arg13[%c0_98, %c0_99, %c0_100] : memref<2x1x32xf32, #tpu.memory_space<vmem>>, vector<1x1x32xf32>
    %264 = vector.shape_cast %263 : vector<1x1x32xf32> to vector<1x32xf32>
    %cst_101 = arith.constant dense<0.000000e+00> : vector<16xf32>
    %265 = vector.multi_reduction <add>, %260, %cst_101 [1] : vector<16x32xf32> to vector<16xf32>
    %266 = vector.shape_cast %265 : vector<16xf32> to vector<16x1xf32>
    %cst_102 = arith.constant 3.200000e+01 : f32
    %267 = vector.broadcast %cst_102 : f32 to vector<16x1xf32>
    %268 = arith.divf %266, %267 : vector<16x1xf32>
    %269 = vector.broadcast %268 : vector<16x1xf32> to vector<16x32xf32>
    %270 = arith.subf %260, %269 : vector<16x32xf32>
    %271 = arith.mulf %270, %270 : vector<16x32xf32>
    %cst_103 = arith.constant dense<0.000000e+00> : vector<16xf32>
    %272 = vector.multi_reduction <add>, %271, %cst_103 [1] : vector<16x32xf32> to vector<16xf32>
    %273 = vector.shape_cast %272 : vector<16xf32> to vector<16x1xf32>
    %cst_104 = arith.constant 3.200000e+01 : f32
    %274 = vector.broadcast %cst_104 : f32 to vector<16x1xf32>
    %275 = arith.divf %273, %274 : vector<16x1xf32>
    %276 = vector.broadcast %268 : vector<16x1xf32> to vector<16x32xf32>
    %277 = arith.subf %260, %276 : vector<16x32xf32>
    %cst_105 = arith.constant 9.99999996E-13 : f32
    %278 = vector.broadcast %cst_105 : f32 to vector<16x1xf32>
    %279 = arith.addf %275, %278 : vector<16x1xf32>
    %280 = math.rsqrt %279 : vector<16x1xf32>
    %281 = vector.broadcast %280 : vector<16x1xf32> to vector<16x32xf32>
    %282 = arith.mulf %277, %281 : vector<16x32xf32>
    %283 = vector.broadcast %262 : vector<1x32xf32> to vector<16x32xf32>
    %284 = arith.mulf %282, %283 : vector<16x32xf32>
    %285 = vector.broadcast %264 : vector<1x32xf32> to vector<16x32xf32>
    %286 = arith.addf %284, %285 : vector<16x32xf32>
    %c1 = arith.constant 1 : index
    %c0_106 = arith.constant 0 : index
    %c0_107 = arith.constant 0 : index
    %287 = vector.load %arg2[%c1, %c0_106, %c0_107] : memref<2x32x96xf32, #tpu.memory_space<vmem>>, vector<1x32x96xf32>
    %288 = vector.shape_cast %287 : vector<1x32x96xf32> to vector<32x96xf32>
    %c1_108 = arith.constant 1 : index
    %c0_109 = arith.constant 0 : index
    %c0_110 = arith.constant 0 : index
    %289 = vector.load %arg3[%c1_108, %c0_109, %c0_110] : memref<2x1x96xf32, #tpu.memory_space<vmem>>, vector<1x1x96xf32>
    %290 = vector.shape_cast %289 : vector<1x1x96xf32> to vector<1x96xf32>
    %c1_111 = arith.constant 1 : index
    %c0_112 = arith.constant 0 : index
    %c0_113 = arith.constant 0 : index
    %291 = vector.load %arg4[%c1_111, %c0_112, %c0_113] : memref<2x32x32xf32, #tpu.memory_space<vmem>>, vector<1x32x32xf32>
    %292 = vector.shape_cast %291 : vector<1x32x32xf32> to vector<32x32xf32>
    %c1_114 = arith.constant 1 : index
    %c0_115 = arith.constant 0 : index
    %c0_116 = arith.constant 0 : index
    %293 = vector.load %arg5[%c1_114, %c0_115, %c0_116] : memref<2x1x32xf32, #tpu.memory_space<vmem>>, vector<1x1x32xf32>
    %294 = vector.shape_cast %293 : vector<1x1x32xf32> to vector<1x32xf32>
    %c1_117 = arith.constant 1 : index
    %c0_118 = arith.constant 0 : index
    %c0_119 = arith.constant 0 : index
    %295 = vector.load %arg8[%c1_117, %c0_118, %c0_119] : memref<2x32x64xf32, #tpu.memory_space<vmem>>, vector<1x32x64xf32>
    %296 = vector.shape_cast %295 : vector<1x32x64xf32> to vector<32x64xf32>
    %c1_120 = arith.constant 1 : index
    %c0_121 = arith.constant 0 : index
    %c0_122 = arith.constant 0 : index
    %297 = vector.load %arg9[%c1_120, %c0_121, %c0_122] : memref<2x1x64xf32, #tpu.memory_space<vmem>>, vector<1x1x64xf32>
    %298 = vector.shape_cast %297 : vector<1x1x64xf32> to vector<1x64xf32>
    %c1_123 = arith.constant 1 : index
    %c0_124 = arith.constant 0 : index
    %c0_125 = arith.constant 0 : index
    %299 = vector.load %arg10[%c1_123, %c0_124, %c0_125] : memref<2x64x32xf32, #tpu.memory_space<vmem>>, vector<1x64x32xf32>
    %300 = vector.shape_cast %299 : vector<1x64x32xf32> to vector<64x32xf32>
    %c1_126 = arith.constant 1 : index
    %c0_127 = arith.constant 0 : index
    %c0_128 = arith.constant 0 : index
    %301 = vector.load %arg11[%c1_126, %c0_127, %c0_128] : memref<2x1x32xf32, #tpu.memory_space<vmem>>, vector<1x1x32xf32>
    %302 = vector.shape_cast %301 : vector<1x1x32xf32> to vector<1x32xf32>
    %cst_129 = arith.constant dense<0.000000e+00> : vector<16x96xf32>
    %303 = tpu.matmul %286, %288, %cst_129 {dimension_numbers = #tpu.dot_dimension_numbers<[1], [0], [0], [1], [0, 0, 1, 1], [], []>} : vector<16x32xf32>, vector<32x96xf32>, vector<16x96xf32> -> vector<16x96xf32>
    %304 = vector.broadcast %290 : vector<1x96xf32> to vector<16x96xf32>
    %305 = arith.addf %303, %304 : vector<16x96xf32>
    %306 = vector.extract_strided_slice %1 {offsets = [0, 0, 0], sizes = [1, 1, 8], strides = [1, 1, 1]} : vector<2x1x8xf32> to vector<1x1x8xf32>
    %307 = vector.shape_cast %306 : vector<1x1x8xf32> to vector<1x8xf32>
    %cst_130 = arith.constant 0.000000e+00 : f32
    %308 = vector.broadcast %cst_130 : f32 to vector<8x32xf32>
    %309 = vector.extract_strided_slice %305 {offsets = [0, 0], sizes = [8, 8], strides = [1, 1]} : vector<16x96xf32> to vector<8x8xf32>
    %310 = vector.extract_strided_slice %305 {offsets = [0, 32], sizes = [8, 8], strides = [1, 1]} : vector<16x96xf32> to vector<8x8xf32>
    %311 = vector.extract_strided_slice %305 {offsets = [0, 64], sizes = [8, 8], strides = [1, 1]} : vector<16x96xf32> to vector<8x8xf32>
    %312 = tpu.transpose %310, [1, 0] : vector<8x8xf32> -> vector<8x8xf32>
    %cst_131 = arith.constant dense<0.000000e+00> : vector<8x8xf32>
    %313 = tpu.matmul %309, %312, %cst_131 {dimension_numbers = #tpu.dot_dimension_numbers<[1], [0], [0], [1], [0, 0, 1, 1], [], []>} : vector<8x8xf32>, vector<8x8xf32>, vector<8x8xf32> -> vector<8x8xf32>
    %cst_132 = arith.constant 0.353553385 : f32
    %314 = vector.broadcast %cst_132 : f32 to vector<8x8xf32>
    %315 = arith.mulf %313, %314 : vector<8x8xf32>
    %316 = vector.broadcast %307 : vector<1x8xf32> to vector<8x8xf32>
    %317 = arith.addf %315, %316 : vector<8x8xf32>
    %cst_133 = arith.constant dense<0xFF800000> : vector<8xf32>
    %318 = vector.multi_reduction <maximumf>, %317, %cst_133 [1] : vector<8x8xf32> to vector<8xf32>
    %319 = vector.shape_cast %318 : vector<8xf32> to vector<8x1xf32>
    %320 = vector.broadcast %319 : vector<8x1xf32> to vector<8x8xf32>
    %321 = arith.subf %317, %320 : vector<8x8xf32>
    %322 = math.exp %321 : vector<8x8xf32>
    %cst_134 = arith.constant dense<0.000000e+00> : vector<8xf32>
    %323 = vector.multi_reduction <add>, %322, %cst_134 [1] : vector<8x8xf32> to vector<8xf32>
    %324 = vector.shape_cast %323 : vector<8xf32> to vector<8x1xf32>
    %325 = tpu.reciprocal %324 {approx = true} : vector<8x1xf32> -> vector<8x1xf32>
    %326 = vector.broadcast %325 : vector<8x1xf32> to vector<8x8xf32>
    %327 = arith.mulf %322, %326 : vector<8x8xf32>
    %cst_135 = arith.constant dense<0.000000e+00> : vector<8x8xf32>
    %328 = tpu.matmul %327, %311, %cst_135 {dimension_numbers = #tpu.dot_dimension_numbers<[1], [0], [0], [1], [0, 0, 1, 1], [], []>} : vector<8x8xf32>, vector<8x8xf32>, vector<8x8xf32> -> vector<8x8xf32>
    %329 = vector.extract_strided_slice %292 {offsets = [0, 0], sizes = [8, 32], strides = [1, 1]} : vector<32x32xf32> to vector<8x32xf32>
    %cst_136 = arith.constant dense<0.000000e+00> : vector<8x32xf32>
    %330 = tpu.matmul %328, %329, %cst_136 {dimension_numbers = #tpu.dot_dimension_numbers<[1], [0], [0], [1], [0, 0, 1, 1], [], []>} : vector<8x8xf32>, vector<8x32xf32>, vector<8x32xf32> -> vector<8x32xf32>
    %331 = arith.addf %308, %330 : vector<8x32xf32>
    %332 = vector.extract_strided_slice %305 {offsets = [0, 8], sizes = [8, 8], strides = [1, 1]} : vector<16x96xf32> to vector<8x8xf32>
    %333 = vector.extract_strided_slice %305 {offsets = [0, 40], sizes = [8, 8], strides = [1, 1]} : vector<16x96xf32> to vector<8x8xf32>
    %334 = vector.extract_strided_slice %305 {offsets = [0, 72], sizes = [8, 8], strides = [1, 1]} : vector<16x96xf32> to vector<8x8xf32>
    %335 = tpu.transpose %333, [1, 0] : vector<8x8xf32> -> vector<8x8xf32>
    %cst_137 = arith.constant dense<0.000000e+00> : vector<8x8xf32>
    %336 = tpu.matmul %332, %335, %cst_137 {dimension_numbers = #tpu.dot_dimension_numbers<[1], [0], [0], [1], [0, 0, 1, 1], [], []>} : vector<8x8xf32>, vector<8x8xf32>, vector<8x8xf32> -> vector<8x8xf32>
    %cst_138 = arith.constant 0.353553385 : f32
    %337 = vector.broadcast %cst_138 : f32 to vector<8x8xf32>
    %338 = arith.mulf %336, %337 : vector<8x8xf32>
    %339 = vector.broadcast %307 : vector<1x8xf32> to vector<8x8xf32>
    %340 = arith.addf %338, %339 : vector<8x8xf32>
    %cst_139 = arith.constant dense<0xFF800000> : vector<8xf32>
    %341 = vector.multi_reduction <maximumf>, %340, %cst_139 [1] : vector<8x8xf32> to vector<8xf32>
    %342 = vector.shape_cast %341 : vector<8xf32> to vector<8x1xf32>
    %343 = vector.broadcast %342 : vector<8x1xf32> to vector<8x8xf32>
    %344 = arith.subf %340, %343 : vector<8x8xf32>
    %345 = math.exp %344 : vector<8x8xf32>
    %cst_140 = arith.constant dense<0.000000e+00> : vector<8xf32>
    %346 = vector.multi_reduction <add>, %345, %cst_140 [1] : vector<8x8xf32> to vector<8xf32>
    %347 = vector.shape_cast %346 : vector<8xf32> to vector<8x1xf32>
    %348 = tpu.reciprocal %347 {approx = true} : vector<8x1xf32> -> vector<8x1xf32>
    %349 = vector.broadcast %348 : vector<8x1xf32> to vector<8x8xf32>
    %350 = arith.mulf %345, %349 : vector<8x8xf32>
    %cst_141 = arith.constant dense<0.000000e+00> : vector<8x8xf32>
    %351 = tpu.matmul %350, %334, %cst_141 {dimension_numbers = #tpu.dot_dimension_numbers<[1], [0], [0], [1], [0, 0, 1, 1], [], []>} : vector<8x8xf32>, vector<8x8xf32>, vector<8x8xf32> -> vector<8x8xf32>
    %352 = vector.extract_strided_slice %292 {offsets = [8, 0], sizes = [8, 32], strides = [1, 1]} : vector<32x32xf32> to vector<8x32xf32>
    %cst_142 = arith.constant dense<0.000000e+00> : vector<8x32xf32>
    %353 = tpu.matmul %351, %352, %cst_142 {dimension_numbers = #tpu.dot_dimension_numbers<[1], [0], [0], [1], [0, 0, 1, 1], [], []>} : vector<8x8xf32>, vector<8x32xf32>, vector<8x32xf32> -> vector<8x32xf32>
    %354 = arith.addf %331, %353 : vector<8x32xf32>
    %355 = vector.extract_strided_slice %305 {offsets = [0, 16], sizes = [8, 8], strides = [1, 1]} : vector<16x96xf32> to vector<8x8xf32>
    %356 = vector.extract_strided_slice %305 {offsets = [0, 48], sizes = [8, 8], strides = [1, 1]} : vector<16x96xf32> to vector<8x8xf32>
    %357 = vector.extract_strided_slice %305 {offsets = [0, 80], sizes = [8, 8], strides = [1, 1]} : vector<16x96xf32> to vector<8x8xf32>
    %358 = tpu.transpose %356, [1, 0] : vector<8x8xf32> -> vector<8x8xf32>
    %cst_143 = arith.constant dense<0.000000e+00> : vector<8x8xf32>
    %359 = tpu.matmul %355, %358, %cst_143 {dimension_numbers = #tpu.dot_dimension_numbers<[1], [0], [0], [1], [0, 0, 1, 1], [], []>} : vector<8x8xf32>, vector<8x8xf32>, vector<8x8xf32> -> vector<8x8xf32>
    %cst_144 = arith.constant 0.353553385 : f32
    %360 = vector.broadcast %cst_144 : f32 to vector<8x8xf32>
    %361 = arith.mulf %359, %360 : vector<8x8xf32>
    %362 = vector.broadcast %307 : vector<1x8xf32> to vector<8x8xf32>
    %363 = arith.addf %361, %362 : vector<8x8xf32>
    %cst_145 = arith.constant dense<0xFF800000> : vector<8xf32>
    %364 = vector.multi_reduction <maximumf>, %363, %cst_145 [1] : vector<8x8xf32> to vector<8xf32>
    %365 = vector.shape_cast %364 : vector<8xf32> to vector<8x1xf32>
    %366 = vector.broadcast %365 : vector<8x1xf32> to vector<8x8xf32>
    %367 = arith.subf %363, %366 : vector<8x8xf32>
    %368 = math.exp %367 : vector<8x8xf32>
    %cst_146 = arith.constant dense<0.000000e+00> : vector<8xf32>
    %369 = vector.multi_reduction <add>, %368, %cst_146 [1] : vector<8x8xf32> to vector<8xf32>
    %370 = vector.shape_cast %369 : vector<8xf32> to vector<8x1xf32>
    %371 = tpu.reciprocal %370 {approx = true} : vector<8x1xf32> -> vector<8x1xf32>
    %372 = vector.broadcast %371 : vector<8x1xf32> to vector<8x8xf32>
    %373 = arith.mulf %368, %372 : vector<8x8xf32>
    %cst_147 = arith.constant dense<0.000000e+00> : vector<8x8xf32>
    %374 = tpu.matmul %373, %357, %cst_147 {dimension_numbers = #tpu.dot_dimension_numbers<[1], [0], [0], [1], [0, 0, 1, 1], [], []>} : vector<8x8xf32>, vector<8x8xf32>, vector<8x8xf32> -> vector<8x8xf32>
    %375 = vector.extract_strided_slice %292 {offsets = [16, 0], sizes = [8, 32], strides = [1, 1]} : vector<32x32xf32> to vector<8x32xf32>
    %cst_148 = arith.constant dense<0.000000e+00> : vector<8x32xf32>
    %376 = tpu.matmul %374, %375, %cst_148 {dimension_numbers = #tpu.dot_dimension_numbers<[1], [0], [0], [1], [0, 0, 1, 1], [], []>} : vector<8x8xf32>, vector<8x32xf32>, vector<8x32xf32> -> vector<8x32xf32>
    %377 = arith.addf %354, %376 : vector<8x32xf32>
    %378 = vector.extract_strided_slice %305 {offsets = [0, 24], sizes = [8, 8], strides = [1, 1]} : vector<16x96xf32> to vector<8x8xf32>
    %379 = vector.extract_strided_slice %305 {offsets = [0, 56], sizes = [8, 8], strides = [1, 1]} : vector<16x96xf32> to vector<8x8xf32>
    %380 = vector.extract_strided_slice %305 {offsets = [0, 88], sizes = [8, 8], strides = [1, 1]} : vector<16x96xf32> to vector<8x8xf32>
    %381 = tpu.transpose %379, [1, 0] : vector<8x8xf32> -> vector<8x8xf32>
    %cst_149 = arith.constant dense<0.000000e+00> : vector<8x8xf32>
    %382 = tpu.matmul %378, %381, %cst_149 {dimension_numbers = #tpu.dot_dimension_numbers<[1], [0], [0], [1], [0, 0, 1, 1], [], []>} : vector<8x8xf32>, vector<8x8xf32>, vector<8x8xf32> -> vector<8x8xf32>
    %cst_150 = arith.constant 0.353553385 : f32
    %383 = vector.broadcast %cst_150 : f32 to vector<8x8xf32>
    %384 = arith.mulf %382, %383 : vector<8x8xf32>
    %385 = vector.broadcast %307 : vector<1x8xf32> to vector<8x8xf32>
    %386 = arith.addf %384, %385 : vector<8x8xf32>
    %cst_151 = arith.constant dense<0xFF800000> : vector<8xf32>
    %387 = vector.multi_reduction <maximumf>, %386, %cst_151 [1] : vector<8x8xf32> to vector<8xf32>
    %388 = vector.shape_cast %387 : vector<8xf32> to vector<8x1xf32>
    %389 = vector.broadcast %388 : vector<8x1xf32> to vector<8x8xf32>
    %390 = arith.subf %386, %389 : vector<8x8xf32>
    %391 = math.exp %390 : vector<8x8xf32>
    %cst_152 = arith.constant dense<0.000000e+00> : vector<8xf32>
    %392 = vector.multi_reduction <add>, %391, %cst_152 [1] : vector<8x8xf32> to vector<8xf32>
    %393 = vector.shape_cast %392 : vector<8xf32> to vector<8x1xf32>
    %394 = tpu.reciprocal %393 {approx = true} : vector<8x1xf32> -> vector<8x1xf32>
    %395 = vector.broadcast %394 : vector<8x1xf32> to vector<8x8xf32>
    %396 = arith.mulf %391, %395 : vector<8x8xf32>
    %cst_153 = arith.constant dense<0.000000e+00> : vector<8x8xf32>
    %397 = tpu.matmul %396, %380, %cst_153 {dimension_numbers = #tpu.dot_dimension_numbers<[1], [0], [0], [1], [0, 0, 1, 1], [], []>} : vector<8x8xf32>, vector<8x8xf32>, vector<8x8xf32> -> vector<8x8xf32>
    %398 = vector.extract_strided_slice %292 {offsets = [24, 0], sizes = [8, 32], strides = [1, 1]} : vector<32x32xf32> to vector<8x32xf32>
    %cst_154 = arith.constant dense<0.000000e+00> : vector<8x32xf32>
    %399 = tpu.matmul %397, %398, %cst_154 {dimension_numbers = #tpu.dot_dimension_numbers<[1], [0], [0], [1], [0, 0, 1, 1], [], []>} : vector<8x8xf32>, vector<8x32xf32>, vector<8x32xf32> -> vector<8x32xf32>
    %400 = arith.addf %377, %399 : vector<8x32xf32>
    %401 = vector.extract_strided_slice %1 {offsets = [1, 0, 0], sizes = [1, 1, 8], strides = [1, 1, 1]} : vector<2x1x8xf32> to vector<1x1x8xf32>
    %402 = vector.shape_cast %401 : vector<1x1x8xf32> to vector<1x8xf32>
    %cst_155 = arith.constant 0.000000e+00 : f32
    %403 = vector.broadcast %cst_155 : f32 to vector<8x32xf32>
    %404 = vector.extract_strided_slice %305 {offsets = [8, 0], sizes = [8, 8], strides = [1, 1]} : vector<16x96xf32> to vector<8x8xf32>
    %405 = vector.extract_strided_slice %305 {offsets = [8, 32], sizes = [8, 8], strides = [1, 1]} : vector<16x96xf32> to vector<8x8xf32>
    %406 = vector.extract_strided_slice %305 {offsets = [8, 64], sizes = [8, 8], strides = [1, 1]} : vector<16x96xf32> to vector<8x8xf32>
    %407 = tpu.transpose %405, [1, 0] : vector<8x8xf32> -> vector<8x8xf32>
    %cst_156 = arith.constant dense<0.000000e+00> : vector<8x8xf32>
    %408 = tpu.matmul %404, %407, %cst_156 {dimension_numbers = #tpu.dot_dimension_numbers<[1], [0], [0], [1], [0, 0, 1, 1], [], []>} : vector<8x8xf32>, vector<8x8xf32>, vector<8x8xf32> -> vector<8x8xf32>
    %cst_157 = arith.constant 0.353553385 : f32
    %409 = vector.broadcast %cst_157 : f32 to vector<8x8xf32>
    %410 = arith.mulf %408, %409 : vector<8x8xf32>
    %411 = vector.broadcast %402 : vector<1x8xf32> to vector<8x8xf32>
    %412 = arith.addf %410, %411 : vector<8x8xf32>
    %cst_158 = arith.constant dense<0xFF800000> : vector<8xf32>
    %413 = vector.multi_reduction <maximumf>, %412, %cst_158 [1] : vector<8x8xf32> to vector<8xf32>
    %414 = vector.shape_cast %413 : vector<8xf32> to vector<8x1xf32>
    %415 = vector.broadcast %414 : vector<8x1xf32> to vector<8x8xf32>
    %416 = arith.subf %412, %415 : vector<8x8xf32>
    %417 = math.exp %416 : vector<8x8xf32>
    %cst_159 = arith.constant dense<0.000000e+00> : vector<8xf32>
    %418 = vector.multi_reduction <add>, %417, %cst_159 [1] : vector<8x8xf32> to vector<8xf32>
    %419 = vector.shape_cast %418 : vector<8xf32> to vector<8x1xf32>
    %420 = tpu.reciprocal %419 {approx = true} : vector<8x1xf32> -> vector<8x1xf32>
    %421 = vector.broadcast %420 : vector<8x1xf32> to vector<8x8xf32>
    %422 = arith.mulf %417, %421 : vector<8x8xf32>
    %cst_160 = arith.constant dense<0.000000e+00> : vector<8x8xf32>
    %423 = tpu.matmul %422, %406, %cst_160 {dimension_numbers = #tpu.dot_dimension_numbers<[1], [0], [0], [1], [0, 0, 1, 1], [], []>} : vector<8x8xf32>, vector<8x8xf32>, vector<8x8xf32> -> vector<8x8xf32>
    %424 = vector.extract_strided_slice %292 {offsets = [0, 0], sizes = [8, 32], strides = [1, 1]} : vector<32x32xf32> to vector<8x32xf32>
    %cst_161 = arith.constant dense<0.000000e+00> : vector<8x32xf32>
    %425 = tpu.matmul %423, %424, %cst_161 {dimension_numbers = #tpu.dot_dimension_numbers<[1], [0], [0], [1], [0, 0, 1, 1], [], []>} : vector<8x8xf32>, vector<8x32xf32>, vector<8x32xf32> -> vector<8x32xf32>
    %426 = arith.addf %403, %425 : vector<8x32xf32>
    %427 = vector.extract_strided_slice %305 {offsets = [8, 8], sizes = [8, 8], strides = [1, 1]} : vector<16x96xf32> to vector<8x8xf32>
    %428 = vector.extract_strided_slice %305 {offsets = [8, 40], sizes = [8, 8], strides = [1, 1]} : vector<16x96xf32> to vector<8x8xf32>
    %429 = vector.extract_strided_slice %305 {offsets = [8, 72], sizes = [8, 8], strides = [1, 1]} : vector<16x96xf32> to vector<8x8xf32>
    %430 = tpu.transpose %428, [1, 0] : vector<8x8xf32> -> vector<8x8xf32>
    %cst_162 = arith.constant dense<0.000000e+00> : vector<8x8xf32>
    %431 = tpu.matmul %427, %430, %cst_162 {dimension_numbers = #tpu.dot_dimension_numbers<[1], [0], [0], [1], [0, 0, 1, 1], [], []>} : vector<8x8xf32>, vector<8x8xf32>, vector<8x8xf32> -> vector<8x8xf32>
    %cst_163 = arith.constant 0.353553385 : f32
    %432 = vector.broadcast %cst_163 : f32 to vector<8x8xf32>
    %433 = arith.mulf %431, %432 : vector<8x8xf32>
    %434 = vector.broadcast %402 : vector<1x8xf32> to vector<8x8xf32>
    %435 = arith.addf %433, %434 : vector<8x8xf32>
    %cst_164 = arith.constant dense<0xFF800000> : vector<8xf32>
    %436 = vector.multi_reduction <maximumf>, %435, %cst_164 [1] : vector<8x8xf32> to vector<8xf32>
    %437 = vector.shape_cast %436 : vector<8xf32> to vector<8x1xf32>
    %438 = vector.broadcast %437 : vector<8x1xf32> to vector<8x8xf32>
    %439 = arith.subf %435, %438 : vector<8x8xf32>
    %440 = math.exp %439 : vector<8x8xf32>
    %cst_165 = arith.constant dense<0.000000e+00> : vector<8xf32>
    %441 = vector.multi_reduction <add>, %440, %cst_165 [1] : vector<8x8xf32> to vector<8xf32>
    %442 = vector.shape_cast %441 : vector<8xf32> to vector<8x1xf32>
    %443 = tpu.reciprocal %442 {approx = true} : vector<8x1xf32> -> vector<8x1xf32>
    %444 = vector.broadcast %443 : vector<8x1xf32> to vector<8x8xf32>
    %445 = arith.mulf %440, %444 : vector<8x8xf32>
    %cst_166 = arith.constant dense<0.000000e+00> : vector<8x8xf32>
    %446 = tpu.matmul %445, %429, %cst_166 {dimension_numbers = #tpu.dot_dimension_numbers<[1], [0], [0], [1], [0, 0, 1, 1], [], []>} : vector<8x8xf32>, vector<8x8xf32>, vector<8x8xf32> -> vector<8x8xf32>
    %447 = vector.extract_strided_slice %292 {offsets = [8, 0], sizes = [8, 32], strides = [1, 1]} : vector<32x32xf32> to vector<8x32xf32>
    %cst_167 = arith.constant dense<0.000000e+00> : vector<8x32xf32>
    %448 = tpu.matmul %446, %447, %cst_167 {dimension_numbers = #tpu.dot_dimension_numbers<[1], [0], [0], [1], [0, 0, 1, 1], [], []>} : vector<8x8xf32>, vector<8x32xf32>, vector<8x32xf32> -> vector<8x32xf32>
    %449 = arith.addf %426, %448 : vector<8x32xf32>
    %450 = vector.extract_strided_slice %305 {offsets = [8, 16], sizes = [8, 8], strides = [1, 1]} : vector<16x96xf32> to vector<8x8xf32>
    %451 = vector.extract_strided_slice %305 {offsets = [8, 48], sizes = [8, 8], strides = [1, 1]} : vector<16x96xf32> to vector<8x8xf32>
    %452 = vector.extract_strided_slice %305 {offsets = [8, 80], sizes = [8, 8], strides = [1, 1]} : vector<16x96xf32> to vector<8x8xf32>
    %453 = tpu.transpose %451, [1, 0] : vector<8x8xf32> -> vector<8x8xf32>
    %cst_168 = arith.constant dense<0.000000e+00> : vector<8x8xf32>
    %454 = tpu.matmul %450, %453, %cst_168 {dimension_numbers = #tpu.dot_dimension_numbers<[1], [0], [0], [1], [0, 0, 1, 1], [], []>} : vector<8x8xf32>, vector<8x8xf32>, vector<8x8xf32> -> vector<8x8xf32>
    %cst_169 = arith.constant 0.353553385 : f32
    %455 = vector.broadcast %cst_169 : f32 to vector<8x8xf32>
    %456 = arith.mulf %454, %455 : vector<8x8xf32>
    %457 = vector.broadcast %402 : vector<1x8xf32> to vector<8x8xf32>
    %458 = arith.addf %456, %457 : vector<8x8xf32>
    %cst_170 = arith.constant dense<0xFF800000> : vector<8xf32>
    %459 = vector.multi_reduction <maximumf>, %458, %cst_170 [1] : vector<8x8xf32> to vector<8xf32>
    %460 = vector.shape_cast %459 : vector<8xf32> to vector<8x1xf32>
    %461 = vector.broadcast %460 : vector<8x1xf32> to vector<8x8xf32>
    %462 = arith.subf %458, %461 : vector<8x8xf32>
    %463 = math.exp %462 : vector<8x8xf32>
    %cst_171 = arith.constant dense<0.000000e+00> : vector<8xf32>
    %464 = vector.multi_reduction <add>, %463, %cst_171 [1] : vector<8x8xf32> to vector<8xf32>
    %465 = vector.shape_cast %464 : vector<8xf32> to vector<8x1xf32>
    %466 = tpu.reciprocal %465 {approx = true} : vector<8x1xf32> -> vector<8x1xf32>
    %467 = vector.broadcast %466 : vector<8x1xf32> to vector<8x8xf32>
    %468 = arith.mulf %463, %467 : vector<8x8xf32>
    %cst_172 = arith.constant dense<0.000000e+00> : vector<8x8xf32>
    %469 = tpu.matmul %468, %452, %cst_172 {dimension_numbers = #tpu.dot_dimension_numbers<[1], [0], [0], [1], [0, 0, 1, 1], [], []>} : vector<8x8xf32>, vector<8x8xf32>, vector<8x8xf32> -> vector<8x8xf32>
    %470 = vector.extract_strided_slice %292 {offsets = [16, 0], sizes = [8, 32], strides = [1, 1]} : vector<32x32xf32> to vector<8x32xf32>
    %cst_173 = arith.constant dense<0.000000e+00> : vector<8x32xf32>
    %471 = tpu.matmul %469, %470, %cst_173 {dimension_numbers = #tpu.dot_dimension_numbers<[1], [0], [0], [1], [0, 0, 1, 1], [], []>} : vector<8x8xf32>, vector<8x32xf32>, vector<8x32xf32> -> vector<8x32xf32>
    %472 = arith.addf %449, %471 : vector<8x32xf32>
    %473 = vector.extract_strided_slice %305 {offsets = [8, 24], sizes = [8, 8], strides = [1, 1]} : vector<16x96xf32> to vector<8x8xf32>
    %474 = vector.extract_strided_slice %305 {offsets = [8, 56], sizes = [8, 8], strides = [1, 1]} : vector<16x96xf32> to vector<8x8xf32>
    %475 = vector.extract_strided_slice %305 {offsets = [8, 88], sizes = [8, 8], strides = [1, 1]} : vector<16x96xf32> to vector<8x8xf32>
    %476 = tpu.transpose %474, [1, 0] : vector<8x8xf32> -> vector<8x8xf32>
    %cst_174 = arith.constant dense<0.000000e+00> : vector<8x8xf32>
    %477 = tpu.matmul %473, %476, %cst_174 {dimension_numbers = #tpu.dot_dimension_numbers<[1], [0], [0], [1], [0, 0, 1, 1], [], []>} : vector<8x8xf32>, vector<8x8xf32>, vector<8x8xf32> -> vector<8x8xf32>
    %cst_175 = arith.constant 0.353553385 : f32
    %478 = vector.broadcast %cst_175 : f32 to vector<8x8xf32>
    %479 = arith.mulf %477, %478 : vector<8x8xf32>
    %480 = vector.broadcast %402 : vector<1x8xf32> to vector<8x8xf32>
    %481 = arith.addf %479, %480 : vector<8x8xf32>
    %cst_176 = arith.constant dense<0xFF800000> : vector<8xf32>
    %482 = vector.multi_reduction <maximumf>, %481, %cst_176 [1] : vector<8x8xf32> to vector<8xf32>
    %483 = vector.shape_cast %482 : vector<8xf32> to vector<8x1xf32>
    %484 = vector.broadcast %483 : vector<8x1xf32> to vector<8x8xf32>
    %485 = arith.subf %481, %484 : vector<8x8xf32>
    %486 = math.exp %485 : vector<8x8xf32>
    %cst_177 = arith.constant dense<0.000000e+00> : vector<8xf32>
    %487 = vector.multi_reduction <add>, %486, %cst_177 [1] : vector<8x8xf32> to vector<8xf32>
    %488 = vector.shape_cast %487 : vector<8xf32> to vector<8x1xf32>
    %489 = tpu.reciprocal %488 {approx = true} : vector<8x1xf32> -> vector<8x1xf32>
    %490 = vector.broadcast %489 : vector<8x1xf32> to vector<8x8xf32>
    %491 = arith.mulf %486, %490 : vector<8x8xf32>
    %cst_178 = arith.constant dense<0.000000e+00> : vector<8x8xf32>
    %492 = tpu.matmul %491, %475, %cst_178 {dimension_numbers = #tpu.dot_dimension_numbers<[1], [0], [0], [1], [0, 0, 1, 1], [], []>} : vector<8x8xf32>, vector<8x8xf32>, vector<8x8xf32> -> vector<8x8xf32>
    %493 = vector.extract_strided_slice %292 {offsets = [24, 0], sizes = [8, 32], strides = [1, 1]} : vector<32x32xf32> to vector<8x32xf32>
    %cst_179 = arith.constant dense<0.000000e+00> : vector<8x32xf32>
    %494 = tpu.matmul %492, %493, %cst_179 {dimension_numbers = #tpu.dot_dimension_numbers<[1], [0], [0], [1], [0, 0, 1, 1], [], []>} : vector<8x8xf32>, vector<8x32xf32>, vector<8x32xf32> -> vector<8x32xf32>
    %495 = arith.addf %472, %494 : vector<8x32xf32>
    %496 = tpu.concatenate %400, %495 in 0 : vector<8x32xf32>, vector<8x32xf32> -> vector<16x32xf32>
    %497 = vector.broadcast %294 : vector<1x32xf32> to vector<16x32xf32>
    %498 = arith.addf %496, %497 : vector<16x32xf32>
    %499 = arith.addf %286, %498 : vector<16x32xf32>
    %c1_180 = arith.constant 1 : index
    %c0_181 = arith.constant 0 : index
    %c0_182 = arith.constant 0 : index
    %500 = vector.load %arg6[%c1_180, %c0_181, %c0_182] : memref<2x1x32xf32, #tpu.memory_space<vmem>>, vector<1x1x32xf32>
    %501 = vector.shape_cast %500 : vector<1x1x32xf32> to vector<1x32xf32>
    %c1_183 = arith.constant 1 : index
    %c0_184 = arith.constant 0 : index
    %c0_185 = arith.constant 0 : index
    %502 = vector.load %arg7[%c1_183, %c0_184, %c0_185] : memref<2x1x32xf32, #tpu.memory_space<vmem>>, vector<1x1x32xf32>
    %503 = vector.shape_cast %502 : vector<1x1x32xf32> to vector<1x32xf32>
    %cst_186 = arith.constant dense<0.000000e+00> : vector<16xf32>
    %504 = vector.multi_reduction <add>, %499, %cst_186 [1] : vector<16x32xf32> to vector<16xf32>
    %505 = vector.shape_cast %504 : vector<16xf32> to vector<16x1xf32>
    %cst_187 = arith.constant 3.200000e+01 : f32
    %506 = vector.broadcast %cst_187 : f32 to vector<16x1xf32>
    %507 = arith.divf %505, %506 : vector<16x1xf32>
    %508 = vector.broadcast %507 : vector<16x1xf32> to vector<16x32xf32>
    %509 = arith.subf %499, %508 : vector<16x32xf32>
    %510 = arith.mulf %509, %509 : vector<16x32xf32>
    %cst_188 = arith.constant dense<0.000000e+00> : vector<16xf32>
    %511 = vector.multi_reduction <add>, %510, %cst_188 [1] : vector<16x32xf32> to vector<16xf32>
    %512 = vector.shape_cast %511 : vector<16xf32> to vector<16x1xf32>
    %cst_189 = arith.constant 3.200000e+01 : f32
    %513 = vector.broadcast %cst_189 : f32 to vector<16x1xf32>
    %514 = arith.divf %512, %513 : vector<16x1xf32>
    %515 = vector.broadcast %507 : vector<16x1xf32> to vector<16x32xf32>
    %516 = arith.subf %499, %515 : vector<16x32xf32>
    %cst_190 = arith.constant 9.99999996E-13 : f32
    %517 = vector.broadcast %cst_190 : f32 to vector<16x1xf32>
    %518 = arith.addf %514, %517 : vector<16x1xf32>
    %519 = math.rsqrt %518 : vector<16x1xf32>
    %520 = vector.broadcast %519 : vector<16x1xf32> to vector<16x32xf32>
    %521 = arith.mulf %516, %520 : vector<16x32xf32>
    %522 = vector.broadcast %501 : vector<1x32xf32> to vector<16x32xf32>
    %523 = arith.mulf %521, %522 : vector<16x32xf32>
    %524 = vector.broadcast %503 : vector<1x32xf32> to vector<16x32xf32>
    %525 = arith.addf %523, %524 : vector<16x32xf32>
    %cst_191 = arith.constant dense<0.000000e+00> : vector<16x64xf32>
    %526 = tpu.matmul %525, %296, %cst_191 {dimension_numbers = #tpu.dot_dimension_numbers<[1], [0], [0], [1], [0, 0, 1, 1], [], []>} : vector<16x32xf32>, vector<32x64xf32>, vector<16x64xf32> -> vector<16x64xf32>
    %527 = vector.broadcast %298 : vector<1x64xf32> to vector<16x64xf32>
    %528 = arith.addf %526, %527 : vector<16x64xf32>
    %529 = arith.mulf %528, %528 : vector<16x64xf32>
    %530 = arith.mulf %528, %529 : vector<16x64xf32>
    %cst_192 = arith.constant 4.471500e-02 : f32
    %531 = vector.broadcast %cst_192 : f32 to vector<16x64xf32>
    %532 = arith.mulf %531, %530 : vector<16x64xf32>
    %533 = arith.addf %528, %532 : vector<16x64xf32>
    %cst_193 = arith.constant 0.797884583 : f32
    %534 = vector.broadcast %cst_193 : f32 to vector<16x64xf32>
    %535 = arith.mulf %534, %533 : vector<16x64xf32>
    %536 = math.tanh %535 : vector<16x64xf32>
    %cst_194 = arith.constant 1.000000e+00 : f32
    %537 = vector.broadcast %cst_194 : f32 to vector<16x64xf32>
    %538 = arith.addf %537, %536 : vector<16x64xf32>
    %cst_195 = arith.constant 5.000000e-01 : f32
    %539 = vector.broadcast %cst_195 : f32 to vector<16x64xf32>
    %540 = arith.mulf %539, %538 : vector<16x64xf32>
    %541 = arith.mulf %528, %540 : vector<16x64xf32>
    %cst_196 = arith.constant dense<0.000000e+00> : vector<16x32xf32>
    %542 = tpu.matmul %541, %300, %cst_196 {dimension_numbers = #tpu.dot_dimension_numbers<[1], [0], [0], [1], [0, 0, 1, 1], [], []>} : vector<16x64xf32>, vector<64x32xf32>, vector<16x32xf32> -> vector<16x32xf32>
    %543 = vector.broadcast %302 : vector<1x32xf32> to vector<16x32xf32>
    %544 = arith.addf %542, %543 : vector<16x32xf32>
    %545 = arith.addf %525, %544 : vector<16x32xf32>
    %c1_197 = arith.constant 1 : index
    %c0_198 = arith.constant 0 : index
    %c0_199 = arith.constant 0 : index
    %546 = vector.load %arg12[%c1_197, %c0_198, %c0_199] : memref<2x1x32xf32, #tpu.memory_space<vmem>>, vector<1x1x32xf32>
    %547 = vector.shape_cast %546 : vector<1x1x32xf32> to vector<1x32xf32>
    %c1_200 = arith.constant 1 : index
    %c0_201 = arith.constant 0 : index
    %c0_202 = arith.constant 0 : index
    %548 = vector.load %arg13[%c1_200, %c0_201, %c0_202] : memref<2x1x32xf32, #tpu.memory_space<vmem>>, vector<1x1x32xf32>
    %549 = vector.shape_cast %548 : vector<1x1x32xf32> to vector<1x32xf32>
    %cst_203 = arith.constant dense<0.000000e+00> : vector<16xf32>
    %550 = vector.multi_reduction <add>, %545, %cst_203 [1] : vector<16x32xf32> to vector<16xf32>
    %551 = vector.shape_cast %550 : vector<16xf32> to vector<16x1xf32>
    %cst_204 = arith.constant 3.200000e+01 : f32
    %552 = vector.broadcast %cst_204 : f32 to vector<16x1xf32>
    %553 = arith.divf %551, %552 : vector<16x1xf32>
    %554 = vector.broadcast %553 : vector<16x1xf32> to vector<16x32xf32>
    %555 = arith.subf %545, %554 : vector<16x32xf32>
    %556 = arith.mulf %555, %555 : vector<16x32xf32>
    %cst_205 = arith.constant dense<0.000000e+00> : vector<16xf32>
    %557 = vector.multi_reduction <add>, %556, %cst_205 [1] : vector<16x32xf32> to vector<16xf32>
    %558 = vector.shape_cast %557 : vector<16xf32> to vector<16x1xf32>
    %cst_206 = arith.constant 3.200000e+01 : f32
    %559 = vector.broadcast %cst_206 : f32 to vector<16x1xf32>
    %560 = arith.divf %558, %559 : vector<16x1xf32>
    %561 = vector.broadcast %553 : vector<16x1xf32> to vector<16x32xf32>
    %562 = arith.subf %545, %561 : vector<16x32xf32>
    %cst_207 = arith.constant 9.99999996E-13 : f32
    %563 = vector.broadcast %cst_207 : f32 to vector<16x1xf32>
    %564 = arith.addf %560, %563 : vector<16x1xf32>
    %565 = math.rsqrt %564 : vector<16x1xf32>
    %566 = vector.broadcast %565 : vector<16x1xf32> to vector<16x32xf32>
    %567 = arith.mulf %562, %566 : vector<16x32xf32>
    %568 = vector.broadcast %547 : vector<1x32xf32> to vector<16x32xf32>
    %569 = arith.mulf %567, %568 : vector<16x32xf32>
    %570 = vector.broadcast %549 : vector<1x32xf32> to vector<16x32xf32>
    %571 = arith.addf %569, %570 : vector<16x32xf32>
    %c0_208 = arith.constant 0 : index
    %c0_209 = arith.constant 0 : index
    %572 = vector.load %arg14[%c0_208, %c0_209] : memref<1x32xf32, #tpu.memory_space<vmem>>, vector<1x32xf32>
    %c0_210 = arith.constant 0 : index
    %c0_211 = arith.constant 0 : index
    %573 = vector.load %arg15[%c0_210, %c0_211] : memref<1x1xf32, #tpu.memory_space<vmem>>, vector<1x1xf32>
    %c0_212 = arith.constant 0 : index
    %c0_213 = arith.constant 0 : index
    %574 = vector.load %arg16[%c0_212, %c0_213] : memref<32x2xf32, #tpu.memory_space<vmem>>, vector<32x2xf32>
    %c0_214 = arith.constant 0 : index
    %c0_215 = arith.constant 0 : index
    %575 = vector.load %arg17[%c0_214, %c0_215] : memref<1x2xf32, #tpu.memory_space<vmem>>, vector<1x2xf32>
    %576 = vector.extract_strided_slice %571 {offsets = [0, 0], sizes = [8, 32], strides = [1, 1]} : vector<16x32xf32> to vector<8x32xf32>
    %577 = tpu.transpose %576, [1, 0] : vector<8x32xf32> -> vector<32x8xf32>
    %cst_216 = arith.constant dense<0.000000e+00> : vector<1x8xf32>
    %578 = tpu.matmul %572, %577, %cst_216 {dimension_numbers = #tpu.dot_dimension_numbers<[1], [0], [0], [1], [0, 0, 1, 1], [], []>} : vector<1x32xf32>, vector<32x8xf32>, vector<1x8xf32> -> vector<1x8xf32>
    %579 = vector.broadcast %573 : vector<1x1xf32> to vector<1x8xf32>
    %580 = arith.addf %578, %579 : vector<1x8xf32>
    %cst_217 = arith.constant dense<0xFF800000> : vector<1xf32>
    %581 = vector.multi_reduction <maximumf>, %580, %cst_217 [1] : vector<1x8xf32> to vector<1xf32>
    %582 = vector.shape_cast %581 : vector<1xf32> to vector<1x1xf32>
    %583 = vector.broadcast %582 : vector<1x1xf32> to vector<1x8xf32>
    %584 = arith.subf %580, %583 : vector<1x8xf32>
    %585 = math.exp %584 : vector<1x8xf32>
    %cst_218 = arith.constant dense<0.000000e+00> : vector<1xf32>
    %586 = vector.multi_reduction <add>, %585, %cst_218 [1] : vector<1x8xf32> to vector<1xf32>
    %587 = vector.shape_cast %586 : vector<1xf32> to vector<1x1xf32>
    %588 = vector.broadcast %587 : vector<1x1xf32> to vector<1x8xf32>
    %589 = arith.divf %585, %588 : vector<1x8xf32>
    %cst_219 = arith.constant dense<0.000000e+00> : vector<1x32xf32>
    %590 = tpu.matmul %589, %576, %cst_219 {dimension_numbers = #tpu.dot_dimension_numbers<[1], [0], [0], [1], [0, 0, 1, 1], [], []>} : vector<1x8xf32>, vector<8x32xf32>, vector<1x32xf32> -> vector<1x32xf32>
    %cst_220 = arith.constant dense<0.000000e+00> : vector<1x2xf32>
    %591 = tpu.matmul %590, %574, %cst_220 {dimension_numbers = #tpu.dot_dimension_numbers<[1], [0], [0], [1], [0, 0, 1, 1], [], []>} : vector<1x32xf32>, vector<32x2xf32>, vector<1x2xf32> -> vector<1x2xf32>
    %592 = arith.addf %591, %575 : vector<1x2xf32>
    %593 = vector.extract_strided_slice %571 {offsets = [8, 0], sizes = [8, 32], strides = [1, 1]} : vector<16x32xf32> to vector<8x32xf32>
    %594 = tpu.transpose %593, [1, 0] : vector<8x32xf32> -> vector<32x8xf32>
    %cst_221 = arith.constant dense<0.000000e+00> : vector<1x8xf32>
    %595 = tpu.matmul %572, %594, %cst_221 {dimension_numbers = #tpu.dot_dimension_numbers<[1], [0], [0], [1], [0, 0, 1, 1], [], []>} : vector<1x32xf32>, vector<32x8xf32>, vector<1x8xf32> -> vector<1x8xf32>
    %596 = vector.broadcast %573 : vector<1x1xf32> to vector<1x8xf32>
    %597 = arith.addf %595, %596 : vector<1x8xf32>
    %cst_222 = arith.constant dense<0xFF800000> : vector<1xf32>
    %598 = vector.multi_reduction <maximumf>, %597, %cst_222 [1] : vector<1x8xf32> to vector<1xf32>
    %599 = vector.shape_cast %598 : vector<1xf32> to vector<1x1xf32>
    %600 = vector.broadcast %599 : vector<1x1xf32> to vector<1x8xf32>
    %601 = arith.subf %597, %600 : vector<1x8xf32>
    %602 = math.exp %601 : vector<1x8xf32>
    %cst_223 = arith.constant dense<0.000000e+00> : vector<1xf32>
    %603 = vector.multi_reduction <add>, %602, %cst_223 [1] : vector<1x8xf32> to vector<1xf32>
    %604 = vector.shape_cast %603 : vector<1xf32> to vector<1x1xf32>
    %605 = vector.broadcast %604 : vector<1x1xf32> to vector<1x8xf32>
    %606 = arith.divf %602, %605 : vector<1x8xf32>
    %cst_224 = arith.constant dense<0.000000e+00> : vector<1x32xf32>
    %607 = tpu.matmul %606, %593, %cst_224 {dimension_numbers = #tpu.dot_dimension_numbers<[1], [0], [0], [1], [0, 0, 1, 1], [], []>} : vector<1x8xf32>, vector<8x32xf32>, vector<1x32xf32> -> vector<1x32xf32>
    %cst_225 = arith.constant dense<0.000000e+00> : vector<1x2xf32>
    %608 = tpu.matmul %607, %574, %cst_225 {dimension_numbers = #tpu.dot_dimension_numbers<[1], [0], [0], [1], [0, 0, 1, 1], [], []>} : vector<1x32xf32>, vector<32x2xf32>, vector<1x2xf32> -> vector<1x2xf32>
    %609 = arith.addf %608, %575 : vector<1x2xf32>
    %610 = tpu.concatenate %592, %609 in 0 : vector<1x2xf32>, vector<1x2xf32> -> vector<2x2xf32>
    %c0_226 = arith.constant 0 : index
    %c0_227 = arith.constant 0 : index
    %611 = vector.load %arg18[%c0_226, %c0_227] : memref<2x2xf32, #tpu.memory_space<vmem>>, vector<2x2xf32>
    tpu.vector_store %arg18[%c0_226, %c0_227], %610 {strides = array<i32>} : memref<2x2xf32, #tpu.memory_space<vmem>>, vector<2x2xf32>,
    %612 = tpu.concatenate %589, %606 in 0 : vector<1x8xf32>, vector<1x8xf32> -> vector<2x8xf32>
    %c0_228 = arith.constant 0 : index
    %c0_229 = arith.constant 0 : index
    %613 = vector.load %arg19[%c0_228, %c0_229] : memref<2x8xf32, #tpu.memory_space<vmem>>, vector<2x8xf32>
    tpu.vector_store %arg19[%c0_228, %c0_229], %612 {strides = array<i32>} : memref<2x8xf32, #tpu.memory_space<vmem>>, vector<2x8xf32>,
    return
  }
}

</mosaic_0001>

<bundles_post_ra>
// kernel: bert_with_attention.1
= control target key start
LH: loop header
LB: loop body
LE: loop exit
PB: predicated region body
PF: predicated region fallthrough
CT: control target
= control target key end

     0   :  { %s6987_s0 = inlined_call_operand.vmem [shape: f32[16,32], index: 0, kind: input, shape index: {}]   ;;  %s6988_s1 = inlined_call_operand.vmem [shape: f32[2,1,8], index: 1, kind: input, shape index: {}]   ;;  %s6989_s2 = inlined_call_operand.vmem [shape: f32[2,32,96], index: 2, kind: input, shape index: {}]   ;;  %s6990_s3 = inlined_call_operand.vmem [shape: f32[2,1,96], index: 3, kind: input, shape index: {}]   ;;  %s6991_s4 = inlined_call_operand.vmem [shape: f32[2,32,32], index: 4, kind: input, shape index: {}]   ;;  %s6992_s5 = inlined_call_operand.vmem [shape: f32[2,1,32], index: 5, kind: input, shape index: {}]   ;;  %s6993_s6 = inlined_call_operand.vmem [shape: f32[2,1,32], index: 6, kind: input, shape index: {}]   ;;  %s6994_s7 = inlined_call_operand.vmem [shape: f32[2,1,32], index: 7, kind: input, shape index: {}]   ;;  %s6995_s8 = inlined_call_operand.vmem [shape: f32[2,32,64], index: 8, kind: input, shape index: {}]   ;;  %s6996_s9 = inlined_call_operand.vmem [shape: f32[2,1,64], index: 9, kind: input, shape index: {}]   ;;  %s6997_s10 = inlined_call_operand.vmem [shape: f32[2,64,32], index: 10, kind: input, shape index: {}]   ;;  %s6998_s11 = inlined_call_operand.vmem [shape: f32[2,1,32], index: 11, kind: input, shape index: {}]   ;;  %s6999_s12 = inlined_call_operand.vmem [shape: f32[2,1,32], index: 12, kind: input, shape index: {}]   ;;  %s7000_s13 = inlined_call_operand.vmem [shape: f32[2,1,32], index: 13, kind: input, shape index: {}]   ;;  %s7001_s14 = inlined_call_operand.vmem [shape: f32[1,32], index: 14, kind: input, shape index: {}]   ;;  %s7002_s15 = inlined_call_operand.<no memory space> [shape: f32[1,1], index: 15, kind: input, shape index: {}]   ;;  %s7003_s16 = inlined_call_operand.vmem [shape: f32[32,2], index: 16, kind: input, shape index: {}]   ;;  %s7004_s17 = inlined_call_operand.vmem [shape: f32[1,2], index: 17, kind: input, shape index: {}]   ;;  %s7005_s18 = inlined_call_operand.hbm [shape: f32[2,2], index: 18, kind: output, shape index: {0}]   ;;  %s7006_s19 = inlined_call_operand.hbm [shape: f32[2,8], index: 19, kind: output, shape index: {1}]  }
   0x1   :  { %7023 = sst [smem:[#allocation9_spill]] %s6987_s0  ;;  %v25_v0 = vstv %s7002_s15 }
   0x2   :  { %7024 = sst [smem:[#allocation10_spill]] %s6988_s1  ;;  %26 = vst [vmem:[#allocation2] sm:$0x1] %v25_v0 }
   0x3   :  { %7025 = sst [smem:[#allocation11_spill]] %s6989_s2 }
   0x4   :  { %7026 = sst [smem:[#allocation12_spill]] %s6990_s3 }
   0x5   :  { %27 = vsyncpa [#allocation4], 0  ;;  %s7027_s1 = sld [smem:[#allocation11_spill]]  ;;  %vm99_vm0 = vcmask 261120   ;;  %s7028_s27 = sld [smem:[#allocation9_spill]] }
   0xb   :  { %v69_v1 = vld [vmem:[%s7027_s1] sm:$0xff]  ;;  %v70_v2 = vld [vmem:[%s7027_s1 + $0x8] sm:$0xff]  ;;  %v71_v3 = vld [vmem:[%s7027_s1 + $0x10] sm:$0xff] }
   0xc   :  { %v5919_v4 = vpack.c.bf16 %v70_v2, %v69_v1  ;;  %v72_v5 = vld [vmem:[%s7027_s1 + $0x18] sm:$0xff]  ;;  %v6295_v6 = vld [vmem:[%s7028_s27] sm:$0xff] }
   0xd   :  { %v5923_v7 = vpack.c.bf16 %v72_v5, %v71_v3  ;;  %5563 = vmatprep.mubr.msk.f32.mxu0 %vm99_vm0, %v6295_v6 }
   0xe   :  { %28 = vsyncpa [#allocation6], 0  ;;  %5920 = vmatprep.subr.bf16.mxu0 %v5919_v4  ;;  %v6302_v8 = vld [vmem:[%s7028_s27 + $0x8] sm:$0xff]  ;;  %v6160_v9 = vmov 0.0   ;;  %vm6161_vm1 = vmmov 0   ;;  %s7029_s20 = sld [smem:[#allocation12_spill]] }
   0xf   :  { %5922 = vmatpush3.bf16.msra.mxu0 %v5919_v4  ;;  %5566 = vmatprep.subr.mxu1 %v6160_v9  ;;  %s6162_s21 = smov 64   ;;  %s7013_s22 = smov 96   ;;  %vm184_vm2 = vcmask 64512   ;;  %v6362_v45 = vld [vmem:[%s6991_s4 + $0x8] sm:$0xff]  ;;  %v6370_v50 = vld [vmem:[%s6991_s4] sm:$0xff]  ;;  %vm2282_vm3 = vcmask 523264  }
  0x10   :  { %5924 = vmatprep.subr.bf16.mxu0 %v5923_v7  ;;  %5568 = vmatprep.mubr.msk.f32.mxu1 %vm6161_vm1, %v6160_v9  ;;  %s7011_s2 = smov 88   ;;  %s7030_s25 = sld [smem:[#allocation10_spill]]  ;;  %vm4839_vm4 = vcmask 57344   ;;  %vm5230_vm5 = vcmask 1040384   ;;  %vm5237_vm6 = vcmask 58368  }
  0x11   :  { %s6165_s3 = smov 120   ;;  %s6166_s15 = smov 56  }
  0x12   :  { %s6167_s26 = smov 80   ;;  %s6168_s27 = smov 112  }
  0x13   :  { %5926 = vmatpush3.bf16.msra.mxu0 %v5923_v7  ;;  %s7017_s23 = smov 48   ;;  %s7021_s24 = smov 72  }
  0x14   :  { %5586 = vmatprep.subr.mxu0 %v6160_v9  ;;  %v5267_v10 = vld [vmem:[%s7029_s20] ss:$0 sm:$0xff]  ;;  %s7019_s28 = smov 104   ;;  %s7015_s29 = smov 40  }
  0x15   :  { %s7036_s0 = smov 40  }
  0x16   :  { %5564 = vmatmul.mubr.msk.f32.vlgmr.msra.gmra.mrb[0].mxu0 %vm99_vm0, %v6302_v8  ;;  %v6335_v18 = vld [vmem:[%s7030_s25] ss:$0 sm:$0xff] }
  0x17   :  { %5588 = vmatprep.mubr.msk.f32.mxu0 %vm6161_vm1, %v6160_v9  ;;  %5587 = vmatpush3.msra.mxu0 %v6362_v45 }
  0x18   :  { %5596 = vmatprep.subr.mxu0 %v6160_v9 }
  0xe9   :  { %v5565_v11 = vpop.f32.mrb[0].mxu0 }
  0xea   :  { %v6315_v12 = vadd.f32 %v5565_v11, %v5267_v10  ;;  %v172_v13 = vpop.f32.mrb[1].mxu0 }
  0xeb   :  { %v6317_v14 = vadd.f32 %v5267_v10, %v172_v13  ;;  %v6405_v10 = vld [vmem:[%s6991_s4 + $0x10] sm:$0xff] }
  0xed   :  { %278 = vrot.lane.b32.xlu1 %v6317_v14, %s6162_s21  ;;  %182 = vrot.lane.b32.xlu0 %v6317_v14, %s7013_s22 }
  0xf1   :  { %356 = vrot.lane.b32.xlu1 %v6317_v14, %s7011_s2 }
 0x15f   :  { %v183_v15 = vpop.permute.xlu0 %182  ;;  %v279_v16 = vpop.permute.xlu1 %278 }
 0x160   :  { %5567 = vmatpush3.xpose.msk.msra.mxu1 %vm184_vm2, %v183_v15 }
 0x161   :  { %5571 = vmatprep.subr.mxu1 %v6160_v9 }
 0x163   :  { %5569 = vmatmul.mubr.msk.f32.vlgmr.msra.gmra.mrb[0].mxu1 %vm184_vm2, %v6317_v14  ;;  %v357_v28 = vpop.permute.xlu1 %356 }
 0x164   :  { %5572 = vmatpush3.msra.mxu1 %v279_v16  ;;  %5573 = vmatprep.mubr.msk.f32.mxu1 %vm6161_vm1, %v6160_v9 }
 0x165   :  { %5576 = vmatprep.subr.mxu1 %v6160_v9 }
 0x236   :  { %v255_v17 = vpop.f32.mrb[0].mxu1 }
 0x237   :  { %v259_v19 = vmul.f32 0.35355338, %v255_v17  ;;  %v5570_v20 = vpop.f32.mrb[1].mxu1 }
 0x239   :  { %v266_v21 = vadd.f32 %v6335_v18, %v259_v19 }
 0x23b   :  { %v267_v22 = vsel %vm184_vm2, %v266_v21, -inf }
 0x23c   :  { %268 = vmax.xlane.f32.xlu0 %v267_v22 }
 0x2c9   :  { %v269_v23 = vpop.xlane.xlu0 %268 }
 0x2ca   :  { %v270_v24 = vsub.f32 %v266_v21, %v269_v23 }
 0x2cc   :  { %v271_v25 = vmul.f32 1.442695, %v270_v24 }
 0x2ce   :  { %6014 = vpow2.f32 %v271_v25 }
 0x2d8   :  { %v6015_v26 = vpop.eup %6014 }
 0x2d9   :  { %v273_v27 = vsel %vm184_vm2, %v6015_v26, 0.0 }
 0x2da   :  { %274 = vadd.xlane.f32.xlu1 %v273_v27 }
 0x2eb   :  { %354 = vrot.lane.b32.xlu1 %v6317_v14, %s6165_s3 }
 0x367   :  { %v275_v29 = vpop.xlane.xlu1 %274 }
 0x368   :  { %6016 = vrcp.f32 %v275_v29 }
 0x36b   :  { %v355_v32 = vpop.permute.xlu1 %354 }
 0x372   :  { %v6017_v30 = vpop.eup %6016 }
 0x373   :  { %v277_v31 = vmul.f32 %v6017_v30, %v6015_v26 }
 0x375   :  { %5574 = vmatmul.mubr.msk.f32.vlgmr.msra.gmra.mrb[2].mxu1 %vm184_vm2, %v277_v31 }
 0x376   :  { %5577 = vmatpush3.xpose.msk.msra.mxu1 %vm184_vm2, %v357_v28  ;;  %5578 = vmatprep.mubr.msk.f32.mxu1 %vm6161_vm1, %v6160_v9 }
 0x377   :  { %5581 = vmatprep.subr.mxu1 %v6160_v9 }
 0x379   :  { %5579 = vmatmul.mubr.msk.f32.vlgmr.msra.gmra.mrb[4].mxu1 %vm184_vm2, %v355_v32 }
 0x37a   :  { %5583 = vmatprep.mubr.msk.f32.mxu1 %vm6161_vm1, %v6160_v9 }
 0x448   :  { %v350_v33 = vpop.f32.mrb[2].mxu1 }
 0x449   :  { %v5575_v34 = vpop.f32.mrb[3].mxu1 }
 0x44c   :  { %v428_v35 = vpop.f32.mrb[4].mxu1 }
 0x44d   :  { %v432_v36 = vmul.f32 0.35355338, %v428_v35  ;;  %v5580_v37 = vpop.f32.mrb[5].mxu1 }
 0x44f   :  { %v433_v38 = vadd.f32 %v6335_v18, %v432_v36 }
 0x451   :  { %v434_v39 = vsel %vm184_vm2, %v433_v38, -inf }
 0x452   :  { %435 = vmax.xlane.f32.xlu1 %v434_v39 }
 0x4df   :  { %v436_v40 = vpop.xlane.xlu1 %435 }
 0x4e0   :  { %v437_v41 = vsub.f32 %v433_v38, %v436_v40  ;;  %v6450_v40 = vld [vmem:[%s6991_s4 + $0x18] sm:$0xff] }
 0x4e2   :  { %v438_v42 = vmul.f32 1.442695, %v437_v41 }
 0x4e4   :  { %6018 = vpow2.f32 %v438_v42 }
 0x4ee   :  { %v6019_v43 = vpop.eup %6018 }
 0x4ef   :  { %v440_v44 = vsel %vm184_vm2, %v6019_v43, 0.0 }
 0x4f0   :  { %441 = vadd.xlane.f32.xlu0 %v440_v44  ;;  %v6460_v44 = vld [vmem:[%s7030_s25 + $0x1] ss:$0 sm:$0xff] }
 0x506   :  { %445 = vrot.lane.b32.xlu0 %v6317_v14, %s6166_s15 }
 0x50a   :  { %669 = vrot.lane.b32.xlu0 %v6317_v14, %s6167_s26 }
 0x50e   :  { %667 = vrot.lane.b32.xlu0 %v6317_v14, %s6168_s27 }
 0x57d   :  { %v442_v46 = vpop.xlane.xlu0 %441 }
 0x57e   :  { %6020 = vrcp.f32 %v442_v46 }
 0x581   :  { %v446_v47 = vpop.permute.xlu0 %445 }
 0x582   :  { %5582 = vmatpush3.msra.mxu1 %v446_v47 }
 0x583   :  { %5591 = vmatprep.subr.mxu1 %v6160_v9 }
 0x585   :  { %v670_v51 = vpop.permute.xlu0 %669 }
 0x588   :  { %v6021_v48 = vpop.eup %6020 }
 0x589   :  { %v444_v49 = vmul.f32 %v6021_v48, %v6019_v43  ;;  %v668_v54 = vpop.permute.xlu0 %667 }
 0x58b   :  { %5584 = vmatmul.mubr.msk.f32.vlgmr.msra.gmra.mrb[6].mxu1 %vm184_vm2, %v444_v49 }
 0x58c   :  { %5592 = vmatpush3.msra.mxu1 %v6370_v50  ;;  %5593 = vmatprep.mubr.msk.f32.mxu1 %vm6161_vm1, %v6160_v9 }
 0x58d   :  { %5601 = vmatprep.subr.mxu1 %v6160_v9 }
 0x58f   :  { %5594 = vmatmul.mubr.msk.f32.vlgmr.msra.gmra.mrb[8].mxu1 %vm184_vm2, %v350_v33 }
 0x590   :  { %5603 = vmatprep.mubr.msk.f32.mxu1 %vm6161_vm1, %v6160_v9 }
 0x65e   :  { %v517_v52 = vpop.f32.mrb[6].mxu1 }
 0x65f   :  { %v5585_v53 = vpop.f32.mrb[7].mxu1  ;;  %5589 = vmatmul.mubr.msk.f32.vlgmr.msra.gmra.mrb[2].mxu0 %vm184_vm2, %v517_v52 }
 0x660   :  { %5597 = vmatpush3.xpose.msk.msra.mxu0 %vm184_vm2, %v670_v51  ;;  %5598 = vmatprep.mubr.msk.f32.mxu0 %vm6161_vm1, %v6160_v9 }
 0x661   :  { %5606 = vmatprep.subr.mxu0 %v6160_v9 }
 0x662   :  { %v663_v55 = vpop.f32.mrb[8].mxu1 }
 0x663   :  { %v5595_v56 = vpop.f32.mrb[9].mxu1  ;;  %5599 = vmatmul.mubr.msk.f32.vlgmr.msra.gmra.mrb[4].mxu0 %vm184_vm2, %v668_v54 }
 0x664   :  { %5608 = vmatprep.mubr.msk.f32.mxu0 %vm6161_vm1, %v6160_v9  ;;  %5607 = vmatpush3.msra.mxu0 %v6405_v10 }
 0x665   :  { %5616 = vmatprep.subr.mxu0 %v6160_v9 }
 0x732   :  { %v590_v57 = vpop.f32.mrb[2].mxu0 }
 0x733   :  { %v6388_v58 = vadd.f32 %v663_v55, %v590_v57  ;;  %v5590_v59 = vpop.f32.mrb[3].mxu0 }
 0x736   :  { %v741_v60 = vpop.f32.mrb[4].mxu0 }
 0x737   :  { %v745_v61 = vmul.f32 0.35355338, %v741_v60  ;;  %v5600_v62 = vpop.f32.mrb[5].mxu0 }
 0x739   :  { %v746_v63 = vadd.f32 %v6335_v18, %v745_v61 }
 0x73b   :  { %v747_v0 = vsel %vm184_vm2, %v746_v63, -inf }
 0x73c   :  { %748 = vmax.xlane.f32.xlu1 %v747_v0 }
 0x74d   :  { %758 = vrot.lane.b32.xlu1 %v6317_v14, %s7017_s23 }
 0x751   :  { %910 = vrot.lane.b32.xlu1 %v6317_v14, %s7021_s24 }
 0x755   :  { %908 = vrot.lane.b32.xlu1 %v6317_v14, %s7019_s28 }
 0x7c9   :  { %v749_v1 = vpop.xlane.xlu1 %748 }
 0x7ca   :  { %v750_v2 = vsub.f32 %v746_v63, %v749_v1 }
 0x7cc   :  { %v751_v3 = vmul.f32 1.442695, %v750_v2 }
 0x7cd   :  { %v759_v4 = vpop.permute.xlu1 %758 }
 0x7ce   :  { %6022 = vpow2.f32 %v751_v3  ;;  %5602 = vmatpush3.msra.mxu1 %v759_v4 }
 0x7cf   :  { %5611 = vmatprep.subr.mxu1 %v6160_v9 }
 0x7d1   :  { %v911_v15 = vpop.permute.xlu1 %910 }
 0x7d8   :  { %v6023_v5 = vpop.eup %6022 }
 0x7d9   :  { %v753_v7 = vsel %vm184_vm2, %v6023_v5, 0.0 }
 0x7da   :  { %754 = vadd.xlane.f32.xlu0 %v753_v7 }
 0x7f0   :  { %999 = vrot.lane.b32.xlu0 %v6317_v14, %s7015_s29  ;;  %v909_v14 = vpop.permute.xlu1 %908 }
 0x867   :  { %v755_v11 = vpop.xlane.xlu0 %754 }
 0x868   :  { %6024 = vrcp.f32 %v755_v11 }
 0x86b   :  { %v1000_v19 = vpop.permute.xlu0 %999 }
 0x872   :  { %v6025_v13 = vpop.eup %6024 }
 0x873   :  { %v757_v16 = vmul.f32 %v6025_v13, %v6023_v5 }
 0x875   :  { %5604 = vmatmul.mubr.msk.f32.vlgmr.msra.gmra.mrb[10].mxu1 %vm184_vm2, %v757_v16 }
 0x876   :  { %5612 = vmatpush3.xpose.msk.msra.mxu1 %vm184_vm2, %v911_v15  ;;  %5613 = vmatprep.mubr.msk.f32.mxu1 %vm6161_vm1, %v6160_v9 }
 0x877   :  { %5621 = vmatprep.subr.mxu1 %v6160_v9 }
 0x879   :  { %5614 = vmatmul.mubr.msk.f32.vlgmr.msra.gmra.mrb[12].mxu1 %vm184_vm2, %v909_v14 }
 0x87a   :  { %5623 = vmatprep.mubr.msk.f32.mxu1 %vm6161_vm1, %v6160_v9  ;;  %5622 = vmatpush3.msra.mxu1 %v6450_v40 }
 0x87b   :  { %5631 = vmatprep.subr.mxu1 %v6160_v9 }
 0x948   :  { %v830_v17 = vpop.f32.mrb[10].mxu1 }
 0x949   :  { %v5605_v20 = vpop.f32.mrb[11].mxu1  ;;  %5609 = vmatmul.mubr.msk.f32.vlgmr.msra.gmra.mrb[6].mxu0 %vm184_vm2, %v830_v17 }
 0x94a   :  { %5617 = vmatpush3.msra.mxu0 %v1000_v19  ;;  %5618 = vmatprep.mubr.msk.f32.mxu0 %vm6161_vm1, %v6160_v9 }
 0x94b   :  { %5626 = vmatprep.subr.mxu0 %v6160_v9 }
 0x94c   :  { %v982_v21 = vpop.f32.mrb[12].mxu1 }
 0x94d   :  { %v986_v22 = vmul.f32 0.35355338, %v982_v21  ;;  %v5615_v23 = vpop.f32.mrb[13].mxu1 }
 0x94f   :  { %v987_v24 = vadd.f32 %v6335_v18, %v986_v22 }
 0x951   :  { %v988_v25 = vsel %vm184_vm2, %v987_v24, -inf }
 0x952   :  { %989 = vmax.xlane.f32.xlu1 %v988_v25 }
 0x963   :  { %1321 = vrot.lane.b32.xlu1 %v6315_v12, %s6165_s3 }
 0x9df   :  { %v990_v26 = vpop.xlane.xlu1 %989 }
 0x9e0   :  { %v991_v27 = vsub.f32 %v987_v24, %v990_v26 }
 0x9e2   :  { %v992_v28 = vmul.f32 1.442695, %v991_v27 }
 0x9e3   :  { %v1322_v39 = vpop.permute.xlu1 %1321 }
 0x9e4   :  { %6026 = vpow2.f32 %v992_v28 }
 0x9ee   :  { %v6027_v29 = vpop.eup %6026 }
 0x9ef   :  { %v994_v30 = vsel %vm184_vm2, %v6027_v29, 0.0 }
 0x9f0   :  { %995 = vadd.xlane.f32.xlu0 %v994_v30 }
 0xa06   :  { %1150 = vrot.lane.b32.xlu0 %v6315_v12, %s7013_s22 }
 0xa0a   :  { %1323 = vrot.lane.b32.xlu0 %v6315_v12, %s7011_s2  ;;  %s7033_s2 = smov 72  }
 0xa1c   :  { %v903_v31 = vpop.f32.mrb[6].mxu0 }
 0xa1d   :  { %v907_v32 = vadd.f32 %v903_v31, %v6388_v58  ;;  %v5610_v33 = vpop.f32.mrb[7].mxu0 }
 0xa7d   :  { %v996_v34 = vpop.xlane.xlu0 %995 }
 0xa7e   :  { %6028 = vrcp.f32 %v996_v34 }
 0xa81   :  { %v1151_v37 = vpop.permute.xlu0 %1150 }
 0xa85   :  { %v1324_v38 = vpop.permute.xlu0 %1323 }
 0xa88   :  { %v6029_v35 = vpop.eup %6028 }
 0xa89   :  { %v998_v36 = vmul.f32 %v6029_v35, %v6027_v29 }
 0xa8b   :  { %5619 = vmatmul.mubr.msk.f32.vlgmr.msra.gmra.mrb[8].mxu0 %vm184_vm2, %v998_v36 }
 0xa8c   :  { %5627 = vmatpush3.xpose.msk.msra.mxu0 %vm184_vm2, %v1151_v37  ;;  %5628 = vmatprep.mubr.msk.f32.mxu0 %vm6161_vm1, %v6160_v9 }
 0xa8d   :  { %5636 = vmatprep.subr.mxu0 %v6160_v9 }
 0xa8f   :  { %5629 = vmatmul.mubr.msk.f32.vlgmr.msra.gmra.mrb[10].mxu0 %vm184_vm2, %v6315_v12 }
 0xa90   :  { %5637 = vmatpush3.xpose.msk.msra.mxu0 %vm184_vm2, %v1324_v38  ;;  %5638 = vmatprep.mubr.msk.f32.mxu0 %vm6161_vm1, %v6160_v9 }
 0xa91   :  { %5646 = vmatprep.subr.mxu0 %v6160_v9 }
 0xa93   :  { %5639 = vmatmul.mubr.msk.f32.vlgmr.msra.gmra.mrb[12].mxu0 %vm184_vm2, %v1322_v39 }
 0xa94   :  { %5647 = vmatpush3.msra.mxu0 %v6362_v45  ;;  %5648 = vmatprep.mubr.msk.f32.mxu0 %vm6161_vm1, %v6160_v9 }
 0xa95   :  { %5656 = vmatprep.subr.mxu0 %v6160_v9 }
 0xb5e   :  { %v1071_v41 = vpop.f32.mrb[8].mxu0 }
 0xb5f   :  { %v5620_v42 = vpop.f32.mrb[9].mxu0  ;;  %5624 = vmatmul.mubr.msk.f32.vlgmr.msra.gmra.mrb[14].mxu1 %vm184_vm2, %v1071_v41 }
 0xb60   :  { %5633 = vmatprep.mubr.msk.f32.mxu1 %vm6161_vm1, %v6160_v9 }
 0xb62   :  { %v1222_v43 = vpop.f32.mrb[10].mxu0 }
 0xb63   :  { %v1226_v45 = vmul.f32 0.35355338, %v1222_v43  ;;  %v5630_v46 = vpop.f32.mrb[11].mxu0 }
 0xb65   :  { %v1233_v47 = vadd.f32 %v6460_v44, %v1226_v45 }
 0xb66   :  { %v1395_v48 = vpop.f32.mrb[12].mxu0 }
 0xb67   :  { %v1399_v49 = vmul.f32 0.35355338, %v1395_v48  ;;  %v5640_v51 = vpop.f32.mrb[13].mxu0  ;;  %v1234_v52 = vsel %vm184_vm2, %v1233_v47, -inf }
 0xb68   :  { %1235 = vmax.xlane.f32.xlu0 %v1234_v52 }
 0xb69   :  { %v1400_v53 = vadd.f32 %v6460_v44, %v1399_v49 }
 0xb6b   :  { %v1401_v54 = vsel %vm184_vm2, %v1400_v53, -inf }
 0xb6c   :  { %1402 = vmax.xlane.f32.xlu1 %v1401_v54 }
 0xb7d   :  { %1412 = vrot.lane.b32.xlu1 %v6315_v12, %s6166_s15 }
 0xbf5   :  { %v1236_v55 = vpop.xlane.xlu0 %1235 }
 0xbf6   :  { %v1237_v56 = vsub.f32 %v1233_v47, %v1236_v55 }
 0xbf8   :  { %v1238_v57 = vmul.f32 1.442695, %v1237_v56  ;;  %v5304_v56 = vld [vmem:[%s6992_s5] ss:$0 sm:$0xff] }
 0xbf9   :  { %v1403_v58 = vpop.xlane.xlu1 %1402 }
 0xbfa   :  { %6030 = vpow2.f32 %v1238_v57  ;;  %v1404_v59 = vsub.f32 %v1400_v53, %v1403_v58 }
 0xbfc   :  { %v1405_v60 = vmul.f32 1.442695, %v1404_v59 }
 0xbfd   :  { %v1413_v15 = vpop.permute.xlu1 %1412 }
 0xbfe   :  { %6032 = vpow2.f32 %v1405_v60 }
 0xc04   :  { %v6031_v61 = vpop.eup %6030 }
 0xc05   :  { %v1240_v62 = vsel %vm184_vm2, %v6031_v61, 0.0 }
 0xc06   :  { %1241 = vadd.xlane.f32.xlu0 %v1240_v62 }
 0xc08   :  { %v6033_v63 = vpop.eup %6032 }
 0xc09   :  { %v1407_v0 = vsel %vm184_vm2, %v6033_v63, 0.0 }
 0xc0a   :  { %1408 = vadd.xlane.f32.xlu0 %v1407_v0 }
 0xc20   :  { %1245 = vrot.lane.b32.xlu0 %v6315_v12, %s6162_s21 }
 0xc24   :  { %1636 = vrot.lane.b32.xlu0 %v6315_v12, %s6167_s26 }
 0xc28   :  { %1634 = vrot.lane.b32.xlu0 %v6315_v12, %s6168_s27 }
 0xc32   :  { %v1144_v1 = vpop.f32.mrb[14].mxu1 }
 0xc33   :  { %v6476_v2 = vadd.f32 %v1144_v1, %v907_v32  ;;  %v5625_v3 = vpop.f32.mrb[15].mxu1 }
 0xc35   :  { %v2122_v57 = vadd.f32 %v5304_v56, %v6476_v2 }
 0xc37   :  { %v2124_v60 = vadd.f32 %v2122_v57, %v6295_v6  ;;  %v91_v57 = vld [vmem:[%s6997_s10 + $0x38] sm:$0xff] }
 0xc93   :  { %v1242_v4 = vpop.xlane.xlu0 %1241 }
 0xc94   :  { %6034 = vrcp.f32 %v1242_v4 }
 0xc97   :  { %v1409_v5 = vpop.xlane.xlu0 %1408 }
 0xc98   :  { %6036 = vrcp.f32 %v1409_v5 }
 0xc9b   :  { %v1246_v7 = vpop.permute.xlu0 %1245 }
 0xc9c   :  { %5632 = vmatpush3.msra.mxu1 %v1246_v7 }
 0xc9d   :  { %5641 = vmatprep.subr.mxu1 %v6160_v9 }
 0xc9e   :  { %v6035_v11 = vpop.eup %6034 }
 0xc9f   :  { %v1244_v13 = vmul.f32 %v6035_v11, %v6031_v61  ;;  %v1637_v20 = vpop.permute.xlu0 %1636 }
 0xca1   :  { %5634 = vmatmul.mubr.msk.f32.vlgmr.msra.gmra.mrb[16].mxu1 %vm184_vm2, %v1244_v13 }
 0xca2   :  { %v6037_v16 = vpop.eup %6036  ;;  %5642 = vmatpush3.msra.mxu1 %v1413_v15  ;;  %5643 = vmatprep.mubr.msk.f32.mxu1 %vm6161_vm1, %v6160_v9 }
 0xca3   :  { %v1411_v14 = vmul.f32 %v6037_v16, %v6033_v63  ;;  %5651 = vmatprep.subr.mxu1 %v6160_v9 }
 0xca5   :  { %5644 = vmatmul.mubr.msk.f32.vlgmr.msra.gmra.mrb[18].mxu1 %vm184_vm2, %v1411_v14 }
 0xca6   :  { %5652 = vmatpush3.msra.mxu1 %v6370_v50  ;;  %5653 = vmatprep.mubr.msk.f32.mxu1 %vm6161_vm1, %v6160_v9  ;;  %v1635_v50 = vpop.permute.xlu0 %1634 }
 0xca7   :  { %5661 = vmatprep.subr.mxu1 %v6160_v9 }
 0xd74   :  { %v1317_v17 = vpop.f32.mrb[16].mxu1 }
 0xd75   :  { %v5635_v19 = vpop.f32.mrb[17].mxu1  ;;  %5654 = vmatmul.mubr.msk.f32.vlgmr.msra.gmra.mrb[20].mxu1 %vm184_vm2, %v1317_v17 }
 0xd76   :  { %5663 = vmatprep.mubr.msk.f32.mxu1 %vm6161_vm1, %v6160_v9 }
 0xd78   :  { %v1484_v21 = vpop.f32.mrb[18].mxu1 }
 0xd79   :  { %v5645_v22 = vpop.f32.mrb[19].mxu1  ;;  %5649 = vmatmul.mubr.msk.f32.vlgmr.msra.gmra.mrb[14].mxu0 %vm184_vm2, %v1484_v21 }
 0xd7a   :  { %5657 = vmatpush3.xpose.msk.msra.mxu0 %vm184_vm2, %v1637_v20  ;;  %5658 = vmatprep.mubr.msk.f32.mxu0 %vm6161_vm1, %v6160_v9 }
 0xd7b   :  { %5666 = vmatprep.subr.mxu0 %v6160_v9 }
 0xd7d   :  { %5659 = vmatmul.mubr.msk.f32.vlgmr.msra.gmra.mrb[16].mxu0 %vm184_vm2, %v1635_v50 }
 0xd7e   :  { %5667 = vmatpush3.msra.mxu0 %v6405_v10  ;;  %5668 = vmatprep.mubr.msk.f32.mxu0 %vm6161_vm1, %v6160_v9 }
 0xd7f   :  { %5676 = vmatprep.subr.mxu0 %v6160_v9 }
 0xe48   :  { %v1630_v23 = vpop.f32.mrb[20].mxu1 }
 0xe49   :  { %v5655_v24 = vpop.f32.mrb[21].mxu1 }
 0xe4c   :  { %v1557_v25 = vpop.f32.mrb[14].mxu0 }
 0xe4d   :  { %v1631_v26 = vadd.f32 %v1630_v23, %v1557_v25  ;;  %v5650_v27 = vpop.f32.mrb[15].mxu0 }
 0xe50   :  { %v1708_v28 = vpop.f32.mrb[16].mxu0 }
 0xe51   :  { %v1712_v29 = vmul.f32 0.35355338, %v1708_v28  ;;  %v5660_v30 = vpop.f32.mrb[17].mxu0 }
 0xe52   :  { %v5306_v30 = vld [vmem:[%s6994_s7] ss:$0 sm:$0xff] }
 0xe53   :  { %v1713_v31 = vadd.f32 %v6460_v44, %v1712_v29 }
 0xe55   :  { %v1714_v32 = vsel %vm184_vm2, %v1713_v31, -inf }
 0xe56   :  { %1715 = vmax.xlane.f32.xlu1 %v1714_v32 }
 0xe67   :  { %1877 = vrot.lane.b32.xlu1 %v6315_v12, %s7021_s24  ;;  %s7031_s24 = smov 96  }
 0xe6b   :  { %1875 = vrot.lane.b32.xlu1 %v6315_v12, %s7019_s28  ;;  %s7032_s28 = smov 88  }
 0xee3   :  { %v1716_v10 = vpop.xlane.xlu1 %1715 }
 0xee4   :  { %v1717_v33 = vsub.f32 %v1713_v31, %v1716_v10  ;;  %v79_v10 = vld [vmem:[%s6995_s8] sm:$0xff] }
 0xee6   :  { %v1718_v34 = vmul.f32 1.442695, %v1717_v33  ;;  %v80_v33 = vld [vmem:[%s6995_s8 + $0x8] sm:$0xff] }
 0xee7   :  { %v1878_v41 = vpop.permute.xlu1 %1877 }
 0xee8   :  { %6038 = vpow2.f32 %v1718_v34  ;;  %v5927_v34 = vpack.c.bf16 %v80_v33, %v79_v10 }
 0xeeb   :  { %v1876_v43 = vpop.permute.xlu1 %1875 }
 0xef2   :  { %v6039_v35 = vpop.eup %6038 }
 0xef3   :  { %v1720_v36 = vsel %vm184_vm2, %v6039_v35, 0.0 }
 0xef4   :  { %1721 = vadd.xlane.f32.xlu0 %v1720_v36  ;;  %v82_v36 = vld [vmem:[%s6995_s8 + $0x18] sm:$0xff] }
 0xf0a   :  { %1725 = vrot.lane.b32.xlu0 %v6315_v12, %s7017_s23  ;;  %s7034_s23 = smov 104  }
 0xf81   :  { %v1722_v37 = vpop.xlane.xlu0 %1721 }
 0xf82   :  { %6040 = vrcp.f32 %v1722_v37 }
 0xf85   :  { %v1726_v38 = vpop.permute.xlu0 %1725 }
 0xf86   :  { %5662 = vmatpush3.msra.mxu1 %v1726_v38 }
 0xf87   :  { %5671 = vmatprep.subr.mxu1 %v6160_v9 }
 0xf8c   :  { %v6041_v39 = vpop.eup %6040 }
 0xf8d   :  { %v1724_v42 = vmul.f32 %v6041_v39, %v6039_v35  ;;  %v81_v35 = vld [vmem:[%s6995_s8 + $0x10] sm:$0xff] }
 0xf8e   :  { %v5931_v37 = vpack.c.bf16 %v82_v36, %v81_v35 }
 0xf8f   :  { %5664 = vmatmul.mubr.msk.f32.vlgmr.msra.gmra.mrb[22].mxu1 %vm184_vm2, %v1724_v42 }
 0xf90   :  { %5672 = vmatpush3.xpose.msk.msra.mxu1 %vm184_vm2, %v1878_v41  ;;  %5673 = vmatprep.mubr.msk.f32.mxu1 %vm6161_vm1, %v6160_v9 }
 0xf91   :  { %5681 = vmatprep.subr.mxu1 %v6160_v9 }
 0xf93   :  { %5674 = vmatmul.mubr.msk.f32.vlgmr.msra.gmra.mrb[24].mxu1 %vm184_vm2, %v1876_v43 }
 0xf94   :  { %5682 = vmatpush3.msra.mxu1 %v6450_v40  ;;  %5683 = vmatprep.mubr.msk.f32.mxu1 %vm6161_vm1, %v6160_v9 }
0x1062   :  { %v1797_v45 = vpop.f32.mrb[22].mxu1 }
0x1063   :  { %v5665_v46 = vpop.f32.mrb[23].mxu1  ;;  %5669 = vmatmul.mubr.msk.f32.vlgmr.msra.gmra.mrb[18].mxu0 %vm184_vm2, %v1797_v45 }
0x1064   :  { %5678 = vmatprep.mubr.msk.f32.mxu0 %vm6161_vm1, %v6160_v9 }
0x1066   :  { %v1949_v47 = vpop.f32.mrb[24].mxu1 }
0x1067   :  { %v1953_v48 = vmul.f32 0.35355338, %v1949_v47  ;;  %v5675_v49 = vpop.f32.mrb[25].mxu1  ;;  %v84_v47 = vld [vmem:[%s6997_s10] sm:$0xff] }
0x1069   :  { %v1954_v51 = vadd.f32 %v6460_v44, %v1953_v48  ;;  %v85_v48 = vld [vmem:[%s6997_s10 + $0x8] sm:$0xff] }
0x106a   :  { %v5935_v49 = vpack.c.bf16 %v85_v48, %v84_v47 }
0x106b   :  { %v1955_v52 = vsel %vm184_vm2, %v1954_v51, -inf }
0x106c   :  { %1956 = vmax.xlane.f32.xlu0 %v1955_v52  ;;  %5936 = vmatprep.subr.bf16.mxu1 %v5935_v49  ;;  %v87_v52 = vld [vmem:[%s6997_s10 + $0x18] sm:$0xff] }
0x1082   :  { %1966 = vrot.lane.b32.xlu0 %v6315_v12, %s7015_s29  ;;  %v2128_v12 = vsel %vm99_vm0, %v2124_v60, 0.0 }
0x10f9   :  { %v1957_v40 = vpop.xlane.xlu0 %1956 }
0x10fa   :  { %v1958_v53 = vsub.f32 %v1954_v51, %v1957_v40  ;;  %v86_v51 = vld [vmem:[%s6997_s10 + $0x10] sm:$0xff] }
0x10fb   :  { %v5939_v40 = vpack.c.bf16 %v87_v52, %v86_v51 }
0x10fc   :  { %v1959_v54 = vmul.f32 1.442695, %v1958_v53  ;;  %v88_v53 = vld [vmem:[%s6997_s10 + $0x20] sm:$0xff] }
0x10fd   :  { %v1967_v55 = vpop.permute.xlu0 %1966 }
0x10fe   :  { %6042 = vpow2.f32 %v1959_v54  ;;  %5677 = vmatpush3.msra.mxu0 %v1967_v55  ;;  %v89_v54 = vld [vmem:[%s6997_s10 + $0x28] sm:$0xff] }
0x10ff   :  { %5928 = vmatprep.subr.bf16.mxu0 %v5927_v34  ;;  %v5943_v55 = vpack.c.bf16 %v89_v54, %v88_v53  ;;  %v5313_v53 = vld [vmem:[%s6999_s12] ss:$0 sm:$0xff] }
0x1108   :  { %v6043_v58 = vpop.eup %6042 }
0x1109   :  { %v1961_v59 = vsel %vm184_vm2, %v6043_v58, 0.0 }
0x110a   :  { %1962 = vadd.xlane.f32.xlu1 %v1961_v59  ;;  %v5307_v59 = vld [vmem:[%s6996_s9] ss:$0 sm:$0xff] }
0x110e   :  { %2129 = vadd.xlane.f32.xlu1 %v2128_v12 }
0x1136   :  { %v1870_v61 = vpop.f32.mrb[18].mxu0 }
0x1137   :  { %v1874_v62 = vadd.f32 %v1870_v61, %v1631_v26  ;;  %v5670_v63 = vpop.f32.mrb[19].mxu0 }
0x1197   :  { %v1963_v0 = vpop.xlane.xlu1 %1962 }
0x1198   :  { %6044 = vrcp.f32 %v1963_v0 }
0x119b   :  { %v2130_v5 = vpop.xlane.xlu1 %2129 }
0x119c   :  { %v2135_v7 = vmul.f32 0.03125, %v2130_v5 }
0x119e   :  { %v2137_v15 = vsub.f32 %v2124_v60, %v2135_v7 }
0x11a0   :  { %v2139_v19 = vmul.f32 %v2137_v15, %v2137_v15 }
0x11a2   :  { %v6045_v1 = vpop.eup %6044  ;;  %v2141_v20 = vsel %vm99_vm0, %v2139_v19, 0.0 }
0x11a3   :  { %v1965_v3 = vmul.f32 %v6045_v1, %v6043_v58 }
0x11a5   :  { %5679 = vmatmul.mubr.msk.f32.vlgmr.msra.gmra.mrb[20].mxu0 %vm184_vm2, %v1965_v3 }
0x11a6   :  { %5930 = vmatpush3.bf16.msra.mxu0 %v5927_v34 }
0x11a7   :  { %5932 = vmatprep.subr.bf16.mxu0 %v5931_v37 }
0x11aa   :  { %5934 = vmatpush3.bf16.msra.mxu0 %v5931_v37 }
0x1278   :  { %v2038_v4 = vpop.f32.mrb[20].mxu0 }
0x1279   :  { %v5680_v2 = vpop.f32.mrb[21].mxu0  ;;  %5684 = vmatmul.mubr.msk.f32.vlgmr.msra.gmra.mrb[26].mxu1 %vm184_vm2, %v2038_v4 }
0x127a   :  { %5938 = vmatpush3.bf16.msra.mxu1 %v5935_v49 }
0x127b   :  { %5940 = vmatprep.subr.bf16.mxu1 %v5939_v40 }
0x127e   :  { %5942 = vmatpush3.bf16.msra.mxu1 %v5939_v40 }
0x127f   :  { %5944 = vmatprep.subr.bf16.mxu1 %v5943_v55 }
0x1282   :  { %5946 = vmatpush3.bf16.msra.mxu1 %v5943_v55  ;;  %v5314_v55 = vld [vmem:[%s7000_s13] ss:$0 sm:$0xff] }
0x134c   :  { %v2111_v6 = vpop.f32.mrb[26].mxu1 }
0x134d   :  { %v2115_v11 = vadd.f32 %v2111_v6, %v1874_v62  ;;  %v5685_v13 = vpop.f32.mrb[27].mxu1 }
0x134f   :  { %v2123_v16 = vadd.f32 %v5304_v56, %v2115_v11  ;;  %v90_v56 = vld [vmem:[%s6997_s10 + $0x30] sm:$0xff] }
0x1350   :  { %v5947_v58 = vpack.c.bf16 %v91_v57, %v90_v56 }
0x1351   :  { %v2125_v14 = vadd.f32 %v2123_v16, %v6302_v8  ;;  %v5305_v8 = vld [vmem:[%s6993_s6] ss:$0 sm:$0xff] }
0x1352   :  { %5948 = vmatprep.subr.bf16.mxu1 %v5947_v58 }
0x1353   :  { %v2131_v17 = vsel %vm99_vm0, %v2125_v14, 0.0  ;;  %5950 = vmatpush3.bf16.msra.mxu1 %v5947_v58 }
0x1354   :  { %2132 = vadd.xlane.f32.xlu1 %v2131_v17  ;;  %5732 = vmatprep.subr.mxu1 %v6160_v9 }
0x1358   :  { %2142 = vadd.xlane.f32.xlu1 %v2141_v20 }
0x13e1   :  { %v2133_v21 = vpop.xlane.xlu1 %2132 }
0x13e2   :  { %v2136_v22 = vmul.f32 0.03125, %v2133_v21 }
0x13e4   :  { %v2138_v50 = vsub.f32 %v2125_v14, %v2136_v22  ;;  %v5310_v22 = vld [vmem:[%s6998_s11] ss:$0 sm:$0xff] }
0x13e5   :  { %v2143_v23 = vpop.xlane.xlu1 %2142 }
0x13e6   :  { %v2147_v24 = vmul.f32 0.03125, %v2143_v23  ;;  %v2140_v25 = vmul.f32 %v2138_v50, %v2138_v50 }
0x13e8   :  { %v2149_v26 = vadd.f32 1e-12, %v2147_v24  ;;  %v2144_v27 = vsel %vm99_vm0, %v2140_v25, 0.0 }
0x13e9   :  { %2145 = vadd.xlane.f32.xlu1 %v2144_v27 }
0x13ea   :  { %6046 = vrsqrt.f32 %v2149_v26 }
0x13f4   :  { %v6047_v28 = vpop.eup %6046 }
0x13f5   :  { %v2153_v29 = vmul.f32 %v6047_v28, %v2137_v15 }
0x13f7   :  { %v2161_v31 = vmul.f32 %v5305_v8, %v2153_v29 }
0x13f9   :  { %v6546_v32 = vadd.f32 %v5306_v30, %v2161_v31 }
0x13fb   :  { %5694 = vmatprep.mubr.msk.f32.mxu0 %vm99_vm0, %v6546_v32 }
0x1476   :  { %v2146_v38 = vpop.xlane.xlu1 %2145 }
0x1477   :  { %v2148_v39 = vmul.f32 0.03125, %v2146_v38 }
0x1479   :  { %v2150_v41 = vadd.f32 1e-12, %v2148_v39  ;;  %v5316_v39 = vld [vmem:[%s7027_s1 + $0x28] sm:$0xff] }
0x147b   :  { %6048 = vrsqrt.f32 %v2150_v41 }
0x1485   :  { %v6049_v42 = vpop.eup %6048 }
0x1486   :  { %v2154_v43 = vmul.f32 %v6049_v42, %v2138_v50  ;;  %v5317_v42 = vld [vmem:[%s7027_s1 + $0x30] sm:$0xff] }
0x1488   :  { %v2162_v45 = vmul.f32 %v5305_v8, %v2154_v43  ;;  %v5318_v43 = vld [vmem:[%s7027_s1 + $0x38] sm:$0xff] }
0x148a   :  { %v2170_v46 = vadd.f32 %v5306_v30, %v2162_v45  ;;  %v5955_v45 = vpack.c.bf16 %v5318_v43, %v5317_v42 }
0x148c   :  { %5695 = vmatmul.mubr.msk.f32.vlgmr.msra.gmra.mrb[22].mxu0 %vm99_vm0, %v2170_v46 }
0x155f   :  { %v5696_v60 = vpop.f32.mrb[22].mxu0 }
0x1560   :  { %v2255_v12 = vadd.f32 %v5696_v60, %v5307_v59  ;;  %v2249_v61 = vpop.f32.mrb[23].mxu0 }
0x1561   :  { %v2250_v62 = vadd.f32 %v5307_v59, %v2249_v61  ;;  %v5339_v61 = vld [vmem:[%s7029_s20 + $0x1] ss:$0 sm:$0xff]  ;;  %s7035_s20 = smov 48  }
0x1562   :  { %v2259_v63 = vmul.f32 %v2255_v12, %v2255_v12 }
0x1563   :  { %v2258_v0 = vmul.f32 %v2250_v62, %v2250_v62 }
0x1564   :  { %v2261_v1 = vmul.f32 %v2259_v63, %v2255_v12 }
0x1565   :  { %v2260_v3 = vmul.f32 %v2258_v0, %v2250_v62 }
0x1566   :  { %v2263_v4 = vmul.f32 0.044715, %v2261_v1 }
0x1567   :  { %v2262_v2 = vmul.f32 0.044715, %v2260_v3 }
0x1568   :  { %v2265_v5 = vadd.f32 %v2263_v4, %v2255_v12 }
0x1569   :  { %v2264_v7 = vadd.f32 %v2262_v2, %v2250_v62 }
0x156a   :  { %v2267_v6 = vmul.f32 0.7978846, %v2265_v5 }
0x156b   :  { %v2266_v11 = vmul.f32 0.7978846, %v2264_v7 }
0x156c   :  { %6050 = vtanh.f32 %v2267_v6 }
0x156d   :  { %6052 = vtanh.f32 %v2266_v11 }
0x1576   :  { %v6051_v13 = vpop.eup %6050 }
0x1577   :  { %v6053_v15 = vpop.eup %6052  ;;  %v2271_v16 = vadd.f32 1.0, %v6051_v13 }
0x1578   :  { %v2270_v14 = vadd.f32 1.0, %v6053_v15 }
0x1579   :  { %v2273_v17 = vmul.f32 0.5, %v2271_v16 }
0x157a   :  { %v2272_v19 = vmul.f32 0.5, %v2270_v14 }
0x157b   :  { %v2275_v21 = vmul.f32 %v2273_v17, %v2255_v12 }
0x157c   :  { %v2274_v20 = vmul.f32 %v2272_v19, %v2250_v62 }
0x157e   :  { %5713 = vmatprep.mubr.msk.f32.mxu1 %vm2282_vm3, %v2274_v20 }
0x157f   :  { %5714 = vmatmul.mubr.msk.f32.vlgmr.msra.gmra.mrb[28].mxu1 %vm2282_vm3, %v2275_v21 }
0x1580   :  { %5734 = vmatprep.mubr.msk.f32.mxu1 %vm6161_vm1, %v6160_v9 }
0x1652   :  { %v5715_v50 = vpop.f32.mrb[28].mxu1 }
0x1653   :  { %v2361_v23 = vadd.f32 %v5715_v50, %v5310_v22  ;;  %v2355_v24 = vpop.f32.mrb[29].mxu1 }
0x1654   :  { %v2356_v25 = vadd.f32 %v5310_v22, %v2355_v24 }
0x1655   :  { %v2365_v26 = vadd.f32 %v2361_v23, %v2170_v46 }
0x1656   :  { %v2364_v27 = vadd.f32 %v2356_v25, %v6546_v32  ;;  %v5315_v32 = vld [vmem:[%s7027_s1 + $0x20] sm:$0xff] }
0x1657   :  { %v2371_v28 = vsel %vm99_vm0, %v2365_v26, 0.0  ;;  %v5951_v41 = vpack.c.bf16 %v5316_v39, %v5315_v32 }
0x1658   :  { %2372 = vadd.xlane.f32.xlu1 %v2371_v28  ;;  %v2368_v8 = vsel %vm99_vm0, %v2364_v27, 0.0  ;;  %v6673_v28 = vld [vmem:[%s6991_s4 + $0x28] sm:$0xff] }
0x1659   :  { %2369 = vadd.xlane.f32.xlu0 %v2368_v8  ;;  %5952 = vmatprep.subr.bf16.mxu0 %v5951_v41 }
0x165a   :  { %5954 = vmatpush3.bf16.msra.mxu0 %v5951_v41 }
0x165b   :  { %5956 = vmatprep.subr.bf16.mxu0 %v5955_v45 }
0x165e   :  { %5958 = vmatpush3.bf16.msra.mxu0 %v5955_v45 }
0x165f   :  { %5727 = vmatprep.subr.mxu0 %v6160_v9 }
0x16e5   :  { %v2373_v29 = vpop.xlane.xlu1 %2372 }
0x16e6   :  { %v2375_v30 = vmul.f32 0.03125, %v2373_v29  ;;  %v2370_v31 = vpop.xlane.xlu0 %2369 }
0x16e7   :  { %v2374_v10 = vmul.f32 0.03125, %v2370_v31 }
0x16e8   :  { %v2377_v33 = vsub.f32 %v2365_v26, %v2375_v30 }
0x16e9   :  { %v2376_v34 = vsub.f32 %v2364_v27, %v2374_v10 }
0x16ea   :  { %v2379_v37 = vmul.f32 %v2377_v33, %v2377_v33 }
0x16eb   :  { %v2378_v35 = vmul.f32 %v2376_v34, %v2376_v34 }
0x16ec   :  { %v2383_v38 = vsel %vm99_vm0, %v2379_v37, 0.0 }
0x16ed   :  { %v2380_v36 = vsel %vm99_vm0, %v2378_v35, 0.0 }
0x16ee   :  { %2381 = vadd.xlane.f32.xlu1 %v2380_v36  ;;  %v6688_v36 = vld [vmem:[%s6991_s4 + $0x20] sm:$0xff] }
0x16f2   :  { %2384 = vadd.xlane.f32.xlu1 %v2383_v38 }
0x177b   :  { %v2382_v46 = vpop.xlane.xlu1 %2381 }
0x177c   :  { %v2386_v47 = vmul.f32 0.03125, %v2382_v46 }
0x177e   :  { %v2388_v48 = vadd.f32 1e-12, %v2386_v47 }
0x177f   :  { %v2385_v49 = vpop.xlane.xlu1 %2384 }
0x1780   :  { %6054 = vrsqrt.f32 %v2388_v48  ;;  %v2387_v51 = vmul.f32 0.03125, %v2385_v49 }
0x1782   :  { %v2389_v52 = vadd.f32 1e-12, %v2387_v51 }
0x1784   :  { %6056 = vrsqrt.f32 %v2389_v52 }
0x178a   :  { %v6055_v40 = vpop.eup %6054 }
0x178b   :  { %v2392_v54 = vmul.f32 %v6055_v40, %v2376_v34  ;;  %v6110_v40 = vld [vmem:[%s7030_s25] ss:$0 sm:$0xff] }
0x178d   :  { %v2400_v56 = vmul.f32 %v5313_v53, %v2392_v54 }
0x178e   :  { %v6057_v57 = vpop.eup %6056 }
0x178f   :  { %v2393_v58 = vmul.f32 %v6057_v57, %v2377_v33  ;;  %v6622_v59 = vadd.f32 %v5314_v55, %v2400_v56 }
0x1791   :  { %v2401_v60 = vmul.f32 %v5313_v53, %v2393_v58  ;;  %5724 = vmatprep.mubr.msk.f32.mxu0 %vm99_vm0, %v6622_v59 }
0x1793   :  { %v6626_v12 = vadd.f32 %v5314_v55, %v2401_v60 }
0x1795   :  { %5725 = vmatmul.mubr.msk.f32.vlgmr.msra.gmra.mrb[24].mxu0 %vm99_vm0, %v6626_v12 }
0x1796   :  { %5729 = vmatprep.mubr.msk.f32.mxu0 %vm6161_vm1, %v6160_v9 }
0x1868   :  { %v5726_v62 = vpop.f32.mrb[24].mxu0 }
0x1869   :  { %v6635_v63 = vadd.f32 %v5726_v62, %v5339_v61  ;;  %v2520_v0 = vpop.f32.mrb[25].mxu0 }
0x186a   :  { %v6637_v1 = vadd.f32 %v5339_v61, %v2520_v0 }
0x186c   :  { %2695 = vrot.lane.b32.xlu0 %v6637_v1, %s6165_s3  ;;  %2530 = vrot.lane.b32.xlu1 %v6637_v1, %s7031_s24 }
0x1870   :  { %2697 = vrot.lane.b32.xlu1 %v6637_v1, %s7032_s28 }
0x18de   :  { %v2531_v3 = vpop.permute.xlu1 %2530  ;;  %v2696_v2 = vpop.permute.xlu0 %2695 }
0x18df   :  { %5728 = vmatpush3.xpose.msk.msra.mxu0 %vm184_vm2, %v2531_v3 }
0x18e0   :  { %5737 = vmatprep.subr.mxu0 %v6160_v9 }
0x18e2   :  { %5730 = vmatmul.mubr.msk.f32.vlgmr.msra.gmra.mrb[26].mxu0 %vm184_vm2, %v6637_v1  ;;  %v2698_v4 = vpop.permute.xlu1 %2697 }
0x18e3   :  { %5738 = vmatpush3.xpose.msk.msra.mxu0 %vm184_vm2, %v2698_v4  ;;  %5739 = vmatprep.mubr.msk.f32.mxu0 %vm6161_vm1, %v6160_v9 }
0x18e4   :  { %5747 = vmatprep.subr.mxu0 %v6160_v9 }
0x18e6   :  { %5740 = vmatmul.mubr.msk.f32.vlgmr.msra.gmra.mrb[28].mxu0 %vm184_vm2, %v2696_v2 }
0x18e7   :  { %5749 = vmatprep.mubr.msk.f32.mxu0 %vm6161_vm1, %v6160_v9  ;;  %5748 = vmatpush3.msra.mxu0 %v6673_v28 }
0x18e8   :  { %5757 = vmatprep.subr.mxu0 %v6160_v9 }
0x19b5   :  { %v2602_v5 = vpop.f32.mrb[26].mxu0 }
0x19b6   :  { %v2606_v7 = vmul.f32 0.35355338, %v2602_v5  ;;  %v5731_v6 = vpop.f32.mrb[27].mxu0  ;;  %v6728_v5 = vld [vmem:[%s6991_s4 + $0x30] sm:$0xff] }
0x19b8   :  { %v2607_v11 = vadd.f32 %v6335_v18, %v2606_v7 }
0x19b9   :  { %v2769_v13 = vpop.f32.mrb[28].mxu0 }
0x19ba   :  { %v2773_v15 = vmul.f32 0.35355338, %v2769_v13  ;;  %v5741_v16 = vpop.f32.mrb[29].mxu0  ;;  %v2608_v14 = vsel %vm184_vm2, %v2607_v11, -inf }
0x19bb   :  { %2609 = vmax.xlane.f32.xlu1 %v2608_v14 }
0x19bc   :  { %v2774_v17 = vadd.f32 %v6335_v18, %v2773_v15 }
0x19be   :  { %v2775_v19 = vsel %vm184_vm2, %v2774_v17, -inf }
0x19bf   :  { %2776 = vmax.xlane.f32.xlu0 %v2775_v19 }
0x19d5   :  { %2786 = vrot.lane.b32.xlu0 %v6637_v1, %s6166_s15 }
0x1a48   :  { %v2610_v20 = vpop.xlane.xlu1 %2609 }
0x1a49   :  { %v2611_v21 = vsub.f32 %v2607_v11, %v2610_v20 }
0x1a4b   :  { %v2612_v22 = vmul.f32 1.442695, %v2611_v21 }
0x1a4c   :  { %v2777_v50 = vpop.xlane.xlu0 %2776 }
0x1a4d   :  { %6058 = vpow2.f32 %v2612_v22  ;;  %v2778_v23 = vsub.f32 %v2774_v17, %v2777_v50 }
0x1a4f   :  { %v2779_v24 = vmul.f32 1.442695, %v2778_v23 }
0x1a50   :  { %v2787_v33 = vpop.permute.xlu0 %2786 }
0x1a51   :  { %6060 = vpow2.f32 %v2779_v24 }
0x1a57   :  { %v6059_v25 = vpop.eup %6058 }
0x1a58   :  { %v2614_v26 = vsel %vm184_vm2, %v6059_v25, 0.0 }
0x1a59   :  { %2615 = vadd.xlane.f32.xlu1 %v2614_v26 }
0x1a5b   :  { %v6061_v27 = vpop.eup %6060 }
0x1a5c   :  { %v2781_v18 = vsel %vm184_vm2, %v6061_v27, 0.0 }
0x1a5d   :  { %2782 = vadd.xlane.f32.xlu1 %v2781_v18 }
0x1a6e   :  { %2619 = vrot.lane.b32.xlu1 %v6637_v1, %s6162_s21 }
0x1a72   :  { %3010 = vrot.lane.b32.xlu1 %v6637_v1, %s6167_s26 }
0x1a76   :  { %3008 = vrot.lane.b32.xlu1 %v6637_v1, %s6168_s27 }
0x1ae6   :  { %v2616_v8 = vpop.xlane.xlu1 %2615 }
0x1ae7   :  { %6062 = vrcp.f32 %v2616_v8 }
0x1aea   :  { %v2783_v29 = vpop.xlane.xlu1 %2782 }
0x1aeb   :  { %6064 = vrcp.f32 %v2783_v29 }
0x1aee   :  { %v2620_v30 = vpop.permute.xlu1 %2619 }
0x1aef   :  { %5733 = vmatpush3.msra.mxu1 %v2620_v30  ;;  %v6763_v30 = vld [vmem:[%s6991_s4 + $0x38] sm:$0xff] }
0x1af0   :  { %5742 = vmatprep.subr.mxu1 %v6160_v9 }
0x1af1   :  { %v6063_v31 = vpop.eup %6062 }
0x1af2   :  { %v2618_v10 = vmul.f32 %v6063_v31, %v6059_v25  ;;  %v3011_v32 = vpop.permute.xlu1 %3010 }
0x1af4   :  { %5735 = vmatmul.mubr.msk.f32.vlgmr.msra.gmra.mrb[30].mxu1 %vm184_vm2, %v2618_v10 }
0x1af5   :  { %v6065_v34 = vpop.eup %6064  ;;  %5743 = vmatpush3.msra.mxu1 %v2787_v33  ;;  %5744 = vmatprep.mubr.msk.f32.mxu1 %vm6161_vm1, %v6160_v9 }
0x1af6   :  { %v2785_v35 = vmul.f32 %v6065_v34, %v6061_v27  ;;  %5752 = vmatprep.subr.mxu1 %v6160_v9  ;;  %v3009_v42 = vpop.permute.xlu1 %3008 }
0x1af8   :  { %5745 = vmatmul.mubr.msk.f32.vlgmr.msra.gmra.mrb[32].mxu1 %vm184_vm2, %v2785_v35 }
0x1af9   :  { %5754 = vmatprep.mubr.msk.f32.mxu1 %vm6161_vm1, %v6160_v9  ;;  %5753 = vmatpush3.msra.mxu1 %v6688_v36 }
0x1afa   :  { %5762 = vmatprep.subr.mxu1 %v6160_v9 }
0x1bc7   :  { %v2691_v37 = vpop.f32.mrb[30].mxu1 }
0x1bc8   :  { %v5736_v38 = vpop.f32.mrb[31].mxu1  ;;  %5755 = vmatmul.mubr.msk.f32.vlgmr.msra.gmra.mrb[34].mxu1 %vm184_vm2, %v2691_v37 }
0x1bc9   :  { %5764 = vmatprep.mubr.msk.f32.mxu1 %vm6161_vm1, %v6160_v9 }
0x1bcb   :  { %v2858_v39 = vpop.f32.mrb[32].mxu1 }
0x1bcc   :  { %v5746_v41 = vpop.f32.mrb[33].mxu1  ;;  %5750 = vmatmul.mubr.msk.f32.vlgmr.msra.gmra.mrb[30].mxu0 %vm184_vm2, %v2858_v39 }
0x1bcd   :  { %5758 = vmatpush3.xpose.msk.msra.mxu0 %vm184_vm2, %v3011_v32  ;;  %5759 = vmatprep.mubr.msk.f32.mxu0 %vm6161_vm1, %v6160_v9 }
0x1bce   :  { %5767 = vmatprep.subr.mxu0 %v6160_v9 }
0x1bd0   :  { %5760 = vmatmul.mubr.msk.f32.vlgmr.msra.gmra.mrb[32].mxu0 %vm184_vm2, %v3009_v42 }
0x1bd1   :  { %5769 = vmatprep.mubr.msk.f32.mxu0 %vm6161_vm1, %v6160_v9  ;;  %5768 = vmatpush3.msra.mxu0 %v6728_v5 }
0x1bd2   :  { %5777 = vmatprep.subr.mxu0 %v6160_v9 }
0x1c9b   :  { %v3004_v43 = vpop.f32.mrb[34].mxu1 }
0x1c9c   :  { %v5756_v45 = vpop.f32.mrb[35].mxu1 }
0x1c9f   :  { %v2931_v46 = vpop.f32.mrb[30].mxu0 }
0x1ca0   :  { %v3005_v47 = vadd.f32 %v3004_v43, %v2931_v46  ;;  %v5751_v48 = vpop.f32.mrb[31].mxu0 }
0x1ca3   :  { %v3082_v49 = vpop.f32.mrb[32].mxu0 }
0x1ca4   :  { %v3086_v51 = vmul.f32 0.35355338, %v3082_v49  ;;  %v5761_v52 = vpop.f32.mrb[33].mxu0 }
0x1ca6   :  { %v3087_v53 = vadd.f32 %v6110_v40, %v3086_v51 }
0x1ca8   :  { %v3088_v54 = vsel %vm184_vm2, %v3087_v53, -inf }
0x1ca9   :  { %3089 = vmax.xlane.f32.xlu1 %v3088_v54 }
0x1cba   :  { %3251 = vrot.lane.b32.xlu1 %v6637_v1, %s7033_s2 }
0x1cbe   :  { %3249 = vrot.lane.b32.xlu1 %v6637_v1, %s7034_s23 }
0x1cc2   :  { %3491 = vrot.lane.b32.xlu1 %v6635_v63, %s7031_s24 }
0x1d36   :  { %v3090_v55 = vpop.xlane.xlu1 %3089 }
0x1d37   :  { %v3091_v56 = vsub.f32 %v3087_v53, %v3090_v55 }
0x1d39   :  { %v3092_v57 = vmul.f32 1.442695, %v3091_v56 }
0x1d3a   :  { %v3252_v3 = vpop.permute.xlu1 %3251 }
0x1d3b   :  { %6066 = vpow2.f32 %v3092_v57 }
0x1d3e   :  { %v3250_v2 = vpop.permute.xlu1 %3249 }
0x1d42   :  { %v3492_v25 = vpop.permute.xlu1 %3491 }
0x1d45   :  { %v6067_v58 = vpop.eup %6066 }
0x1d46   :  { %v3094_v60 = vsel %vm184_vm2, %v6067_v58, 0.0 }
0x1d47   :  { %3095 = vadd.xlane.f32.xlu0 %v3094_v60 }
0x1d5d   :  { %3099 = vrot.lane.b32.xlu0 %v6637_v1, %s7035_s20 }
0x1dd4   :  { %v3096_v61 = vpop.xlane.xlu0 %3095 }
0x1dd5   :  { %6068 = vrcp.f32 %v3096_v61 }
0x1dd8   :  { %v3100_v62 = vpop.permute.xlu0 %3099 }
0x1dd9   :  { %5763 = vmatpush3.msra.mxu1 %v3100_v62 }
0x1dda   :  { %5772 = vmatprep.subr.mxu1 %v6160_v9 }
0x1ddf   :  { %v6069_v0 = vpop.eup %6068 }
0x1de0   :  { %v3098_v4 = vmul.f32 %v6069_v0, %v6067_v58 }
0x1de2   :  { %5765 = vmatmul.mubr.msk.f32.vlgmr.msra.gmra.mrb[36].mxu1 %vm184_vm2, %v3098_v4 }
0x1de3   :  { %5773 = vmatpush3.xpose.msk.msra.mxu1 %vm184_vm2, %v3252_v3  ;;  %5774 = vmatprep.mubr.msk.f32.mxu1 %vm6161_vm1, %v6160_v9 }
0x1de4   :  { %5782 = vmatprep.subr.mxu1 %v6160_v9 }
0x1de6   :  { %5775 = vmatmul.mubr.msk.f32.vlgmr.msra.gmra.mrb[38].mxu1 %vm184_vm2, %v3250_v2 }
0x1de7   :  { %5784 = vmatprep.mubr.msk.f32.mxu1 %vm6161_vm1, %v6160_v9  ;;  %5783 = vmatpush3.msra.mxu1 %v6763_v30 }
0x1de8   :  { %5792 = vmatprep.subr.mxu1 %v6160_v9 }
0x1eb5   :  { %v3171_v7 = vpop.f32.mrb[36].mxu1 }
0x1eb6   :  { %v5766_v6 = vpop.f32.mrb[37].mxu1  ;;  %5770 = vmatmul.mubr.msk.f32.vlgmr.msra.gmra.mrb[34].mxu0 %vm184_vm2, %v3171_v7 }
0x1eb7   :  { %5779 = vmatprep.mubr.msk.f32.mxu0 %vm6161_vm1, %v6160_v9 }
0x1eb9   :  { %v3323_v11 = vpop.f32.mrb[38].mxu1 }
0x1eba   :  { %v3327_v13 = vmul.f32 0.35355338, %v3323_v11  ;;  %v5776_v15 = vpop.f32.mrb[39].mxu1 }
0x1ebc   :  { %v3328_v16 = vadd.f32 %v6110_v40, %v3327_v13 }
0x1ebe   :  { %v3329_v14 = vsel %vm184_vm2, %v3328_v16, -inf }
0x1ebf   :  { %3330 = vmax.xlane.f32.xlu0 %v3329_v14 }
0x1ed5   :  { %3340 = vrot.lane.b32.xlu0 %v6637_v1, %s7036_s0 }
0x1ed9   :  { %3658 = vrot.lane.b32.xlu0 %v6635_v63, %s7032_s28 }
0x1f4c   :  { %v3331_v17 = vpop.xlane.xlu0 %3330 }
0x1f4d   :  { %v3332_v19 = vsub.f32 %v3328_v16, %v3331_v17 }
0x1f4f   :  { %v3333_v20 = vmul.f32 1.442695, %v3332_v19 }
0x1f50   :  { %v3341_v21 = vpop.permute.xlu0 %3340 }
0x1f51   :  { %6070 = vpow2.f32 %v3333_v20  ;;  %5778 = vmatpush3.msra.mxu0 %v3341_v21 }
0x1f52   :  { %5787 = vmatprep.subr.mxu0 %v6160_v9 }
0x1f54   :  { %v3659_v8 = vpop.permute.xlu0 %3658 }
0x1f5b   :  { %v6071_v22 = vpop.eup %6070 }
0x1f5c   :  { %v3335_v50 = vsel %vm184_vm2, %v6071_v22, 0.0 }
0x1f5d   :  { %3336 = vadd.xlane.f32.xlu1 %v3335_v50 }
0x1f6e   :  { %3656 = vrot.lane.b32.xlu1 %v6635_v63, %s6165_s3 }
0x1f89   :  { %v3244_v23 = vpop.f32.mrb[34].mxu0 }
0x1f8a   :  { %v3248_v1 = vadd.f32 %v3244_v23, %v3005_v47  ;;  %v5771_v24 = vpop.f32.mrb[35].mxu0 }
0x1fea   :  { %v3337_v26 = vpop.xlane.xlu1 %3336 }
0x1feb   :  { %6072 = vrcp.f32 %v3337_v26 }
0x1fee   :  { %v3657_v29 = vpop.permute.xlu1 %3656 }
0x1ff5   :  { %v6073_v27 = vpop.eup %6072 }
0x1ff6   :  { %v3339_v18 = vmul.f32 %v6073_v27, %v6071_v22  ;;  %v6111_v22 = vld [vmem:[%s7030_s25 + $0x1] ss:$0 sm:$0xff] }
0x1ff8   :  { %5780 = vmatmul.mubr.msk.f32.vlgmr.msra.gmra.mrb[36].mxu0 %vm184_vm2, %v3339_v18 }
0x1ff9   :  { %5788 = vmatpush3.xpose.msk.msra.mxu0 %vm184_vm2, %v3492_v25  ;;  %5789 = vmatprep.mubr.msk.f32.mxu0 %vm6161_vm1, %v6160_v9 }
0x1ffa   :  { %5797 = vmatprep.subr.mxu0 %v6160_v9 }
0x1ffc   :  { %5790 = vmatmul.mubr.msk.f32.vlgmr.msra.gmra.mrb[38].mxu0 %vm184_vm2, %v6635_v63 }
0x1ffd   :  { %5798 = vmatpush3.xpose.msk.msra.mxu0 %vm184_vm2, %v3659_v8  ;;  %5799 = vmatprep.mubr.msk.f32.mxu0 %vm6161_vm1, %v6160_v9 }
0x1ffe   :  { %5807 = vmatprep.subr.mxu0 %v6160_v9 }
0x2000   :  { %5800 = vmatmul.mubr.msk.f32.vlgmr.msra.gmra.mrb[40].mxu0 %vm184_vm2, %v3657_v29 }
0x2001   :  { %5808 = vmatpush3.msra.mxu0 %v6673_v28  ;;  %5809 = vmatprep.mubr.msk.f32.mxu0 %vm6161_vm1, %v6160_v9 }
0x2002   :  { %5817 = vmatprep.subr.mxu0 %v6160_v9 }
0x20cb   :  { %v3412_v31 = vpop.f32.mrb[36].mxu0 }
0x20cc   :  { %v5781_v10 = vpop.f32.mrb[37].mxu0  ;;  %5785 = vmatmul.mubr.msk.f32.vlgmr.msra.gmra.mrb[40].mxu1 %vm184_vm2, %v3412_v31 }
0x20cd   :  { %5794 = vmatprep.mubr.msk.f32.mxu1 %vm6161_vm1, %v6160_v9 }
0x20cf   :  { %v3563_v28 = vpop.f32.mrb[38].mxu0 }
0x20d0   :  { %v3567_v33 = vmul.f32 0.35355338, %v3563_v28  ;;  %v5791_v34 = vpop.f32.mrb[39].mxu0 }
0x20d1   :  { %v5374_v34 = vld [vmem:[%s6992_s5 + $0x1] ss:$0 sm:$0xff] }
0x20d2   :  { %v3568_v35 = vadd.f32 %v6460_v44, %v3567_v33 }
0x20d3   :  { %v3730_v37 = vpop.f32.mrb[40].mxu0 }
0x20d4   :  { %v3734_v38 = vmul.f32 0.35355338, %v3730_v37  ;;  %v5801_v32 = vpop.f32.mrb[41].mxu0  ;;  %v3569_v39 = vsel %vm184_vm2, %v3568_v35, -inf }
0x20d5   :  { %3570 = vmax.xlane.f32.xlu0 %v3569_v39 }
0x20d6   :  { %v3735_v41 = vadd.f32 %v6460_v44, %v3734_v38 }
0x20d8   :  { %v3736_v42 = vsel %vm184_vm2, %v3735_v41, -inf }
0x20d9   :  { %3737 = vmax.xlane.f32.xlu1 %v3736_v42 }
0x20ea   :  { %3580 = vrot.lane.b32.xlu1 %v6635_v63, %s6162_s21 }
0x20ee   :  { %3971 = vrot.lane.b32.xlu1 %v6635_v63, %s6167_s26 }
0x20f2   :  { %3969 = vrot.lane.b32.xlu1 %v6635_v63, %s6168_s27 }
0x2162   :  { %v3571_v43 = vpop.xlane.xlu0 %3570 }
0x2163   :  { %v3572_v45 = vsub.f32 %v3568_v35, %v3571_v43 }
0x2165   :  { %v3573_v46 = vmul.f32 1.442695, %v3572_v45 }
0x2166   :  { %v3738_v47 = vpop.xlane.xlu1 %3737 }
0x2167   :  { %6074 = vpow2.f32 %v3573_v46  ;;  %v3739_v48 = vsub.f32 %v3735_v41, %v3738_v47 }
0x2169   :  { %v3740_v49 = vmul.f32 1.442695, %v3739_v48 }
0x216a   :  { %v3581_v44 = vpop.permute.xlu1 %3580 }
0x216b   :  { %6076 = vpow2.f32 %v3740_v49  ;;  %5793 = vmatpush3.msra.mxu1 %v3581_v44 }
0x216c   :  { %5802 = vmatprep.subr.mxu1 %v6160_v9 }
0x216e   :  { %v3972_v7 = vpop.permute.xlu1 %3971 }
0x2171   :  { %v6075_v51 = vpop.eup %6074 }
0x2172   :  { %v3575_v52 = vsel %vm184_vm2, %v6075_v51, 0.0 }
0x2173   :  { %3576 = vadd.xlane.f32.xlu0 %v3575_v52 }
0x2175   :  { %v6077_v40 = vpop.eup %6076 }
0x2176   :  { %v3742_v53 = vsel %vm184_vm2, %v6077_v40, 0.0 }
0x2177   :  { %3743 = vadd.xlane.f32.xlu0 %v3742_v53 }
0x218d   :  { %3747 = vrot.lane.b32.xlu0 %v6635_v63, %s6166_s15 }
0x219f   :  { %v3485_v54 = vpop.f32.mrb[40].mxu1 }
0x21a0   :  { %v6785_v55 = vadd.f32 %v3485_v54, %v3248_v1  ;;  %v5786_v56 = vpop.f32.mrb[41].mxu1 }
0x21a2   :  { %v4457_v37 = vadd.f32 %v5374_v34, %v6785_v55 }
0x21a4   :  { %v4459_v41 = vadd.f32 %v4457_v37, %v6622_v59  ;;  %v5333_v37 = vld [vmem:[%s6997_s10 + $0x58] sm:$0xff] }
0x21a6   :  { %v4465_v42 = vsel %vm99_vm0, %v4459_v41, 0.0 }
0x2200   :  { %v3577_v57 = vpop.xlane.xlu0 %3576 }
0x2201   :  { %6078 = vrcp.f32 %v3577_v57 }
0x2204   :  { %v3744_v58 = vpop.xlane.xlu0 %3743 }
0x2205   :  { %6080 = vrcp.f32 %v3744_v58 }
0x2208   :  { %v3748_v62 = vpop.permute.xlu0 %3747 }
0x220b   :  { %v6079_v60 = vpop.eup %6078 }
0x220c   :  { %v3579_v61 = vmul.f32 %v6079_v60, %v6075_v51 }
0x220e   :  { %5795 = vmatmul.mubr.msk.f32.vlgmr.msra.gmra.mrb[42].mxu1 %vm184_vm2, %v3579_v61 }
0x220f   :  { %v6081_v0 = vpop.eup %6080  ;;  %5803 = vmatpush3.msra.mxu1 %v3748_v62  ;;  %5804 = vmatprep.mubr.msk.f32.mxu1 %vm6161_vm1, %v6160_v9 }
0x2210   :  { %v3746_v3 = vmul.f32 %v6081_v0, %v6077_v40  ;;  %5812 = vmatprep.subr.mxu1 %v6160_v9 }
0x2212   :  { %5805 = vmatmul.mubr.msk.f32.vlgmr.msra.gmra.mrb[44].mxu1 %vm184_vm2, %v3746_v3 }
0x2213   :  { %5813 = vmatpush3.msra.mxu1 %v6688_v36  ;;  %5814 = vmatprep.mubr.msk.f32.mxu1 %vm6161_vm1, %v6160_v9  ;;  %v3970_v36 = vpop.permute.xlu1 %3969 }
0x2214   :  { %5822 = vmatprep.subr.mxu1 %v6160_v9 }
0x22e1   :  { %v3652_v4 = vpop.f32.mrb[42].mxu1 }
0x22e2   :  { %v5796_v2 = vpop.f32.mrb[43].mxu1  ;;  %5815 = vmatmul.mubr.msk.f32.vlgmr.msra.gmra.mrb[46].mxu1 %vm184_vm2, %v3652_v4 }
0x22e3   :  { %5824 = vmatprep.mubr.msk.f32.mxu1 %vm6161_vm1, %v6160_v9 }
0x22e5   :  { %v3819_v6 = vpop.f32.mrb[44].mxu1 }
0x22e6   :  { %v5806_v11 = vpop.f32.mrb[45].mxu1  ;;  %5810 = vmatmul.mubr.msk.f32.vlgmr.msra.gmra.mrb[42].mxu0 %vm184_vm2, %v3819_v6 }
0x22e7   :  { %5818 = vmatpush3.xpose.msk.msra.mxu0 %vm184_vm2, %v3972_v7  ;;  %5819 = vmatprep.mubr.msk.f32.mxu0 %vm6161_vm1, %v6160_v9 }
0x22e8   :  { %5827 = vmatprep.subr.mxu0 %v6160_v9 }
0x22ea   :  { %5820 = vmatmul.mubr.msk.f32.vlgmr.msra.gmra.mrb[44].mxu0 %vm184_vm2, %v3970_v36 }
0x22eb   :  { %5828 = vmatpush3.msra.mxu0 %v6728_v5  ;;  %5829 = vmatprep.mubr.msk.f32.mxu0 %vm6161_vm1, %v6160_v9 }
0x22ec   :  { %5837 = vmatprep.subr.mxu0 %v6160_v9 }
0x23b5   :  { %v3965_v13 = vpop.f32.mrb[46].mxu1 }
0x23b6   :  { %v5816_v15 = vpop.f32.mrb[47].mxu1 }
0x23b9   :  { %v3892_v16 = vpop.f32.mrb[42].mxu0 }
0x23ba   :  { %v3966_v14 = vadd.f32 %v3965_v13, %v3892_v16  ;;  %v5811_v17 = vpop.f32.mrb[43].mxu0 }
0x23bd   :  { %v4043_v19 = vpop.f32.mrb[44].mxu0 }
0x23be   :  { %v4047_v20 = vmul.f32 0.35355338, %v4043_v19  ;;  %v5821_v21 = vpop.f32.mrb[45].mxu0 }
0x23c0   :  { %v4048_v50 = vadd.f32 %v6111_v22, %v4047_v20  ;;  %v5378_v20 = vld [vmem:[%s6994_s7 + $0x1] ss:$0 sm:$0xff] }
0x23c2   :  { %v4049_v5 = vsel %vm184_vm2, %v4048_v50, -inf }
0x23c3   :  { %4050 = vmax.xlane.f32.xlu0 %v4049_v5  ;;  %v5326_v5 = vld [vmem:[%s6995_s8 + $0x28] sm:$0xff] }
0x23d9   :  { %4060 = vrot.lane.b32.xlu0 %v6635_v63, %s7035_s20 }
0x23dd   :  { %4210 = vrot.lane.b32.xlu0 %v6635_v63, %s7034_s23 }
0x2450   :  { %v4051_v23 = vpop.xlane.xlu0 %4050 }
0x2451   :  { %v4052_v1 = vsub.f32 %v4048_v50, %v4051_v23  ;;  %v5325_v50 = vld [vmem:[%s6995_s8 + $0x20] sm:$0xff] }
0x2452   :  { %v5959_v23 = vpack.c.bf16 %v5326_v5, %v5325_v50 }
0x2453   :  { %v4053_v24 = vmul.f32 1.442695, %v4052_v1  ;;  %v5327_v1 = vld [vmem:[%s6995_s8 + $0x30] sm:$0xff] }
0x2454   :  { %v4061_v25 = vpop.permute.xlu0 %4060 }
0x2455   :  { %6082 = vpow2.f32 %v4053_v24  ;;  %5823 = vmatpush3.msra.mxu1 %v4061_v25  ;;  %v5328_v24 = vld [vmem:[%s6995_s8 + $0x38] sm:$0xff] }
0x2456   :  { %5832 = vmatprep.subr.mxu1 %v6160_v9  ;;  %v5963_v25 = vpack.c.bf16 %v5328_v24, %v5327_v1  ;;  %v4748_v24 = vld [vmem:[#allocation2] sm:$0x1] }
0x2458   :  { %v4211_v10 = vpop.permute.xlu0 %4210 }
0x245f   :  { %v6083_v26 = vpop.eup %6082 }
0x2460   :  { %v4055_v27 = vsel %vm184_vm2, %v6083_v26, 0.0 }
0x2461   :  { %4056 = vadd.xlane.f32.xlu1 %v4055_v27 }
0x2472   :  { %4212 = vrot.lane.b32.xlu1 %v6635_v63, %s7033_s2 }
0x24ee   :  { %v4057_v18 = vpop.xlane.xlu1 %4056 }
0x24ef   :  { %6084 = vrcp.f32 %v4057_v18 }
0x24f2   :  { %v4213_v31 = vpop.permute.xlu1 %4212 }
0x24f9   :  { %v6085_v8 = vpop.eup %6084 }
0x24fa   :  { %v4059_v29 = vmul.f32 %v6085_v8, %v6083_v26 }
0x24fc   :  { %5825 = vmatmul.mubr.msk.f32.vlgmr.msra.gmra.mrb[48].mxu1 %vm184_vm2, %v4059_v29 }
0x24fd   :  { %5833 = vmatpush3.xpose.msk.msra.mxu1 %vm184_vm2, %v4213_v31  ;;  %5834 = vmatprep.mubr.msk.f32.mxu1 %vm6161_vm1, %v6160_v9 }
0x24fe   :  { %5842 = vmatprep.subr.mxu1 %v6160_v9 }
0x2500   :  { %5835 = vmatmul.mubr.msk.f32.vlgmr.msra.gmra.mrb[50].mxu1 %vm184_vm2, %v4211_v10 }
0x2501   :  { %5843 = vmatpush3.msra.mxu1 %v6763_v30  ;;  %5844 = vmatprep.mubr.msk.f32.mxu1 %vm6161_vm1, %v6160_v9 }
0x25cf   :  { %v4132_v28 = vpop.f32.mrb[48].mxu1 }
0x25d0   :  { %v5826_v33 = vpop.f32.mrb[49].mxu1  ;;  %5830 = vmatmul.mubr.msk.f32.vlgmr.msra.gmra.mrb[46].mxu0 %vm184_vm2, %v4132_v28  ;;  %v5330_v28 = vld [vmem:[%s6997_s10 + $0x40] sm:$0xff] }
0x25d1   :  { %5839 = vmatprep.mubr.msk.f32.mxu0 %vm6161_vm1, %v6160_v9  ;;  %v5331_v33 = vld [vmem:[%s6997_s10 + $0x48] sm:$0xff] }
0x25d3   :  { %v4284_v35 = vpop.f32.mrb[50].mxu1 }
0x25d4   :  { %v4288_v38 = vmul.f32 0.35355338, %v4284_v35  ;;  %v5836_v32 = vpop.f32.mrb[51].mxu1  ;;  %v5332_v35 = vld [vmem:[%s6997_s10 + $0x50] sm:$0xff] }
0x25d5   :  { %v5334_v32 = vld [vmem:[%s6997_s10 + $0x60] sm:$0xff] }
0x25d6   :  { %v4289_v30 = vadd.f32 %v6111_v22, %v4288_v38  ;;  %v5971_v38 = vpack.c.bf16 %v5333_v37, %v5332_v35 }
0x25d8   :  { %v4290_v39 = vsel %vm184_vm2, %v4289_v30, -inf }
0x25d9   :  { %4291 = vmax.xlane.f32.xlu1 %v4290_v39 }
0x25dd   :  { %4466 = vadd.xlane.f32.xlu1 %v4465_v42  ;;  %v5337_v42 = vld [vmem:[%s6997_s10 + $0x78] sm:$0xff] }
0x2666   :  { %v4292_v43 = vpop.xlane.xlu1 %4291 }
0x2667   :  { %v4293_v45 = vsub.f32 %v4289_v30, %v4292_v43  ;;  %v5335_v30 = vld [vmem:[%s6997_s10 + $0x68] sm:$0xff] }
0x2668   :  { %v5975_v39 = vpack.c.bf16 %v5335_v30, %v5334_v32  ;;  %v4747_v30 = vld [vmem:[%s7001_s14] sm:$0x1] }
0x2669   :  { %v4294_v46 = vmul.f32 1.442695, %v4293_v45  ;;  %v5379_v45 = vld [vmem:[%s6996_s9 + $0x1] ss:$0 sm:$0xff] }
0x266a   :  { %v4467_v56 = vpop.xlane.xlu1 %4466 }
0x266b   :  { %6086 = vpow2.f32 %v4294_v46  ;;  %v4471_v57 = vmul.f32 0.03125, %v4467_v56 }
0x266d   :  { %v4473_v61 = vsub.f32 %v4459_v41, %v4471_v57  ;;  %v5336_v41 = vld [vmem:[%s6997_s10 + $0x70] sm:$0xff] }
0x266e   :  { %v5979_v43 = vpack.c.bf16 %v5337_v42, %v5336_v41  ;;  %v4759_v42 = vlaneseq }
0x266f   :  { %v4475_v4 = vmul.f32 %v4473_v61, %v4473_v61 }
0x2671   :  { %v4477_v2 = vsel %vm99_vm0, %v4475_v4, 0.0 }
0x2675   :  { %v6087_v47 = vpop.eup %6086 }
0x2676   :  { %v4296_v48 = vsel %vm184_vm2, %v6087_v47, 0.0 }
0x2677   :  { %4297 = vadd.xlane.f32.xlu0 %v4296_v48 }
0x268d   :  { %4301 = vrot.lane.b32.xlu0 %v6635_v63, %s7036_s0 }
0x26a3   :  { %v4205_v49 = vpop.f32.mrb[46].mxu0 }
0x26a4   :  { %v4209_v44 = vadd.f32 %v4205_v49, %v3966_v14  ;;  %v5831_v51 = vpop.f32.mrb[47].mxu0 }
0x2704   :  { %v4298_v52 = vpop.xlane.xlu0 %4297 }
0x2705   :  { %6088 = vrcp.f32 %v4298_v52 }
0x2708   :  { %v4302_v59 = vpop.permute.xlu0 %4301 }
0x2709   :  { %5838 = vmatpush3.msra.mxu0 %v4302_v59 }
0x270a   :  { %5960 = vmatprep.subr.bf16.mxu0 %v5959_v23 }
0x270f   :  { %v6089_v40 = vpop.eup %6088 }
0x2710   :  { %v4300_v53 = vmul.f32 %v6089_v40, %v6087_v47 }
0x2712   :  { %5840 = vmatmul.mubr.msk.f32.vlgmr.msra.gmra.mrb[48].mxu0 %vm184_vm2, %v4300_v53 }
0x2713   :  { %5962 = vmatpush3.bf16.msra.mxu0 %v5959_v23 }
0x2714   :  { %5964 = vmatprep.subr.bf16.mxu0 %v5963_v25 }
0x2717   :  { %5966 = vmatpush3.bf16.msra.mxu0 %v5963_v25  ;;  %v6173_v25 = vmov 0  }
0x2718   :  { %5877 = vmatprep.subr.mxu0 %v6160_v9  ;;  %6012 = vset.pattern.permute.xlu1 %v6173_v25 }
0x2719   :  { %6013 = vset.pattern.permute.xlu0 %v6173_v25 }
0x27e5   :  { %v4373_v54 = vpop.f32.mrb[48].mxu0 }
0x27e6   :  { %v5841_v55 = vpop.f32.mrb[49].mxu0  ;;  %5845 = vmatmul.mubr.msk.f32.vlgmr.msra.gmra.mrb[52].mxu1 %vm184_vm2, %v4373_v54 }
0x28b9   :  { %v4446_v58 = vpop.f32.mrb[52].mxu1 }
0x28ba   :  { %v4450_v60 = vadd.f32 %v4446_v58, %v4209_v44  ;;  %v5846_v63 = vpop.f32.mrb[53].mxu1 }
0x28bc   :  { %v4458_v62 = vadd.f32 %v5374_v34, %v4450_v60  ;;  %v5967_v34 = vpack.c.bf16 %v5331_v33, %v5330_v28  ;;  %v5387_v28 = vld [vmem:[%s6999_s12 + $0x1] ss:$0 sm:$0xff] }
0x28be   :  { %v4460_v0 = vadd.f32 %v4458_v62, %v6626_v12  ;;  %v5377_v12 = vld [vmem:[%s6993_s6 + $0x1] ss:$0 sm:$0xff]  ;;  %5968 = vmatprep.subr.bf16.mxu1 %v5967_v34 }
0x28bf   :  { %5970 = vmatpush3.bf16.msra.mxu1 %v5967_v34  ;;  %v5388_v34 = vld [vmem:[%s7000_s13 + $0x1] ss:$0 sm:$0xff] }
0x28c0   :  { %v4468_v3 = vsel %vm99_vm0, %v4460_v0, 0.0  ;;  %5972 = vmatprep.subr.bf16.mxu1 %v5971_v38 }
0x28c1   :  { %4469 = vadd.xlane.f32.xlu1 %v4468_v3 }
0x28c3   :  { %5974 = vmatpush3.bf16.msra.mxu1 %v5971_v38 }
0x28c4   :  { %5976 = vmatprep.subr.bf16.mxu1 %v5975_v39 }
0x28c5   :  { %4478 = vadd.xlane.f32.xlu1 %v4477_v2  ;;  %v5382_v2 = vld [vmem:[%s6998_s11 + $0x1] ss:$0 sm:$0xff] }
0x28c7   :  { %5978 = vmatpush3.bf16.msra.mxu1 %v5975_v39 }
0x28c8   :  { %5980 = vmatprep.subr.bf16.mxu1 %v5979_v43 }
0x28cb   :  { %5982 = vmatpush3.bf16.msra.mxu1 %v5979_v43  ;;  %v4760_v43 = vshrl.u32 %v4759_v42, 7 }
0x28cc   :  { %5898 = vmatprep.subr.mxu1 %v6160_v9 }
0x294e   :  { %v4470_v7 = vpop.xlane.xlu1 %4469 }
0x294f   :  { %v4472_v6 = vmul.f32 0.03125, %v4470_v7 }
0x2951   :  { %v4474_v11 = vsub.f32 %v4460_v0, %v4472_v6 }
0x2952   :  { %v4479_v36 = vpop.xlane.xlu1 %4478 }
0x2953   :  { %v4483_v13 = vmul.f32 0.03125, %v4479_v36  ;;  %v4476_v15 = vmul.f32 %v4474_v11, %v4474_v11 }
0x2955   :  { %v4485_v16 = vadd.f32 1e-12, %v4483_v13  ;;  %v4480_v14 = vsel %vm99_vm0, %v4476_v15, 0.0 }
0x2956   :  { %4481 = vadd.xlane.f32.xlu1 %v4480_v14 }
0x2957   :  { %6090 = vrsqrt.f32 %v4485_v16 }
0x2961   :  { %v6091_v17 = vpop.eup %6090 }
0x2962   :  { %v4489_v19 = vmul.f32 %v6091_v17, %v4473_v61 }
0x2964   :  { %v4497_v21 = vmul.f32 %v5377_v12, %v4489_v19 }
0x2966   :  { %v6855_v22 = vadd.f32 %v5378_v20, %v4497_v21 }
0x2968   :  { %5855 = vmatprep.mubr.msk.f32.mxu0 %vm99_vm0, %v6855_v22 }
0x29e3   :  { %v4482_v26 = vpop.xlane.xlu1 %4481 }
0x29e4   :  { %v4484_v27 = vmul.f32 0.03125, %v4482_v26 }
0x29e6   :  { %v4486_v18 = vadd.f32 1e-12, %v4484_v27 }
0x29e8   :  { %6092 = vrsqrt.f32 %v4486_v18 }
0x29f2   :  { %v6093_v8 = vpop.eup %6092 }
0x29f3   :  { %v4490_v29 = vmul.f32 %v6093_v8, %v4474_v11 }
0x29f5   :  { %v4498_v31 = vmul.f32 %v5377_v12, %v4490_v29 }
0x29f7   :  { %v4506_v10 = vadd.f32 %v5378_v20, %v4498_v31 }
0x29f9   :  { %5856 = vmatmul.mubr.msk.f32.vlgmr.msra.gmra.mrb[50].mxu0 %vm99_vm0, %v4506_v10 }
0x29fa   :  { %5879 = vmatprep.mubr.msk.f32.mxu0 %vm6161_vm1, %v6160_v9 }
0x2acc   :  { %v5857_v46 = vpop.f32.mrb[50].mxu0 }
0x2acd   :  { %v4591_v47 = vadd.f32 %v5857_v46, %v5379_v45  ;;  %v4585_v48 = vpop.f32.mrb[51].mxu0 }
0x2ace   :  { %v4586_v49 = vadd.f32 %v5379_v45, %v4585_v48  ;;  %v4761_v45 = vsub.s32 0, %v4760_v43 }
0x2acf   :  { %v4595_v44 = vmul.f32 %v4591_v47, %v4591_v47 }
0x2ad0   :  { %v4594_v51 = vmul.f32 %v4586_v49, %v4586_v49 }
0x2ad1   :  { %v4597_v52 = vmul.f32 %v4595_v44, %v4591_v47 }
0x2ad2   :  { %v4596_v59 = vmul.f32 %v4594_v51, %v4586_v49 }
0x2ad3   :  { %v4599_v40 = vmul.f32 0.044715, %v4597_v52 }
0x2ad4   :  { %v4598_v53 = vmul.f32 0.044715, %v4596_v59 }
0x2ad5   :  { %v4601_v54 = vadd.f32 %v4599_v40, %v4591_v47 }
0x2ad6   :  { %v4600_v55 = vadd.f32 %v4598_v53, %v4586_v49 }
0x2ad7   :  { %v4603_v56 = vmul.f32 0.7978846, %v4601_v54 }
0x2ad8   :  { %v4602_v57 = vmul.f32 0.7978846, %v4600_v55 }
0x2ad9   :  { %6094 = vtanh.f32 %v4603_v56 }
0x2ada   :  { %6096 = vtanh.f32 %v4602_v57 }
0x2ae3   :  { %v6095_v58 = vpop.eup %6094 }
0x2ae4   :  { %v6097_v60 = vpop.eup %6096  ;;  %v4607_v63 = vadd.f32 1.0, %v6095_v58 }
0x2ae5   :  { %v4606_v61 = vadd.f32 1.0, %v6097_v60 }
0x2ae6   :  { %v4609_v62 = vmul.f32 0.5, %v4607_v63 }
0x2ae7   :  { %v4608_v0 = vmul.f32 0.5, %v4606_v61 }
0x2ae8   :  { %v4611_v4 = vmul.f32 %v4609_v62, %v4591_v47 }
0x2ae9   :  { %v4610_v3 = vmul.f32 %v4608_v0, %v4586_v49 }
0x2aeb   :  { %5874 = vmatprep.mubr.msk.f32.mxu1 %vm2282_vm3, %v4610_v3  ;;  %v6174_v3 = vmov 0.0|0.0  }
0x2aec   :  { %5875 = vmatmul.mubr.msk.f32.vlgmr.msra.gmra.mrb[54].mxu1 %vm2282_vm3, %v4611_v4 }
0x2aed   :  { %5900 = vmatprep.mubr.msk.f32.mxu1 %vm6161_vm1, %v6160_v9 }
0x2bbf   :  { %v5876_v7 = vpop.f32.mrb[54].mxu1 }
0x2bc0   :  { %v4690_v6 = vpop.f32.mrb[55].mxu1  ;;  %v4696_v11 = vadd.f32 %v5876_v7, %v5382_v2  ;;  %v4749_v7 = vld [vmem:[%s7003_s16] sm:$0xff] }
0x2bc1   :  { %v4691_v36 = vadd.f32 %v5382_v2, %v4690_v6  ;;  %v4750_v6 = vld [vmem:[%s7003_s16 + $0x8] sm:$0xff] }
0x2bc2   :  { %v4700_v15 = vadd.f32 %v4696_v11, %v4506_v10 }
0x2bc3   :  { %v4699_v13 = vadd.f32 %v4691_v36, %v6855_v22  ;;  %v5984_v36 = vpack.c.bf16 %v4750_v6, %v4749_v7 }
0x2bc4   :  { %v4708_v14 = vsel %vm99_vm0, %v4700_v15, 0.0 }
0x2bc5   :  { %v4705_v16 = vsel %vm99_vm0, %v4699_v13, 0.0 }
0x2bc6   :  { %4706 = vadd.xlane.f32.xlu1 %v4705_v16  ;;  %v4752_v16 = vld [vmem:[%s7003_s16 + $0x18] sm:$0xff] }
0x2bca   :  { %4709 = vadd.xlane.f32.xlu1 %v4708_v14 }
0x2c53   :  { %v4707_v17 = vpop.xlane.xlu1 %4706 }
0x2c54   :  { %v4711_v12 = vmul.f32 0.03125, %v4707_v17 }
0x2c56   :  { %v4713_v19 = vsub.f32 %v4699_v13, %v4711_v12 }
0x2c57   :  { %v4710_v20 = vpop.xlane.xlu1 %4709 }
0x2c58   :  { %v4712_v21 = vmul.f32 0.03125, %v4710_v20  ;;  %v4715_v50 = vmul.f32 %v4713_v19, %v4713_v19 }
0x2c5a   :  { %v4714_v5 = vsub.f32 %v4700_v15, %v4712_v21  ;;  %v4717_v23 = vsel %vm99_vm0, %v4715_v50, 0.0  ;;  %v4751_v15 = vld [vmem:[%s7003_s16 + $0x10] sm:$0xff]  ;;  %s6175_s16 = smov [#allocation5]  }
0x2c5b   :  { %4718 = vadd.xlane.f32.xlu0 %v4717_v23  ;;  %v5987_v17 = vpack.c.bf16 %v4752_v16, %v4751_v15  ;;  %s5255_s25 = sshll.u32 %s6175_s16, 4  ;;  %s5256_s25 = int_to_ptr.vmem [resolvable:$true] %s5255_s25 }
0x2c5c   :  { %v4716_v1 = vmul.f32 %v4714_v5, %v4714_v5  ;;  %s6112_s15 = scalar_lea.vmem %s5256_s25, 32  ;;  %p6117_p1 = scmp.lt.s32.totalorder %s5256_s25, %s5256_s25 }
0x2c5d   :  { %p6113_p0 = scmp.ne.s32.totalorder %s5256_s25, %s6112_s15  ;;  %p6118_p2 = scmp.lt.s32.totalorder %s6112_s15, %s6112_s15 }
0x2c5e   :  { %v4720_v22 = vsel %vm99_vm0, %v4716_v1, 0.0 }
0x2c5f   :  { %4721 = vadd.xlane.f32.xlu1 %v4720_v22  ;;  %p6119_p3 = por %p6118_p2, %p6117_p1 }
0x2c61   :  { %p6120_p4 = pnand %p6119_p3, %p6113_p0 }
0x2c70   :  { %4756 = vperm.xlu1 %6012, %v4748_v24  }
0x2ce8   :  { %v4719_v26 = vpop.xlane.xlu0 %4718 }
0x2ce9   :  { %v4723_v27 = vmul.f32 0.03125, %v4719_v26 }
0x2ceb   :  { %v4725_v18 = vadd.f32 1e-12, %v4723_v27 }
0x2cec   :  { %v4722_v8 = vpop.xlane.xlu1 %4721 }
0x2ced   :  { %6098 = vrsqrt.f32 %v4725_v18  ;;  %v4724_v29 = vmul.f32 0.03125, %v4722_v8 }
0x2cef   :  { %v4726_v31 = vadd.f32 1e-12, %v4724_v29 }
0x2cf0   :  { %v4757_v46 = vpop.permute.xlu1 %4756 }
0x2cf1   :  { %6100 = vrsqrt.f32 %v4726_v31  ;;  %v4762_v47 = vrot.slane %v4757_v46, %v4761_v45 }
0x2cf7   :  { %v6099_v10 = vpop.eup %6098 }
0x2cf8   :  { %v4729_v33 = vmul.f32 %v6099_v10, %v4713_v19 }
0x2cfa   :  { %v4737_v35 = vmul.f32 %v5387_v28, %v4729_v33 }
0x2cfb   :  { %v6101_v37 = vpop.eup %6100 }
0x2cfc   :  { %v4730_v38 = vmul.f32 %v6101_v37, %v4714_v5  ;;  %v4745_v32 = vadd.f32 %v5388_v34, %v4737_v35 }
0x2cfe   :  { %5878 = vmatpush3.xpose.msk.msra.mxu0 %vm99_vm0, %v4745_v32  ;;  %v4738_v39 = vmul.f32 %v5387_v28, %v4730_v38 }
0x2cff   :  { %5882 = vmatprep.subr.mxu0 %v6160_v9 }
0x2d00   :  { %v4746_v41 = vadd.f32 %v5388_v34, %v4738_v39 }
0x2d01   :  { %5880 = vmatmul.mubr.msk.f32.vlgmr.msra.gmra.mrb[52].mxu0 %vm99_vm0, %v4747_v30 }
0x2d02   :  { %5883 = vmatpush3.msra.mxu0 %v4745_v32  ;;  %5899 = vmatpush3.xpose.msk.msra.mxu1 %vm99_vm0, %v4746_v41 }
0x2d03   :  { %5903 = vmatprep.subr.mxu1 %v6160_v9  ;;  %5884 = vmatprep.mubr.msk.f32.mxu0 %vm6161_vm1, %v6160_v9 }
0x2d04   :  { %5983 = vmatprep.subr.bf16.mxu0 %v6174_v3 }
0x2d05   :  { %5901 = vmatmul.mubr.msk.f32.vlgmr.msra.gmra.mrb[56].mxu1 %vm99_vm0, %v4747_v30 }
0x2d06   :  { %5904 = vmatpush3.msra.mxu1 %v4746_v41  ;;  %5905 = vmatprep.mubr.msk.f32.mxu1 %vm6161_vm1, %v6160_v9 }
0x2dd4   :  { %v4835_v48 = vpop.f32.mrb[52].mxu0 }
0x2dd5   :  { %v4836_v49 = vadd.f32 %v4835_v48, %v4762_v47  ;;  %v5881_v44 = vpop.f32.mrb[53].mxu0 }
0x2dd7   :  { %v4840_v51 = vsel %vm4839_vm4, %v4836_v49, -inf }
0x2dd8   :  { %v5066_v52 = vpop.f32.mrb[56].mxu1  ;;  %4841 = vmax.xlane.f32.xlu1 %v4840_v51 }
0x2dd9   :  { %v5067_v59 = vadd.f32 %v5066_v52, %v4762_v47  ;;  %v5902_v40 = vpop.f32.mrb[57].mxu1 }
0x2ddb   :  { %v5070_v53 = vsel %vm4839_vm4, %v5067_v59, -inf }
0x2ddc   :  { %5071 = vmax.xlane.f32.xlu0 %v5070_v53 }
0x2e65   :  { %v4842_v54 = vpop.xlane.xlu1 %4841 }
0x2e66   :  { %v4843_v55 = vsub.f32 %v4836_v49, %v4842_v54 }
0x2e68   :  { %v4844_v56 = vmul.f32 1.442695, %v4843_v55 }
0x2e69   :  { %v5072_v57 = vpop.xlane.xlu0 %5071 }
0x2e6a   :  { %6102 = vpow2.f32 %v4844_v56  ;;  %v5073_v58 = vsub.f32 %v5067_v59, %v5072_v57 }
0x2e6c   :  { %v5074_v60 = vmul.f32 1.442695, %v5073_v58 }
0x2e6e   :  { %6104 = vpow2.f32 %v5074_v60 }
0x2e74   :  { %v6103_v63 = vpop.eup %6102 }
0x2e75   :  { %v4846_v61 = vsel %vm4839_vm4, %v6103_v63, 0.0 }
0x2e76   :  { %4847 = vadd.xlane.f32.xlu0 %v4846_v61 }
0x2e78   :  { %v6105_v62 = vpop.eup %6104 }
0x2e79   :  { %v5076_v0 = vsel %vm4839_vm4, %v6105_v62, 0.0 }
0x2e7a   :  { %5077 = vadd.xlane.f32.xlu0 %v5076_v0 }
0x2f03   :  { %v4848_v4 = vpop.xlane.xlu0 %4847 }
0x2f04   :  { %6106 = vrcp.f32 %v4848_v4 }
0x2f07   :  { %v5078_v2 = vpop.xlane.xlu0 %5077 }
0x2f08   :  { %6108 = vrcp.f32 %v5078_v2 }
0x2f0e   :  { %v6107_v11 = vpop.eup %6106 }
0x2f0f   :  { %v4850_v13 = vmul.f32 %v6107_v11, %v6103_v63 }
0x2f11   :  { %5885 = vmatmul.mubr.msk.f32.vlgmr.msra.gmra.mrb[54].mxu0 %vm184_vm2, %v4850_v13 }
0x2f12   :  { %v6109_v14 = vpop.eup %6108  ;;  %5985 = vmatpush3.bf16.msra.mxu0 %v5984_v36  ;;  %5895 = vmatprep.mubr.msk.f32.mxu0 %vm6161_vm1, %v6160_v9 }
0x2f13   :  { %v5080_v12 = vmul.f32 %v6109_v14, %v6105_v62  ;;  %5986 = vmatprep.subr.bf16.mxu0 %v6174_v3 }
0x2f15   :  { %5906 = vmatmul.mubr.msk.f32.vlgmr.msra.gmra.mrb[58].mxu1 %vm184_vm2, %v5080_v12  ;;  %v5234_v19 = vrot.slane %v5080_v12, 7 }
0x2f16   :  { %5988 = vmatpush3.bf16.msra.mxu0 %v5987_v17 }
0x2f17   :  { %5989 = vmatprep.subr.bf16.mxu0 %v6174_v3  ;;  %v5236_v20 = vsel %vm5230_vm5, %v4850_v13, %v5234_v19 }
0x2f18   :  { %5238 = vst.msk [vmem:[#allocation5] sm:$0x3] %vm5237_vm6, %v5236_v20 }
0x2fe4   :  { %v4920_v21 = vpop.f32.mrb[54].mxu0 }
0x2fe5   :  { %v5886_v50 = vpop.f32.mrb[55].mxu0  ;;  %5896 = vmatmul.mubr.msk.f32.vlgmr.msra.gmra.mrb[56].mxu0 %vm99_vm0, %v4920_v21 }
0x2fe6   :  { %5991 = vmatpush3.bf16.msra.mxu0 %v5984_v36  ;;  %5916 = vmatprep.mubr.msk.f32.mxu0 %vm6161_vm1, %v6160_v9 }
0x2fe7   :  { %5992 = vmatprep.subr.bf16.mxu0 %v6174_v3 }
0x2fe8   :  { %v5150_v5 = vpop.f32.mrb[58].mxu1 }
0x2fe9   :  { %v5907_v23 = vpop.f32.mrb[59].mxu1 }
0x2fea   :  { %5994 = vmatpush3.bf16.msra.mxu0 %v5987_v17 }
0x2fed   :  { %5917 = vmatmul.mubr.msk.f32.vlgmr.msra.gmra.mrb[58].mxu0 %vm99_vm0, %v5150_v5 }
0x2fee   :  { %6123 = shalt.err (!%p6120_p4)
}
0x2fef   :  { %s6124_s27 = scalar_lea.hbm %s7006_s19, 32 }
0x2ff0   :  { %p6125_p5 = scmp.ne.s32.totalorder %s7006_s19, %s6124_s27  ;;  %p6128_p6 = scmp.lt.u32.totalorder %s6124_s27, %s7006_s19 }
0x2ff2   :  { %p6130_p7 = pnand %p6128_p6, %p6125_p5 }
0x2ff4   :  { %6133 = shalt.err (!%p6130_p7)
}
0x2ff5   :  { %5258 = dma.vmem_to_hbm [thread:$0]  %s5256_s25, 32, %s7006_s19, [#allocation6]   ;;  %v4753_v22 = vld [vmem:[%s7004_s17] sm:$0x1]  ;;  %vm5232_vm7 = vcmask 9216  }
0x2ff6   :  { %s6176_s11 = smov [#allocation3]  }
0x2ff7   :  { %s5245_s20 = sshll.u32 %s6176_s11, 4  ;;  %s5246_s20 = int_to_ptr.vmem [resolvable:$true] %s5245_s20 }
0x2ff8   :  { %s6134_s7 = scalar_lea.vmem %s5246_s20, 32  ;;  %p6139_p9 = scmp.lt.s32.totalorder %s5246_s20, %s5246_s20 }
0x2ff9   :  { %p6135_p8 = scmp.ne.s32.totalorder %s5246_s20, %s6134_s7  ;;  %p6140_p10 = scmp.lt.s32.totalorder %s6134_s7, %s6134_s7 }
0x2ffb   :  { %p6141_p11 = por %p6140_p10, %p6139_p9 }
0x2ffd   :  { %p6142_p12 = pnand %p6141_p11, %p6135_p8 }
0x30b8   :  { %v4993_v9 = vpop.f32.mrb[56].mxu0 }
0x30b9   :  { %v5897_v1 = vpop.f32.mrb[57].mxu0  ;;  %v4994_v27 = vadd.f32 %v4993_v9, %v4753_v22 }
0x30c0   :  { %v5223_v24 = vpop.f32.mrb[58].mxu0 }
0x30c1   :  { %v5224_v25 = vadd.f32 %v5223_v24, %v4753_v22  ;;  %v5918_v26 = vpop.f32.mrb[59].mxu0 }
0x30c3   :  { %v5228_v18 = vrot.slane %v5224_v25, 7 }
0x30c5   :  { %v5231_v8 = vsel %vm5230_vm5, %v4994_v27, %v5228_v18 }
0x30c6   :  { %5233 = vst.msk [vmem:[#allocation3] sm:$0x3] %vm5232_vm7, %v5231_v8 }
0x30c7   :  { %6145 = shalt.err (!%p6142_p12)
}
0x30c8   :  { %s6146_s24 = scalar_lea.hbm %s7005_s18, 32 }
0x30c9   :  { %p6147_p13 = scmp.ne.s32.totalorder %s7005_s18, %s6146_s24  ;;  %p6150_p0 = scmp.lt.u32.totalorder %s6146_s24, %s7005_s18 }
0x30cb   :  { %p6152_p1 = pnand %p6150_p0, %p6147_p13 }
0x30cd   :  { %6155 = shalt.err (!%p6152_p1)
}
0x30ce   :  { %5248 = dma.vmem_to_hbm [thread:$0]  %s5246_s20, 32, %s7005_s18, [#allocation4]  }
0x30cf   :  { %6156 = dma.done.wait [#allocation4], 32  }
0x30d0   :  { %6157 = vsyncadd [#allocation4], 4294967264 }
0x30d1   :  { %6158 = dma.done.wait [#allocation6], 32  }
0x30d2   :  { %6159 = vsyncadd [#allocation6], 4294967264 }
0x30d3   :  { %5265 = vsyncpa [#allocation4], 1 }
0x30d4   :  { %5266 = vsyncpa [#allocation6], 1 }

</bundles_post_ra>
